<compile_context>
chip_gen: v7x
topology: tpu7x:2x2x1
jax: 0.10.0
libtpu: 0.0.40
codegen_flags: <defaults>
</compile_context>

<pallas_src>
import functools

import numpy as np
import jax
import jax.numpy as jnp
from jax import lax
from jax.experimental import pallas as pl
from jax.experimental.pallas import tpu as pltpu


# ---------------------------------------------------------------------------
# Pallas kernel: whole decoder recurrence in one invocation
# ---------------------------------------------------------------------------
def decoder_kernel(
    emb_ref,    # (max_len, B, E)  teacher-forced char embeddings (time-major)
    key_ref,    # (B, T, KV)
    val_ref,    # (B, T, KV)
    mask_ref,   # (B, T)           1.0 where position is padded (masked)
    oh_ref,     # (1, B)           one-hot of argmax(encoder_len) batch element
    w0_ref,     # (E+KV+H, 4H)     fused LSTM0 weights  [W_ih0; W_hh0]^T
    b0_ref,     # (1, 4H)          b_ih0 + b_hh0
    w1_ref,     # (H+KV, 4KV)      fused LSTM1 weights  [W_ih1; W_hh1]^T
    b1_ref,     # (1, 4KV)
    wo_ref,     # (2KV, V)         tied output weights (= embedding.T)
    bo_ref,     # (1, V)
    pred_ref,   # out (max_len, B, V)
    attn_ref,   # out (max_len, 1, T)
):
    B, T, KV = key_ref.shape
    E = emb_ref.shape[2]
    H = w0_ref.shape[1] // 4
    max_len = emb_ref.shape[0]

    # DEFAULT precision (single-pass MXU), f32 accumulation.
    dot = functools.partial(jnp.dot, preferred_element_type=jnp.float32)

    # Loop-invariant small values (hoisted out of the time loop).
    # Additive mask (-1e30 instead of -inf: avoids NaN if a row is fully masked).
    neg_mask = jnp.where(mask_ref[...] > 0.5, jnp.float32(-1e30), jnp.float32(0.0))
    onehot = oh_ref[...]                                    # (1, B)
    inv_sqrt_kv = jnp.float32(1.0 / float(np.sqrt(KV)))     # compile-time const

    h0_init = jnp.zeros((B, H), jnp.float32)
    c0_init = jnp.zeros((B, H), jnp.float32)
    h1_init = jnp.zeros((B, KV), jnp.float32)
    c1_init = jnp.zeros((B, KV), jnp.float32)
    ctx_init = val_ref[:, 0, :]                             # context = value[:, 0, :]

    def step(i, carry):
        h0, c0, h1, c1, ctx = carry

        char_embed = emb_ref[i]                             # (B, E) dynamic load

        # ---- LSTMCell 0: fused input/hidden matmul ----
        x0 = jnp.concatenate([char_embed, ctx, h0], axis=1)      # (B, E+KV+H)
        gates0 = dot(x0, w0_ref[...]) + b0_ref[...]               # (B, 4H)
        i0 = jax.nn.sigmoid(gates0[:, 0:H])
        f0 = jax.nn.sigmoid(gates0[:, H:2 * H])
        g0 = jnp.tanh(gates0[:, 2 * H:3 * H])
        o0 = jax.nn.sigmoid(gates0[:, 3 * H:4 * H])
        c0_new = f0 * c0 + i0 * g0
        h0_new = o0 * jnp.tanh(c0_new)

        # ---- LSTMCell 1: fused input/hidden matmul ----
        x1 = jnp.concatenate([h0_new, h1], axis=1)                # (B, H+KV)
        gates1 = dot(x1, w1_ref[...]) + b1_ref[...]               # (B, 4KV)
        i1 = jax.nn.sigmoid(gates1[:, 0:KV])
        f1 = jax.nn.sigmoid(gates1[:, KV:2 * KV])
        g1 = jnp.tanh(gates1[:, 2 * KV:3 * KV])
        o1 = jax.nn.sigmoid(gates1[:, 3 * KV:4 * KV])
        c1_new = f1 * c1 + i1 * g1
        h1_new = o1 * jnp.tanh(c1_new)

        # ---- bmm attention (1/sqrt(KV) folded into the query) ----
        query = h1_new                                            # (B, KV)
        q_scaled = query * inv_sqrt_kv
        energy = jnp.sum(key_ref[...] * q_scaled[:, None, :], axis=-1)   # (B, T)
        energy = energy + neg_mask
        row_max = jnp.max(energy, axis=1, keepdims=True)
        p = jnp.exp(energy - row_max)
        denom = jnp.sum(p, axis=1, keepdims=True)
        attn = p * pl.reciprocal(denom, approx=True)              # (B, T)
        ctx_new = jnp.sum(attn[:, :, None] * val_ref[...], axis=1)       # (B, KV)

        # ---- tied output linear on cat([query, context]) ----
        xo = jnp.concatenate([query, ctx_new], axis=1)            # (B, 2KV)
        logits = dot(xo, wo_ref[...]) + bo_ref[...]               # (B, V)

        # Slab writes into VMEM output buffers (flushed to HBM once at the end).
        pred_ref[i] = logits
        attn_ref[i] = dot(onehot, attn)                           # (1, T) row

        return (h0_new, c0_new, h1_new, c1_new, ctx_new)

    lax.fori_loop(0, max_len, step,
                  (h0_init, c0_init, h1_init, c1_init, ctx_init),
                  unroll=(max_len <= 16))


# ---------------------------------------------------------------------------
# Wrapper (glue: embedding lookup, teacher-forcing shift, weight re-layout)
# ---------------------------------------------------------------------------
def las_decoder_forward(params, key_mat, value_mat, encoder_len, y):
    emb_table = params["embedding"]          # (V, E), row 0 is zero (padding_idx)
    B, T, KV = key_mat.shape
    V, E = emb_table.shape
    H = params["w_hh0"].shape[1]
    max_len = y.shape[1]
    assert E == 2 * KV, "weight tying requires embed_dim == 2 * key_value_size"

    # Embedding lookup + teacher forcing shift: step 0 sees zeros, step i sees y[:, i-1].
    char_emb = jnp.take(emb_table, y, axis=0)                         # (B, max_len, E)
    emb_shift = jnp.concatenate(
        [jnp.zeros((B, 1, E), jnp.float32), char_emb[:, :max_len - 1, :]], axis=1)
    emb_shift = jnp.transpose(emb_shift, (1, 0, 2))                   # (max_len, B, E)

    mask = (jnp.arange(T)[None, :] >= encoder_len[:, None]).astype(jnp.float32)   # (B, T)
    onehot = jax.nn.one_hot(jnp.argmax(encoder_len), B, dtype=jnp.float32)[None, :]  # (1, B)

    # Fused, matmul-friendly weight layout.
    w0 = jnp.concatenate([params["w_ih0"].T, params["w_hh0"].T], axis=0)   # (E+KV+H, 4H)
    b0 = (params["b_ih0"] + params["b_hh0"])[None, :]
    w1 = jnp.concatenate([params["w_ih1"].T, params["w_hh1"].T], axis=0)   # (H+KV, 4KV)
    b1 = (params["b_ih1"] + params["b_hh1"])[None, :]
    wo = emb_table.T                      # (2KV, V)  weight tying: character_prob.weight = embedding.weight
    bo = params["b_out"][None, :]

    def full(shape):
        return pl.BlockSpec(shape, lambda i, _n=len(shape): (0,) * _n)

    grid_spec = pltpu.PrefetchScalarGridSpec(
        num_scalar_prefetch=0,
        grid=(1,),
        in_specs=[
            full((max_len, B, E)),                 # emb_shift (time-major, whole slab)
            full((B, T, KV)),                      # key
            full((B, T, KV)),                      # value
            full((B, T)),                          # mask
            full((1, B)),                          # onehot row selector
            full((E + KV + H, 4 * H)), full((1, 4 * H)),
            full((H + KV, 4 * KV)), full((1, 4 * KV)),
            full((2 * KV, V)), full((1, V)),
        ],
        out_specs=[
            full((max_len, B, V)),                 # all per-step logits (one flush)
            full((max_len, 1, T)),                 # all attention rows (one flush)
        ],
    )

    preds, attns = pl.pallas_call(
        decoder_kernel,
        out_shape=(
            jax.ShapeDtypeStruct((max_len, B, V), jnp.float32),
            jax.ShapeDtypeStruct((max_len, 1, T), jnp.float32),
        ),
        grid_spec=grid_spec,
        compiler_params=pltpu.CompilerParams(dimension_semantics=("arbitrary",)),
    )(emb_shift, key_mat, value_mat, mask, onehot, w0, b0, w1, b1, wo, bo)

    predictions = jnp.transpose(preds, (1, 0, 2))   # (B, max_len, V)  like torch.cat(dim=1)
    attentions = attns[:, 0, :]                     # (max_len, T)     like torch.stack(dim=0)
    return predictions, attentions


# ---------------------------------------------------------------------------
# Pure-JAX reference (mirrors the PyTorch forward, eval-mode dropout)
# ---------------------------------------------------------------------------
def reference_forward(params, key_mat, value_mat, encoder_len, y):
    emb_table = params["embedding"]
    B, T, KV = key_mat.shape
    V, E = emb_table.shape
    H = params["w_hh0"].shape[1]
    max_len = y.shape[1]

    dot = functools.partial(
        jnp.dot, preferred_element_type=jnp.float32,
        precision=jax.lax.Precision.HIGHEST)

    char_emb = jnp.take(emb_table, y, axis=0)
    mask = jnp.arange(T)[None, :] >= encoder_len[:, None]
    b_star = int(jnp.argmax(encoder_len))

    h0 = jnp.zeros((B, H), jnp.float32)
    c0 = jnp.zeros((B, H), jnp.float32)
    h1 = jnp.zeros((B, KV), jnp.float32)
    c1 = jnp.zeros((B, KV), jnp.float32)
    context = value_mat[:, 0, :]

    def lstm_cell(x, h, c, w_ih, w_hh, b_ih, b_hh, hid):
        gates = dot(x, w_ih.T) + dot(h, w_hh.T) + b_ih + b_hh
        i = jax.nn.sigmoid(gates[:, 0:hid])
        f = jax.nn.sigmoid(gates[:, hid:2 * hid])
        g = jnp.tanh(gates[:, 2 * hid:3 * hid])
        o = jax.nn.sigmoid(gates[:, 3 * hid:4 * hid])
        c_new = f * c + i * g
        h_new = o * jnp.tanh(c_new)
        return h_new, c_new

    preds, attns = [], []
    for i in range(max_len):
        char_embed = (jnp.zeros((B, E), jnp.float32) if i == 0
                      else char_emb[:, i - 1, :])
        x = jnp.concatenate([char_embed, context], axis=1)
        h0, c0 = lstm_cell(x, h0, c0, params["w_ih0"], params["w_hh0"],
                           params["b_ih0"], params["b_hh0"], H)
        h1, c1 = lstm_cell(h0, h1, c1, params["w_ih1"], params["w_hh1"],
                           params["b_ih1"], params["b_hh1"], KV)
        query = h1
        energy = jnp.einsum("btk,bk->bt", key_mat, query,
                            precision=jax.lax.Precision.HIGHEST) / jnp.sqrt(jnp.float32(KV))
        energy = jnp.where(mask, -jnp.inf, energy)
        attn = jax.nn.softmax(energy, axis=1)
        context = jnp.einsum("bt,btk->bk", attn, value_mat,
                             precision=jax.lax.Precision.HIGHEST)
        attns.append(attn[b_star])
        out_ctx = jnp.concatenate([query, context], axis=1)
        logits = dot(out_ctx, emb_table.T) + params["b_out"]
        preds.append(logits[:, None, :])
    return jnp.concatenate(preds, axis=1), jnp.stack(attns, axis=0)


# ---------------------------------------------------------------------------
# Deterministic parameter init (mirrors nn.LSTMCell / nn.Embedding shapes)
# ---------------------------------------------------------------------------
def init_params(rng, vocab_size, key_value_size, decoder_hidden_dim):
    E = 2 * key_value_size
    ks = jax.random.split(rng, 10)
    emb = 0.1 * jax.random.normal(ks[0], (vocab_size, E), jnp.float32)
    emb = emb.at[0].set(0.0)  # padding_idx=0
    kH = 1.0 / np.sqrt(decoder_hidden_dim)
    kK = 1.0 / np.sqrt(key_value_size)
    u = lambda k, shape, s: jax.random.uniform(k, shape, jnp.float32, -s, s)
    return {
        "embedding": emb,
        "w_ih0": u(ks[1], (4 * decoder_hidden_dim, E + key_value_size), kH),
        "w_hh0": u(ks[2], (4 * decoder_hidden_dim, decoder_hidden_dim), kH),
        "b_ih0": u(ks[3], (4 * decoder_hidden_dim,), kH),
        "b_hh0": u(ks[4], (4 * decoder_hidden_dim,), kH),
        "w_ih1": u(ks[5], (4 * key_value_size, decoder_hidden_dim), kK),
        "w_hh1": u(ks[6], (4 * key_value_size, key_value_size), kK),
        "b_ih1": u(ks[7], (4 * key_value_size,), kK),
        "b_hh1": u(ks[8], (4 * key_value_size,), kK),
        "b_out": u(ks[9], (vocab_size,), 1.0 / np.sqrt(2 * key_value_size)),
    }


if __name__ == "__main__":
    B, T, KV, H, V, MAX_LEN = 2, 8, 32, 32, 32, 6

    root = jax.random.PRNGKey(0)
    k_p, k_k, k_v, k_y = jax.random.split(root, 4)

    params = init_params(k_p, vocab_size=V, key_value_size=KV, decoder_hidden_dim=H)
    key_mat = jax.random.normal(k_k, (B, T, KV), jnp.float32)
    value_mat = jax.random.normal(k_v, (B, T, KV), jnp.float32)
    encoder_len = jnp.array([T, 5], dtype=jnp.int32)        # max == T
    y = jax.random.randint(k_y, (B, MAX_LEN), 1, V, dtype=jnp.int32)

    preds, attns = las_decoder_forward(params, key_mat, value_mat, encoder_len, y)
    preds = jax.block_until_ready(preds)
    attns = jax.block_until_ready(attns)

    assert preds.shape == (B, MAX_LEN, V)
    assert attns.shape == (MAX_LEN, T)
    assert bool(jnp.all(jnp.isfinite(preds))) and bool(jnp.all(jnp.isfinite(attns)))

    ref_preds, ref_attns = reference_forward(params, key_mat, value_mat, encoder_len, y)
    np.testing.assert_allclose(np.asarray(preds), np.asarray(ref_preds),
                               rtol=2e-2, atol=2e-2)
    np.testing.assert_allclose(np.asarray(attns), np.asarray(ref_attns),
                               rtol=2e-2, atol=2e-2)

    print("KERNEL_OK")
</pallas_src>

<mosaic_0001>
module attributes {stable_mosaic.version = 11 : i64} {
  func.func @decoder_kernel(%arg0: i32, %arg1: memref<6x2x64xf32, #tpu.memory_space<vmem>>, %arg2: memref<2x8x32xf32, #tpu.memory_space<vmem>>, %arg3: memref<2x8x32xf32, #tpu.memory_space<vmem>>, %arg4: memref<2x8xf32, #tpu.memory_space<vmem>>, %arg5: memref<1x2xf32, #tpu.memory_space<vmem>>, %arg6: memref<128x128xf32, #tpu.memory_space<vmem>>, %arg7: memref<1x128xf32, #tpu.memory_space<vmem>>, %arg8: memref<64x128xf32, #tpu.memory_space<vmem>>, %arg9: memref<1x128xf32, #tpu.memory_space<vmem>>, %arg10: memref<64x32xf32, #tpu.memory_space<vmem>>, %arg11: memref<1x32xf32, #tpu.memory_space<vmem>>, %arg12: memref<6x2x32xf32, #tpu.memory_space<vmem>>, %arg13: memref<6x1x8xf32, #tpu.memory_space<vmem>>) attributes {dimension_semantics = [#tpu.dimension_semantics<arbitrary>], iteration_bounds = array<i64: 1>, scalar_prefetch = 0 : i64, scratch_operands = 0 : i64, tpu.core_type = #tpu.core_type<tc>, window_params = [{pipeline_mode = #tpu.pipeline_mode<synchronous>, transform_indices = @transform_0, window_bounds = array<i64: 6, 2, 64>}, {pipeline_mode = #tpu.pipeline_mode<synchronous>, transform_indices = @transform_1, window_bounds = array<i64: 2, 8, 32>}, {pipeline_mode = #tpu.pipeline_mode<synchronous>, transform_indices = @transform_2, window_bounds = array<i64: 2, 8, 32>}, {pipeline_mode = #tpu.pipeline_mode<synchronous>, transform_indices = @transform_3, window_bounds = array<i64: 2, 8>}, {pipeline_mode = #tpu.pipeline_mode<synchronous>, transform_indices = @transform_4, window_bounds = array<i64: 1, 2>}, {pipeline_mode = #tpu.pipeline_mode<synchronous>, transform_indices = @transform_5, window_bounds = array<i64: 128, 128>}, {pipeline_mode = #tpu.pipeline_mode<synchronous>, transform_indices = @transform_6, window_bounds = array<i64: 1, 128>}, {pipeline_mode = #tpu.pipeline_mode<synchronous>, transform_indices = @transform_7, window_bounds = array<i64: 64, 128>}, {pipeline_mode = #tpu.pipeline_mode<synchronous>, transform_indices = @transform_8, window_bounds = array<i64: 1, 128>}, {pipeline_mode = #tpu.pipeline_mode<synchronous>, transform_indices = @transform_9, window_bounds = array<i64: 64, 32>}, {pipeline_mode = #tpu.pipeline_mode<synchronous>, transform_indices = @transform_10, window_bounds = array<i64: 1, 32>}, {pipeline_mode = #tpu.pipeline_mode<synchronous>, transform_indices = @transform_11, window_bounds = array<i64: 6, 2, 32>}, {pipeline_mode = #tpu.pipeline_mode<synchronous>, transform_indices = @transform_12, window_bounds = array<i64: 6, 1, 8>}]} {
    %c0 = arith.constant 0 : index
    %c0_0 = arith.constant 0 : index
    %0 = vector.load %arg4[%c0, %c0_0] : memref<2x8xf32, #tpu.memory_space<vmem>>, vector<2x8xf32>
    %cst = arith.constant 5.000000e-01 : f32
    %1 = vector.broadcast %cst : f32 to vector<2x8xf32>
    %2 = arith.cmpf ogt, %0, %1 : vector<2x8xf32>
    %cst_1 = arith.constant -1.000000e+30 : f32
    %cst_2 = arith.constant 0.000000e+00 : f32
    %3 = vector.broadcast %cst_1 : f32 to vector<2x8xf32>
    %4 = vector.broadcast %cst_2 : f32 to vector<2x8xf32>
    %5 = arith.select %2, %3, %4 : vector<2x8xi1>, vector<2x8xf32>
    %c0_3 = arith.constant 0 : index
    %c0_4 = arith.constant 0 : index
    %6 = vector.load %arg5[%c0_3, %c0_4] : memref<1x2xf32, #tpu.memory_space<vmem>>, vector<1x2xf32>
    %cst_5 = arith.constant 0.000000e+00 : f32
    %7 = vector.broadcast %cst_5 : f32 to vector<2x32xf32>
    %cst_6 = arith.constant 0.000000e+00 : f32
    %8 = vector.broadcast %cst_6 : f32 to vector<2x32xf32>
    %cst_7 = arith.constant 0.000000e+00 : f32
    %9 = vector.broadcast %cst_7 : f32 to vector<2x32xf32>
    %cst_8 = arith.constant 0.000000e+00 : f32
    %10 = vector.broadcast %cst_8 : f32 to vector<2x32xf32>
    %c0_9 = arith.constant 0 : index
    %c0_10 = arith.constant 0 : index
    %c0_11 = arith.constant 0 : index
    %11 = vector.load %arg3[%c0_9, %c0_10, %c0_11] : memref<2x8x32xf32, #tpu.memory_space<vmem>>, vector<2x1x32xf32>
    %12 = vector.shape_cast %11 : vector<2x1x32xf32> to vector<2x32xf32>
    %cst_12 = arith.constant 0.176776692 : f32
    %c0_i32 = arith.constant 0 : i32
    %13 = arith.index_cast %c0_i32 : i32 to index
    %c0_13 = arith.constant 0 : index
    %c0_14 = arith.constant 0 : index
    %14 = vector.load %arg1[%13, %c0_13, %c0_14] : memref<6x2x64xf32, #tpu.memory_space<vmem>>, vector<1x2x64xf32>
    %15 = vector.shape_cast %14 : vector<1x2x64xf32> to vector<2x64xf32>
    %16 = tpu.concatenate %15, %12, %7 in 1 : vector<2x64xf32>, vector<2x32xf32>, vector<2x32xf32> -> vector<2x128xf32>
    %c0_15 = arith.constant 0 : index
    %c0_16 = arith.constant 0 : index
    %17 = vector.load %arg6[%c0_15, %c0_16] : memref<128x128xf32, #tpu.memory_space<vmem>>, vector<128x128xf32>
    %cst_17 = arith.constant dense<0.000000e+00> : vector<2x128xf32>
    %18 = tpu.matmul %16, %17, %cst_17 {dimension_numbers = #tpu.dot_dimension_numbers<[1], [0], [0], [1], [0, 0, 1, 1], [], []>} : vector<2x128xf32>, vector<128x128xf32>, vector<2x128xf32> -> vector<2x128xf32>
    %c0_18 = arith.constant 0 : index
    %c0_19 = arith.constant 0 : index
    %19 = vector.load %arg7[%c0_18, %c0_19] : memref<1x128xf32, #tpu.memory_space<vmem>>, vector<1x128xf32>
    %20 = vector.broadcast %19 : vector<1x128xf32> to vector<2x128xf32>
    %21 = arith.addf %18, %20 : vector<2x128xf32>
    %22 = vector.extract_strided_slice %21 {offsets = [0, 0], sizes = [2, 32], strides = [1, 1]} : vector<2x128xf32> to vector<2x32xf32>
    %23 = arith.negf %22 : vector<2x32xf32>
    %24 = math.exp %23 : vector<2x32xf32>
    %cst_20 = arith.constant 1.000000e+00 : f32
    %25 = vector.broadcast %cst_20 : f32 to vector<2x32xf32>
    %26 = arith.addf %25, %24 : vector<2x32xf32>
    %27 = arith.divf %25, %26 : vector<2x32xf32>
    %28 = vector.extract_strided_slice %21 {offsets = [0, 32], sizes = [2, 32], strides = [1, 1]} : vector<2x128xf32> to vector<2x32xf32>
    %29 = arith.negf %28 : vector<2x32xf32>
    %30 = math.exp %29 : vector<2x32xf32>
    %cst_21 = arith.constant 1.000000e+00 : f32
    %31 = vector.broadcast %cst_21 : f32 to vector<2x32xf32>
    %32 = arith.addf %31, %30 : vector<2x32xf32>
    %33 = arith.divf %31, %32 : vector<2x32xf32>
    %34 = vector.extract_strided_slice %21 {offsets = [0, 64], sizes = [2, 32], strides = [1, 1]} : vector<2x128xf32> to vector<2x32xf32>
    %35 = math.tanh %34 : vector<2x32xf32>
    %36 = vector.extract_strided_slice %21 {offsets = [0, 96], sizes = [2, 32], strides = [1, 1]} : vector<2x128xf32> to vector<2x32xf32>
    %37 = arith.negf %36 : vector<2x32xf32>
    %38 = math.exp %37 : vector<2x32xf32>
    %cst_22 = arith.constant 1.000000e+00 : f32
    %39 = vector.broadcast %cst_22 : f32 to vector<2x32xf32>
    %40 = arith.addf %39, %38 : vector<2x32xf32>
    %41 = arith.divf %39, %40 : vector<2x32xf32>
    %42 = arith.mulf %33, %8 : vector<2x32xf32>
    %43 = arith.mulf %27, %35 : vector<2x32xf32>
    %44 = arith.addf %42, %43 : vector<2x32xf32>
    %45 = math.tanh %44 : vector<2x32xf32>
    %46 = arith.mulf %41, %45 : vector<2x32xf32>
    %47 = tpu.concatenate %46, %9 in 1 : vector<2x32xf32>, vector<2x32xf32> -> vector<2x64xf32>
    %c0_23 = arith.constant 0 : index
    %c0_24 = arith.constant 0 : index
    %48 = vector.load %arg8[%c0_23, %c0_24] : memref<64x128xf32, #tpu.memory_space<vmem>>, vector<64x128xf32>
    %cst_25 = arith.constant dense<0.000000e+00> : vector<2x128xf32>
    %49 = tpu.matmul %47, %48, %cst_25 {dimension_numbers = #tpu.dot_dimension_numbers<[1], [0], [0], [1], [0, 0, 1, 1], [], []>} : vector<2x64xf32>, vector<64x128xf32>, vector<2x128xf32> -> vector<2x128xf32>
    %c0_26 = arith.constant 0 : index
    %c0_27 = arith.constant 0 : index
    %50 = vector.load %arg9[%c0_26, %c0_27] : memref<1x128xf32, #tpu.memory_space<vmem>>, vector<1x128xf32>
    %51 = vector.broadcast %50 : vector<1x128xf32> to vector<2x128xf32>
    %52 = arith.addf %49, %51 : vector<2x128xf32>
    %53 = vector.extract_strided_slice %52 {offsets = [0, 0], sizes = [2, 32], strides = [1, 1]} : vector<2x128xf32> to vector<2x32xf32>
    %54 = arith.negf %53 : vector<2x32xf32>
    %55 = math.exp %54 : vector<2x32xf32>
    %cst_28 = arith.constant 1.000000e+00 : f32
    %56 = vector.broadcast %cst_28 : f32 to vector<2x32xf32>
    %57 = arith.addf %56, %55 : vector<2x32xf32>
    %58 = arith.divf %56, %57 : vector<2x32xf32>
    %59 = vector.extract_strided_slice %52 {offsets = [0, 32], sizes = [2, 32], strides = [1, 1]} : vector<2x128xf32> to vector<2x32xf32>
    %60 = arith.negf %59 : vector<2x32xf32>
    %61 = math.exp %60 : vector<2x32xf32>
    %cst_29 = arith.constant 1.000000e+00 : f32
    %62 = vector.broadcast %cst_29 : f32 to vector<2x32xf32>
    %63 = arith.addf %62, %61 : vector<2x32xf32>
    %64 = arith.divf %62, %63 : vector<2x32xf32>
    %65 = vector.extract_strided_slice %52 {offsets = [0, 64], sizes = [2, 32], strides = [1, 1]} : vector<2x128xf32> to vector<2x32xf32>
    %66 = math.tanh %65 : vector<2x32xf32>
    %67 = vector.extract_strided_slice %52 {offsets = [0, 96], sizes = [2, 32], strides = [1, 1]} : vector<2x128xf32> to vector<2x32xf32>
    %68 = arith.negf %67 : vector<2x32xf32>
    %69 = math.exp %68 : vector<2x32xf32>
    %cst_30 = arith.constant 1.000000e+00 : f32
    %70 = vector.broadcast %cst_30 : f32 to vector<2x32xf32>
    %71 = arith.addf %70, %69 : vector<2x32xf32>
    %72 = arith.divf %70, %71 : vector<2x32xf32>
    %73 = arith.mulf %64, %10 : vector<2x32xf32>
    %74 = arith.mulf %58, %66 : vector<2x32xf32>
    %75 = arith.addf %73, %74 : vector<2x32xf32>
    %76 = math.tanh %75 : vector<2x32xf32>
    %77 = arith.mulf %72, %76 : vector<2x32xf32>
    %78 = vector.broadcast %cst_12 : f32 to vector<2x32xf32>
    %79 = arith.mulf %77, %78 : vector<2x32xf32>
    %c0_31 = arith.constant 0 : index
    %c0_32 = arith.constant 0 : index
    %c0_33 = arith.constant 0 : index
    %80 = vector.load %arg2[%c0_31, %c0_32, %c0_33] : memref<2x8x32xf32, #tpu.memory_space<vmem>>, vector<2x8x32xf32>
    %81 = vector.shape_cast %79 : vector<2x32xf32> to vector<2x1x32xf32>
    %82 = vector.broadcast %81 : vector<2x1x32xf32> to vector<2x8x32xf32>
    %83 = arith.mulf %80, %82 : vector<2x8x32xf32>
    %cst_34 = arith.constant dense<0.000000e+00> : vector<2x8xf32>
    %84 = vector.multi_reduction <add>, %83, %cst_34 [2] : vector<2x8x32xf32> to vector<2x8xf32>
    %85 = arith.addf %84, %5 : vector<2x8xf32>
    %cst_35 = arith.constant dense<0xFF800000> : vector<2xf32>
    %86 = vector.multi_reduction <maximumf>, %85, %cst_35 [1] : vector<2x8xf32> to vector<2xf32>
    %87 = vector.shape_cast %86 : vector<2xf32> to vector<2x1xf32>
    %88 = vector.broadcast %87 : vector<2x1xf32> to vector<2x8xf32>
    %89 = arith.subf %85, %88 : vector<2x8xf32>
    %90 = math.exp %89 : vector<2x8xf32>
    %cst_36 = arith.constant dense<0.000000e+00> : vector<2xf32>
    %91 = vector.multi_reduction <add>, %90, %cst_36 [1] : vector<2x8xf32> to vector<2xf32>
    %92 = vector.shape_cast %91 : vector<2xf32> to vector<2x1xf32>
    %93 = tpu.reciprocal %92 {approx = true} : vector<2x1xf32> -> vector<2x1xf32>
    %94 = vector.broadcast %93 : vector<2x1xf32> to vector<2x8xf32>
    %95 = arith.mulf %90, %94 : vector<2x8xf32>
    %96 = vector.shape_cast %95 : vector<2x8xf32> to vector<2x8x1xf32>
    %c0_37 = arith.constant 0 : index
    %c0_38 = arith.constant 0 : index
    %c0_39 = arith.constant 0 : index
    %97 = vector.load %arg3[%c0_37, %c0_38, %c0_39] : memref<2x8x32xf32, #tpu.memory_space<vmem>>, vector<2x8x32xf32>
    %98 = vector.broadcast %96 : vector<2x8x1xf32> to vector<2x8x32xf32>
    %99 = arith.mulf %98, %97 : vector<2x8x32xf32>
    %cst_40 = arith.constant dense<0.000000e+00> : vector<2x32xf32>
    %100 = vector.multi_reduction <add>, %99, %cst_40 [1] : vector<2x8x32xf32> to vector<2x32xf32>
    %101 = tpu.concatenate %77, %100 in 1 : vector<2x32xf32>, vector<2x32xf32> -> vector<2x64xf32>
    %c0_41 = arith.constant 0 : index
    %c0_42 = arith.constant 0 : index
    %102 = vector.load %arg10[%c0_41, %c0_42] : memref<64x32xf32, #tpu.memory_space<vmem>>, vector<64x32xf32>
    %cst_43 = arith.constant dense<0.000000e+00> : vector<2x32xf32>
    %103 = tpu.matmul %101, %102, %cst_43 {dimension_numbers = #tpu.dot_dimension_numbers<[1], [0], [0], [1], [0, 0, 1, 1], [], []>} : vector<2x64xf32>, vector<64x32xf32>, vector<2x32xf32> -> vector<2x32xf32>
    %c0_44 = arith.constant 0 : index
    %c0_45 = arith.constant 0 : index
    %104 = vector.load %arg11[%c0_44, %c0_45] : memref<1x32xf32, #tpu.memory_space<vmem>>, vector<1x32xf32>
    %105 = vector.broadcast %104 : vector<1x32xf32> to vector<2x32xf32>
    %106 = arith.addf %103, %105 : vector<2x32xf32>
    %107 = arith.index_cast %c0_i32 : i32 to index
    %c0_46 = arith.constant 0 : index
    %c0_47 = arith.constant 0 : index
    %108 = vector.load %arg12[%107, %c0_46, %c0_47] : memref<6x2x32xf32, #tpu.memory_space<vmem>>, vector<1x2x32xf32>
    %109 = vector.shape_cast %108 : vector<1x2x32xf32> to vector<2x32xf32>
    %110 = vector.shape_cast %106 : vector<2x32xf32> to vector<1x2x32xf32>
    tpu.vector_store %arg12[%107, %c0_46, %c0_47], %110 {strides = array<i32>} : memref<6x2x32xf32, #tpu.memory_space<vmem>>, vector<1x2x32xf32>,
    %cst_48 = arith.constant dense<0.000000e+00> : vector<1x8xf32>
    %111 = tpu.matmul %6, %95, %cst_48 {dimension_numbers = #tpu.dot_dimension_numbers<[1], [0], [0], [1], [0, 0, 1, 1], [], []>} : vector<1x2xf32>, vector<2x8xf32>, vector<1x8xf32> -> vector<1x8xf32>
    %112 = arith.index_cast %c0_i32 : i32 to index
    %c0_49 = arith.constant 0 : index
    %c0_50 = arith.constant 0 : index
    %113 = vector.load %arg13[%112, %c0_49, %c0_50] : memref<6x1x8xf32, #tpu.memory_space<vmem>>, vector<1x1x8xf32>
    %114 = vector.shape_cast %113 : vector<1x1x8xf32> to vector<1x8xf32>
    %115 = vector.shape_cast %111 : vector<1x8xf32> to vector<1x1x8xf32>
    tpu.vector_store %arg13[%112, %c0_49, %c0_50], %115 {strides = array<i32>} : memref<6x1x8xf32, #tpu.memory_space<vmem>>, vector<1x1x8xf32>,
    %c1_i32 = arith.constant 1 : i32
    %116 = arith.index_cast %c1_i32 : i32 to index
    %c0_51 = arith.constant 0 : index
    %c0_52 = arith.constant 0 : index
    %117 = vector.load %arg1[%116, %c0_51, %c0_52] : memref<6x2x64xf32, #tpu.memory_space<vmem>>, vector<1x2x64xf32>
    %118 = vector.shape_cast %117 : vector<1x2x64xf32> to vector<2x64xf32>
    %119 = tpu.concatenate %118, %100, %46 in 1 : vector<2x64xf32>, vector<2x32xf32>, vector<2x32xf32> -> vector<2x128xf32>
    %c0_53 = arith.constant 0 : index
    %c0_54 = arith.constant 0 : index
    %120 = vector.load %arg6[%c0_53, %c0_54] : memref<128x128xf32, #tpu.memory_space<vmem>>, vector<128x128xf32>
    %cst_55 = arith.constant dense<0.000000e+00> : vector<2x128xf32>
    %121 = tpu.matmul %119, %120, %cst_55 {dimension_numbers = #tpu.dot_dimension_numbers<[1], [0], [0], [1], [0, 0, 1, 1], [], []>} : vector<2x128xf32>, vector<128x128xf32>, vector<2x128xf32> -> vector<2x128xf32>
    %c0_56 = arith.constant 0 : index
    %c0_57 = arith.constant 0 : index
    %122 = vector.load %arg7[%c0_56, %c0_57] : memref<1x128xf32, #tpu.memory_space<vmem>>, vector<1x128xf32>
    %123 = vector.broadcast %122 : vector<1x128xf32> to vector<2x128xf32>
    %124 = arith.addf %121, %123 : vector<2x128xf32>
    %125 = vector.extract_strided_slice %124 {offsets = [0, 0], sizes = [2, 32], strides = [1, 1]} : vector<2x128xf32> to vector<2x32xf32>
    %126 = arith.negf %125 : vector<2x32xf32>
    %127 = math.exp %126 : vector<2x32xf32>
    %cst_58 = arith.constant 1.000000e+00 : f32
    %128 = vector.broadcast %cst_58 : f32 to vector<2x32xf32>
    %129 = arith.addf %128, %127 : vector<2x32xf32>
    %130 = arith.divf %128, %129 : vector<2x32xf32>
    %131 = vector.extract_strided_slice %124 {offsets = [0, 32], sizes = [2, 32], strides = [1, 1]} : vector<2x128xf32> to vector<2x32xf32>
    %132 = arith.negf %131 : vector<2x32xf32>
    %133 = math.exp %132 : vector<2x32xf32>
    %cst_59 = arith.constant 1.000000e+00 : f32
    %134 = vector.broadcast %cst_59 : f32 to vector<2x32xf32>
    %135 = arith.addf %134, %133 : vector<2x32xf32>
    %136 = arith.divf %134, %135 : vector<2x32xf32>
    %137 = vector.extract_strided_slice %124 {offsets = [0, 64], sizes = [2, 32], strides = [1, 1]} : vector<2x128xf32> to vector<2x32xf32>
    %138 = math.tanh %137 : vector<2x32xf32>
    %139 = vector.extract_strided_slice %124 {offsets = [0, 96], sizes = [2, 32], strides = [1, 1]} : vector<2x128xf32> to vector<2x32xf32>
    %140 = arith.negf %139 : vector<2x32xf32>
    %141 = math.exp %140 : vector<2x32xf32>
    %cst_60 = arith.constant 1.000000e+00 : f32
    %142 = vector.broadcast %cst_60 : f32 to vector<2x32xf32>
    %143 = arith.addf %142, %141 : vector<2x32xf32>
    %144 = arith.divf %142, %143 : vector<2x32xf32>
    %145 = arith.mulf %136, %44 : vector<2x32xf32>
    %146 = arith.mulf %130, %138 : vector<2x32xf32>
    %147 = arith.addf %145, %146 : vector<2x32xf32>
    %148 = math.tanh %147 : vector<2x32xf32>
    %149 = arith.mulf %144, %148 : vector<2x32xf32>
    %150 = tpu.concatenate %149, %77 in 1 : vector<2x32xf32>, vector<2x32xf32> -> vector<2x64xf32>
    %c0_61 = arith.constant 0 : index
    %c0_62 = arith.constant 0 : index
    %151 = vector.load %arg8[%c0_61, %c0_62] : memref<64x128xf32, #tpu.memory_space<vmem>>, vector<64x128xf32>
    %cst_63 = arith.constant dense<0.000000e+00> : vector<2x128xf32>
    %152 = tpu.matmul %150, %151, %cst_63 {dimension_numbers = #tpu.dot_dimension_numbers<[1], [0], [0], [1], [0, 0, 1, 1], [], []>} : vector<2x64xf32>, vector<64x128xf32>, vector<2x128xf32> -> vector<2x128xf32>
    %c0_64 = arith.constant 0 : index
    %c0_65 = arith.constant 0 : index
    %153 = vector.load %arg9[%c0_64, %c0_65] : memref<1x128xf32, #tpu.memory_space<vmem>>, vector<1x128xf32>
    %154 = vector.broadcast %153 : vector<1x128xf32> to vector<2x128xf32>
    %155 = arith.addf %152, %154 : vector<2x128xf32>
    %156 = vector.extract_strided_slice %155 {offsets = [0, 0], sizes = [2, 32], strides = [1, 1]} : vector<2x128xf32> to vector<2x32xf32>
    %157 = arith.negf %156 : vector<2x32xf32>
    %158 = math.exp %157 : vector<2x32xf32>
    %cst_66 = arith.constant 1.000000e+00 : f32
    %159 = vector.broadcast %cst_66 : f32 to vector<2x32xf32>
    %160 = arith.addf %159, %158 : vector<2x32xf32>
    %161 = arith.divf %159, %160 : vector<2x32xf32>
    %162 = vector.extract_strided_slice %155 {offsets = [0, 32], sizes = [2, 32], strides = [1, 1]} : vector<2x128xf32> to vector<2x32xf32>
    %163 = arith.negf %162 : vector<2x32xf32>
    %164 = math.exp %163 : vector<2x32xf32>
    %cst_67 = arith.constant 1.000000e+00 : f32
    %165 = vector.broadcast %cst_67 : f32 to vector<2x32xf32>
    %166 = arith.addf %165, %164 : vector<2x32xf32>
    %167 = arith.divf %165, %166 : vector<2x32xf32>
    %168 = vector.extract_strided_slice %155 {offsets = [0, 64], sizes = [2, 32], strides = [1, 1]} : vector<2x128xf32> to vector<2x32xf32>
    %169 = math.tanh %168 : vector<2x32xf32>
    %170 = vector.extract_strided_slice %155 {offsets = [0, 96], sizes = [2, 32], strides = [1, 1]} : vector<2x128xf32> to vector<2x32xf32>
    %171 = arith.negf %170 : vector<2x32xf32>
    %172 = math.exp %171 : vector<2x32xf32>
    %cst_68 = arith.constant 1.000000e+00 : f32
    %173 = vector.broadcast %cst_68 : f32 to vector<2x32xf32>
    %174 = arith.addf %173, %172 : vector<2x32xf32>
    %175 = arith.divf %173, %174 : vector<2x32xf32>
    %176 = arith.mulf %167, %75 : vector<2x32xf32>
    %177 = arith.mulf %161, %169 : vector<2x32xf32>
    %178 = arith.addf %176, %177 : vector<2x32xf32>
    %179 = math.tanh %178 : vector<2x32xf32>
    %180 = arith.mulf %175, %179 : vector<2x32xf32>
    %181 = vector.broadcast %cst_12 : f32 to vector<2x32xf32>
    %182 = arith.mulf %180, %181 : vector<2x32xf32>
    %c0_69 = arith.constant 0 : index
    %c0_70 = arith.constant 0 : index
    %c0_71 = arith.constant 0 : index
    %183 = vector.load %arg2[%c0_69, %c0_70, %c0_71] : memref<2x8x32xf32, #tpu.memory_space<vmem>>, vector<2x8x32xf32>
    %184 = vector.shape_cast %182 : vector<2x32xf32> to vector<2x1x32xf32>
    %185 = vector.broadcast %184 : vector<2x1x32xf32> to vector<2x8x32xf32>
    %186 = arith.mulf %183, %185 : vector<2x8x32xf32>
    %cst_72 = arith.constant dense<0.000000e+00> : vector<2x8xf32>
    %187 = vector.multi_reduction <add>, %186, %cst_72 [2] : vector<2x8x32xf32> to vector<2x8xf32>
    %188 = arith.addf %187, %5 : vector<2x8xf32>
    %cst_73 = arith.constant dense<0xFF800000> : vector<2xf32>
    %189 = vector.multi_reduction <maximumf>, %188, %cst_73 [1] : vector<2x8xf32> to vector<2xf32>
    %190 = vector.shape_cast %189 : vector<2xf32> to vector<2x1xf32>
    %191 = vector.broadcast %190 : vector<2x1xf32> to vector<2x8xf32>
    %192 = arith.subf %188, %191 : vector<2x8xf32>
    %193 = math.exp %192 : vector<2x8xf32>
    %cst_74 = arith.constant dense<0.000000e+00> : vector<2xf32>
    %194 = vector.multi_reduction <add>, %193, %cst_74 [1] : vector<2x8xf32> to vector<2xf32>
    %195 = vector.shape_cast %194 : vector<2xf32> to vector<2x1xf32>
    %196 = tpu.reciprocal %195 {approx = true} : vector<2x1xf32> -> vector<2x1xf32>
    %197 = vector.broadcast %196 : vector<2x1xf32> to vector<2x8xf32>
    %198 = arith.mulf %193, %197 : vector<2x8xf32>
    %199 = vector.shape_cast %198 : vector<2x8xf32> to vector<2x8x1xf32>
    %c0_75 = arith.constant 0 : index
    %c0_76 = arith.constant 0 : index
    %c0_77 = arith.constant 0 : index
    %200 = vector.load %arg3[%c0_75, %c0_76, %c0_77] : memref<2x8x32xf32, #tpu.memory_space<vmem>>, vector<2x8x32xf32>
    %201 = vector.broadcast %199 : vector<2x8x1xf32> to vector<2x8x32xf32>
    %202 = arith.mulf %201, %200 : vector<2x8x32xf32>
    %cst_78 = arith.constant dense<0.000000e+00> : vector<2x32xf32>
    %203 = vector.multi_reduction <add>, %202, %cst_78 [1] : vector<2x8x32xf32> to vector<2x32xf32>
    %204 = tpu.concatenate %180, %203 in 1 : vector<2x32xf32>, vector<2x32xf32> -> vector<2x64xf32>
    %c0_79 = arith.constant 0 : index
    %c0_80 = arith.constant 0 : index
    %205 = vector.load %arg10[%c0_79, %c0_80] : memref<64x32xf32, #tpu.memory_space<vmem>>, vector<64x32xf32>
    %cst_81 = arith.constant dense<0.000000e+00> : vector<2x32xf32>
    %206 = tpu.matmul %204, %205, %cst_81 {dimension_numbers = #tpu.dot_dimension_numbers<[1], [0], [0], [1], [0, 0, 1, 1], [], []>} : vector<2x64xf32>, vector<64x32xf32>, vector<2x32xf32> -> vector<2x32xf32>
    %c0_82 = arith.constant 0 : index
    %c0_83 = arith.constant 0 : index
    %207 = vector.load %arg11[%c0_82, %c0_83] : memref<1x32xf32, #tpu.memory_space<vmem>>, vector<1x32xf32>
    %208 = vector.broadcast %207 : vector<1x32xf32> to vector<2x32xf32>
    %209 = arith.addf %206, %208 : vector<2x32xf32>
    %210 = arith.index_cast %c1_i32 : i32 to index
    %c0_84 = arith.constant 0 : index
    %c0_85 = arith.constant 0 : index
    %211 = vector.load %arg12[%210, %c0_84, %c0_85] : memref<6x2x32xf32, #tpu.memory_space<vmem>>, vector<1x2x32xf32>
    %212 = vector.shape_cast %211 : vector<1x2x32xf32> to vector<2x32xf32>
    %213 = vector.shape_cast %209 : vector<2x32xf32> to vector<1x2x32xf32>
    tpu.vector_store %arg12[%210, %c0_84, %c0_85], %213 {strides = array<i32>} : memref<6x2x32xf32, #tpu.memory_space<vmem>>, vector<1x2x32xf32>,
    %cst_86 = arith.constant dense<0.000000e+00> : vector<1x8xf32>
    %214 = tpu.matmul %6, %198, %cst_86 {dimension_numbers = #tpu.dot_dimension_numbers<[1], [0], [0], [1], [0, 0, 1, 1], [], []>} : vector<1x2xf32>, vector<2x8xf32>, vector<1x8xf32> -> vector<1x8xf32>
    %215 = arith.index_cast %c1_i32 : i32 to index
    %c0_87 = arith.constant 0 : index
    %c0_88 = arith.constant 0 : index
    %216 = vector.load %arg13[%215, %c0_87, %c0_88] : memref<6x1x8xf32, #tpu.memory_space<vmem>>, vector<1x1x8xf32>
    %217 = vector.shape_cast %216 : vector<1x1x8xf32> to vector<1x8xf32>
    %218 = vector.shape_cast %214 : vector<1x8xf32> to vector<1x1x8xf32>
    tpu.vector_store %arg13[%215, %c0_87, %c0_88], %218 {strides = array<i32>} : memref<6x1x8xf32, #tpu.memory_space<vmem>>, vector<1x1x8xf32>,
    %c2_i32 = arith.constant 2 : i32
    %219 = arith.index_cast %c2_i32 : i32 to index
    %c0_89 = arith.constant 0 : index
    %c0_90 = arith.constant 0 : index
    %220 = vector.load %arg1[%219, %c0_89, %c0_90] : memref<6x2x64xf32, #tpu.memory_space<vmem>>, vector<1x2x64xf32>
    %221 = vector.shape_cast %220 : vector<1x2x64xf32> to vector<2x64xf32>
    %222 = tpu.concatenate %221, %203, %149 in 1 : vector<2x64xf32>, vector<2x32xf32>, vector<2x32xf32> -> vector<2x128xf32>
    %c0_91 = arith.constant 0 : index
    %c0_92 = arith.constant 0 : index
    %223 = vector.load %arg6[%c0_91, %c0_92] : memref<128x128xf32, #tpu.memory_space<vmem>>, vector<128x128xf32>
    %cst_93 = arith.constant dense<0.000000e+00> : vector<2x128xf32>
    %224 = tpu.matmul %222, %223, %cst_93 {dimension_numbers = #tpu.dot_dimension_numbers<[1], [0], [0], [1], [0, 0, 1, 1], [], []>} : vector<2x128xf32>, vector<128x128xf32>, vector<2x128xf32> -> vector<2x128xf32>
    %c0_94 = arith.constant 0 : index
    %c0_95 = arith.constant 0 : index
    %225 = vector.load %arg7[%c0_94, %c0_95] : memref<1x128xf32, #tpu.memory_space<vmem>>, vector<1x128xf32>
    %226 = vector.broadcast %225 : vector<1x128xf32> to vector<2x128xf32>
    %227 = arith.addf %224, %226 : vector<2x128xf32>
    %228 = vector.extract_strided_slice %227 {offsets = [0, 0], sizes = [2, 32], strides = [1, 1]} : vector<2x128xf32> to vector<2x32xf32>
    %229 = arith.negf %228 : vector<2x32xf32>
    %230 = math.exp %229 : vector<2x32xf32>
    %cst_96 = arith.constant 1.000000e+00 : f32
    %231 = vector.broadcast %cst_96 : f32 to vector<2x32xf32>
    %232 = arith.addf %231, %230 : vector<2x32xf32>
    %233 = arith.divf %231, %232 : vector<2x32xf32>
    %234 = vector.extract_strided_slice %227 {offsets = [0, 32], sizes = [2, 32], strides = [1, 1]} : vector<2x128xf32> to vector<2x32xf32>
    %235 = arith.negf %234 : vector<2x32xf32>
    %236 = math.exp %235 : vector<2x32xf32>
    %cst_97 = arith.constant 1.000000e+00 : f32
    %237 = vector.broadcast %cst_97 : f32 to vector<2x32xf32>
    %238 = arith.addf %237, %236 : vector<2x32xf32>
    %239 = arith.divf %237, %238 : vector<2x32xf32>
    %240 = vector.extract_strided_slice %227 {offsets = [0, 64], sizes = [2, 32], strides = [1, 1]} : vector<2x128xf32> to vector<2x32xf32>
    %241 = math.tanh %240 : vector<2x32xf32>
    %242 = vector.extract_strided_slice %227 {offsets = [0, 96], sizes = [2, 32], strides = [1, 1]} : vector<2x128xf32> to vector<2x32xf32>
    %243 = arith.negf %242 : vector<2x32xf32>
    %244 = math.exp %243 : vector<2x32xf32>
    %cst_98 = arith.constant 1.000000e+00 : f32
    %245 = vector.broadcast %cst_98 : f32 to vector<2x32xf32>
    %246 = arith.addf %245, %244 : vector<2x32xf32>
    %247 = arith.divf %245, %246 : vector<2x32xf32>
    %248 = arith.mulf %239, %147 : vector<2x32xf32>
    %249 = arith.mulf %233, %241 : vector<2x32xf32>
    %250 = arith.addf %248, %249 : vector<2x32xf32>
    %251 = math.tanh %250 : vector<2x32xf32>
    %252 = arith.mulf %247, %251 : vector<2x32xf32>
    %253 = tpu.concatenate %252, %180 in 1 : vector<2x32xf32>, vector<2x32xf32> -> vector<2x64xf32>
    %c0_99 = arith.constant 0 : index
    %c0_100 = arith.constant 0 : index
    %254 = vector.load %arg8[%c0_99, %c0_100] : memref<64x128xf32, #tpu.memory_space<vmem>>, vector<64x128xf32>
    %cst_101 = arith.constant dense<0.000000e+00> : vector<2x128xf32>
    %255 = tpu.matmul %253, %254, %cst_101 {dimension_numbers = #tpu.dot_dimension_numbers<[1], [0], [0], [1], [0, 0, 1, 1], [], []>} : vector<2x64xf32>, vector<64x128xf32>, vector<2x128xf32> -> vector<2x128xf32>
    %c0_102 = arith.constant 0 : index
    %c0_103 = arith.constant 0 : index
    %256 = vector.load %arg9[%c0_102, %c0_103] : memref<1x128xf32, #tpu.memory_space<vmem>>, vector<1x128xf32>
    %257 = vector.broadcast %256 : vector<1x128xf32> to vector<2x128xf32>
    %258 = arith.addf %255, %257 : vector<2x128xf32>
    %259 = vector.extract_strided_slice %258 {offsets = [0, 0], sizes = [2, 32], strides = [1, 1]} : vector<2x128xf32> to vector<2x32xf32>
    %260 = arith.negf %259 : vector<2x32xf32>
    %261 = math.exp %260 : vector<2x32xf32>
    %cst_104 = arith.constant 1.000000e+00 : f32
    %262 = vector.broadcast %cst_104 : f32 to vector<2x32xf32>
    %263 = arith.addf %262, %261 : vector<2x32xf32>
    %264 = arith.divf %262, %263 : vector<2x32xf32>
    %265 = vector.extract_strided_slice %258 {offsets = [0, 32], sizes = [2, 32], strides = [1, 1]} : vector<2x128xf32> to vector<2x32xf32>
    %266 = arith.negf %265 : vector<2x32xf32>
    %267 = math.exp %266 : vector<2x32xf32>
    %cst_105 = arith.constant 1.000000e+00 : f32
    %268 = vector.broadcast %cst_105 : f32 to vector<2x32xf32>
    %269 = arith.addf %268, %267 : vector<2x32xf32>
    %270 = arith.divf %268, %269 : vector<2x32xf32>
    %271 = vector.extract_strided_slice %258 {offsets = [0, 64], sizes = [2, 32], strides = [1, 1]} : vector<2x128xf32> to vector<2x32xf32>
    %272 = math.tanh %271 : vector<2x32xf32>
    %273 = vector.extract_strided_slice %258 {offsets = [0, 96], sizes = [2, 32], strides = [1, 1]} : vector<2x128xf32> to vector<2x32xf32>
    %274 = arith.negf %273 : vector<2x32xf32>
    %275 = math.exp %274 : vector<2x32xf32>
    %cst_106 = arith.constant 1.000000e+00 : f32
    %276 = vector.broadcast %cst_106 : f32 to vector<2x32xf32>
    %277 = arith.addf %276, %275 : vector<2x32xf32>
    %278 = arith.divf %276, %277 : vector<2x32xf32>
    %279 = arith.mulf %270, %178 : vector<2x32xf32>
    %280 = arith.mulf %264, %272 : vector<2x32xf32>
    %281 = arith.addf %279, %280 : vector<2x32xf32>
    %282 = math.tanh %281 : vector<2x32xf32>
    %283 = arith.mulf %278, %282 : vector<2x32xf32>
    %284 = vector.broadcast %cst_12 : f32 to vector<2x32xf32>
    %285 = arith.mulf %283, %284 : vector<2x32xf32>
    %c0_107 = arith.constant 0 : index
    %c0_108 = arith.constant 0 : index
    %c0_109 = arith.constant 0 : index
    %286 = vector.load %arg2[%c0_107, %c0_108, %c0_109] : memref<2x8x32xf32, #tpu.memory_space<vmem>>, vector<2x8x32xf32>
    %287 = vector.shape_cast %285 : vector<2x32xf32> to vector<2x1x32xf32>
    %288 = vector.broadcast %287 : vector<2x1x32xf32> to vector<2x8x32xf32>
    %289 = arith.mulf %286, %288 : vector<2x8x32xf32>
    %cst_110 = arith.constant dense<0.000000e+00> : vector<2x8xf32>
    %290 = vector.multi_reduction <add>, %289, %cst_110 [2] : vector<2x8x32xf32> to vector<2x8xf32>
    %291 = arith.addf %290, %5 : vector<2x8xf32>
    %cst_111 = arith.constant dense<0xFF800000> : vector<2xf32>
    %292 = vector.multi_reduction <maximumf>, %291, %cst_111 [1] : vector<2x8xf32> to vector<2xf32>
    %293 = vector.shape_cast %292 : vector<2xf32> to vector<2x1xf32>
    %294 = vector.broadcast %293 : vector<2x1xf32> to vector<2x8xf32>
    %295 = arith.subf %291, %294 : vector<2x8xf32>
    %296 = math.exp %295 : vector<2x8xf32>
    %cst_112 = arith.constant dense<0.000000e+00> : vector<2xf32>
    %297 = vector.multi_reduction <add>, %296, %cst_112 [1] : vector<2x8xf32> to vector<2xf32>
    %298 = vector.shape_cast %297 : vector<2xf32> to vector<2x1xf32>
    %299 = tpu.reciprocal %298 {approx = true} : vector<2x1xf32> -> vector<2x1xf32>
    %300 = vector.broadcast %299 : vector<2x1xf32> to vector<2x8xf32>
    %301 = arith.mulf %296, %300 : vector<2x8xf32>
    %302 = vector.shape_cast %301 : vector<2x8xf32> to vector<2x8x1xf32>
    %c0_113 = arith.constant 0 : index
    %c0_114 = arith.constant 0 : index
    %c0_115 = arith.constant 0 : index
    %303 = vector.load %arg3[%c0_113, %c0_114, %c0_115] : memref<2x8x32xf32, #tpu.memory_space<vmem>>, vector<2x8x32xf32>
    %304 = vector.broadcast %302 : vector<2x8x1xf32> to vector<2x8x32xf32>
    %305 = arith.mulf %304, %303 : vector<2x8x32xf32>
    %cst_116 = arith.constant dense<0.000000e+00> : vector<2x32xf32>
    %306 = vector.multi_reduction <add>, %305, %cst_116 [1] : vector<2x8x32xf32> to vector<2x32xf32>
    %307 = tpu.concatenate %283, %306 in 1 : vector<2x32xf32>, vector<2x32xf32> -> vector<2x64xf32>
    %c0_117 = arith.constant 0 : index
    %c0_118 = arith.constant 0 : index
    %308 = vector.load %arg10[%c0_117, %c0_118] : memref<64x32xf32, #tpu.memory_space<vmem>>, vector<64x32xf32>
    %cst_119 = arith.constant dense<0.000000e+00> : vector<2x32xf32>
    %309 = tpu.matmul %307, %308, %cst_119 {dimension_numbers = #tpu.dot_dimension_numbers<[1], [0], [0], [1], [0, 0, 1, 1], [], []>} : vector<2x64xf32>, vector<64x32xf32>, vector<2x32xf32> -> vector<2x32xf32>
    %c0_120 = arith.constant 0 : index
    %c0_121 = arith.constant 0 : index
    %310 = vector.load %arg11[%c0_120, %c0_121] : memref<1x32xf32, #tpu.memory_space<vmem>>, vector<1x32xf32>
    %311 = vector.broadcast %310 : vector<1x32xf32> to vector<2x32xf32>
    %312 = arith.addf %309, %311 : vector<2x32xf32>
    %313 = arith.index_cast %c2_i32 : i32 to index
    %c0_122 = arith.constant 0 : index
    %c0_123 = arith.constant 0 : index
    %314 = vector.load %arg12[%313, %c0_122, %c0_123] : memref<6x2x32xf32, #tpu.memory_space<vmem>>, vector<1x2x32xf32>
    %315 = vector.shape_cast %314 : vector<1x2x32xf32> to vector<2x32xf32>
    %316 = vector.shape_cast %312 : vector<2x32xf32> to vector<1x2x32xf32>
    tpu.vector_store %arg12[%313, %c0_122, %c0_123], %316 {strides = array<i32>} : memref<6x2x32xf32, #tpu.memory_space<vmem>>, vector<1x2x32xf32>,
    %cst_124 = arith.constant dense<0.000000e+00> : vector<1x8xf32>
    %317 = tpu.matmul %6, %301, %cst_124 {dimension_numbers = #tpu.dot_dimension_numbers<[1], [0], [0], [1], [0, 0, 1, 1], [], []>} : vector<1x2xf32>, vector<2x8xf32>, vector<1x8xf32> -> vector<1x8xf32>
    %318 = arith.index_cast %c2_i32 : i32 to index
    %c0_125 = arith.constant 0 : index
    %c0_126 = arith.constant 0 : index
    %319 = vector.load %arg13[%318, %c0_125, %c0_126] : memref<6x1x8xf32, #tpu.memory_space<vmem>>, vector<1x1x8xf32>
    %320 = vector.shape_cast %319 : vector<1x1x8xf32> to vector<1x8xf32>
    %321 = vector.shape_cast %317 : vector<1x8xf32> to vector<1x1x8xf32>
    tpu.vector_store %arg13[%318, %c0_125, %c0_126], %321 {strides = array<i32>} : memref<6x1x8xf32, #tpu.memory_space<vmem>>, vector<1x1x8xf32>,
    %c3_i32 = arith.constant 3 : i32
    %322 = arith.index_cast %c3_i32 : i32 to index
    %c0_127 = arith.constant 0 : index
    %c0_128 = arith.constant 0 : index
    %323 = vector.load %arg1[%322, %c0_127, %c0_128] : memref<6x2x64xf32, #tpu.memory_space<vmem>>, vector<1x2x64xf32>
    %324 = vector.shape_cast %323 : vector<1x2x64xf32> to vector<2x64xf32>
    %325 = tpu.concatenate %324, %306, %252 in 1 : vector<2x64xf32>, vector<2x32xf32>, vector<2x32xf32> -> vector<2x128xf32>
    %c0_129 = arith.constant 0 : index
    %c0_130 = arith.constant 0 : index
    %326 = vector.load %arg6[%c0_129, %c0_130] : memref<128x128xf32, #tpu.memory_space<vmem>>, vector<128x128xf32>
    %cst_131 = arith.constant dense<0.000000e+00> : vector<2x128xf32>
    %327 = tpu.matmul %325, %326, %cst_131 {dimension_numbers = #tpu.dot_dimension_numbers<[1], [0], [0], [1], [0, 0, 1, 1], [], []>} : vector<2x128xf32>, vector<128x128xf32>, vector<2x128xf32> -> vector<2x128xf32>
    %c0_132 = arith.constant 0 : index
    %c0_133 = arith.constant 0 : index
    %328 = vector.load %arg7[%c0_132, %c0_133] : memref<1x128xf32, #tpu.memory_space<vmem>>, vector<1x128xf32>
    %329 = vector.broadcast %328 : vector<1x128xf32> to vector<2x128xf32>
    %330 = arith.addf %327, %329 : vector<2x128xf32>
    %331 = vector.extract_strided_slice %330 {offsets = [0, 0], sizes = [2, 32], strides = [1, 1]} : vector<2x128xf32> to vector<2x32xf32>
    %332 = arith.negf %331 : vector<2x32xf32>
    %333 = math.exp %332 : vector<2x32xf32>
    %cst_134 = arith.constant 1.000000e+00 : f32
    %334 = vector.broadcast %cst_134 : f32 to vector<2x32xf32>
    %335 = arith.addf %334, %333 : vector<2x32xf32>
    %336 = arith.divf %334, %335 : vector<2x32xf32>
    %337 = vector.extract_strided_slice %330 {offsets = [0, 32], sizes = [2, 32], strides = [1, 1]} : vector<2x128xf32> to vector<2x32xf32>
    %338 = arith.negf %337 : vector<2x32xf32>
    %339 = math.exp %338 : vector<2x32xf32>
    %cst_135 = arith.constant 1.000000e+00 : f32
    %340 = vector.broadcast %cst_135 : f32 to vector<2x32xf32>
    %341 = arith.addf %340, %339 : vector<2x32xf32>
    %342 = arith.divf %340, %341 : vector<2x32xf32>
    %343 = vector.extract_strided_slice %330 {offsets = [0, 64], sizes = [2, 32], strides = [1, 1]} : vector<2x128xf32> to vector<2x32xf32>
    %344 = math.tanh %343 : vector<2x32xf32>
    %345 = vector.extract_strided_slice %330 {offsets = [0, 96], sizes = [2, 32], strides = [1, 1]} : vector<2x128xf32> to vector<2x32xf32>
    %346 = arith.negf %345 : vector<2x32xf32>
    %347 = math.exp %346 : vector<2x32xf32>
    %cst_136 = arith.constant 1.000000e+00 : f32
    %348 = vector.broadcast %cst_136 : f32 to vector<2x32xf32>
    %349 = arith.addf %348, %347 : vector<2x32xf32>
    %350 = arith.divf %348, %349 : vector<2x32xf32>
    %351 = arith.mulf %342, %250 : vector<2x32xf32>
    %352 = arith.mulf %336, %344 : vector<2x32xf32>
    %353 = arith.addf %351, %352 : vector<2x32xf32>
    %354 = math.tanh %353 : vector<2x32xf32>
    %355 = arith.mulf %350, %354 : vector<2x32xf32>
    %356 = tpu.concatenate %355, %283 in 1 : vector<2x32xf32>, vector<2x32xf32> -> vector<2x64xf32>
    %c0_137 = arith.constant 0 : index
    %c0_138 = arith.constant 0 : index
    %357 = vector.load %arg8[%c0_137, %c0_138] : memref<64x128xf32, #tpu.memory_space<vmem>>, vector<64x128xf32>
    %cst_139 = arith.constant dense<0.000000e+00> : vector<2x128xf32>
    %358 = tpu.matmul %356, %357, %cst_139 {dimension_numbers = #tpu.dot_dimension_numbers<[1], [0], [0], [1], [0, 0, 1, 1], [], []>} : vector<2x64xf32>, vector<64x128xf32>, vector<2x128xf32> -> vector<2x128xf32>
    %c0_140 = arith.constant 0 : index
    %c0_141 = arith.constant 0 : index
    %359 = vector.load %arg9[%c0_140, %c0_141] : memref<1x128xf32, #tpu.memory_space<vmem>>, vector<1x128xf32>
    %360 = vector.broadcast %359 : vector<1x128xf32> to vector<2x128xf32>
    %361 = arith.addf %358, %360 : vector<2x128xf32>
    %362 = vector.extract_strided_slice %361 {offsets = [0, 0], sizes = [2, 32], strides = [1, 1]} : vector<2x128xf32> to vector<2x32xf32>
    %363 = arith.negf %362 : vector<2x32xf32>
    %364 = math.exp %363 : vector<2x32xf32>
    %cst_142 = arith.constant 1.000000e+00 : f32
    %365 = vector.broadcast %cst_142 : f32 to vector<2x32xf32>
    %366 = arith.addf %365, %364 : vector<2x32xf32>
    %367 = arith.divf %365, %366 : vector<2x32xf32>
    %368 = vector.extract_strided_slice %361 {offsets = [0, 32], sizes = [2, 32], strides = [1, 1]} : vector<2x128xf32> to vector<2x32xf32>
    %369 = arith.negf %368 : vector<2x32xf32>
    %370 = math.exp %369 : vector<2x32xf32>
    %cst_143 = arith.constant 1.000000e+00 : f32
    %371 = vector.broadcast %cst_143 : f32 to vector<2x32xf32>
    %372 = arith.addf %371, %370 : vector<2x32xf32>
    %373 = arith.divf %371, %372 : vector<2x32xf32>
    %374 = vector.extract_strided_slice %361 {offsets = [0, 64], sizes = [2, 32], strides = [1, 1]} : vector<2x128xf32> to vector<2x32xf32>
    %375 = math.tanh %374 : vector<2x32xf32>
    %376 = vector.extract_strided_slice %361 {offsets = [0, 96], sizes = [2, 32], strides = [1, 1]} : vector<2x128xf32> to vector<2x32xf32>
    %377 = arith.negf %376 : vector<2x32xf32>
    %378 = math.exp %377 : vector<2x32xf32>
    %cst_144 = arith.constant 1.000000e+00 : f32
    %379 = vector.broadcast %cst_144 : f32 to vector<2x32xf32>
    %380 = arith.addf %379, %378 : vector<2x32xf32>
    %381 = arith.divf %379, %380 : vector<2x32xf32>
    %382 = arith.mulf %373, %281 : vector<2x32xf32>
    %383 = arith.mulf %367, %375 : vector<2x32xf32>
    %384 = arith.addf %382, %383 : vector<2x32xf32>
    %385 = math.tanh %384 : vector<2x32xf32>
    %386 = arith.mulf %381, %385 : vector<2x32xf32>
    %387 = vector.broadcast %cst_12 : f32 to vector<2x32xf32>
    %388 = arith.mulf %386, %387 : vector<2x32xf32>
    %c0_145 = arith.constant 0 : index
    %c0_146 = arith.constant 0 : index
    %c0_147 = arith.constant 0 : index
    %389 = vector.load %arg2[%c0_145, %c0_146, %c0_147] : memref<2x8x32xf32, #tpu.memory_space<vmem>>, vector<2x8x32xf32>
    %390 = vector.shape_cast %388 : vector<2x32xf32> to vector<2x1x32xf32>
    %391 = vector.broadcast %390 : vector<2x1x32xf32> to vector<2x8x32xf32>
    %392 = arith.mulf %389, %391 : vector<2x8x32xf32>
    %cst_148 = arith.constant dense<0.000000e+00> : vector<2x8xf32>
    %393 = vector.multi_reduction <add>, %392, %cst_148 [2] : vector<2x8x32xf32> to vector<2x8xf32>
    %394 = arith.addf %393, %5 : vector<2x8xf32>
    %cst_149 = arith.constant dense<0xFF800000> : vector<2xf32>
    %395 = vector.multi_reduction <maximumf>, %394, %cst_149 [1] : vector<2x8xf32> to vector<2xf32>
    %396 = vector.shape_cast %395 : vector<2xf32> to vector<2x1xf32>
    %397 = vector.broadcast %396 : vector<2x1xf32> to vector<2x8xf32>
    %398 = arith.subf %394, %397 : vector<2x8xf32>
    %399 = math.exp %398 : vector<2x8xf32>
    %cst_150 = arith.constant dense<0.000000e+00> : vector<2xf32>
    %400 = vector.multi_reduction <add>, %399, %cst_150 [1] : vector<2x8xf32> to vector<2xf32>
    %401 = vector.shape_cast %400 : vector<2xf32> to vector<2x1xf32>
    %402 = tpu.reciprocal %401 {approx = true} : vector<2x1xf32> -> vector<2x1xf32>
    %403 = vector.broadcast %402 : vector<2x1xf32> to vector<2x8xf32>
    %404 = arith.mulf %399, %403 : vector<2x8xf32>
    %405 = vector.shape_cast %404 : vector<2x8xf32> to vector<2x8x1xf32>
    %c0_151 = arith.constant 0 : index
    %c0_152 = arith.constant 0 : index
    %c0_153 = arith.constant 0 : index
    %406 = vector.load %arg3[%c0_151, %c0_152, %c0_153] : memref<2x8x32xf32, #tpu.memory_space<vmem>>, vector<2x8x32xf32>
    %407 = vector.broadcast %405 : vector<2x8x1xf32> to vector<2x8x32xf32>
    %408 = arith.mulf %407, %406 : vector<2x8x32xf32>
    %cst_154 = arith.constant dense<0.000000e+00> : vector<2x32xf32>
    %409 = vector.multi_reduction <add>, %408, %cst_154 [1] : vector<2x8x32xf32> to vector<2x32xf32>
    %410 = tpu.concatenate %386, %409 in 1 : vector<2x32xf32>, vector<2x32xf32> -> vector<2x64xf32>
    %c0_155 = arith.constant 0 : index
    %c0_156 = arith.constant 0 : index
    %411 = vector.load %arg10[%c0_155, %c0_156] : memref<64x32xf32, #tpu.memory_space<vmem>>, vector<64x32xf32>
    %cst_157 = arith.constant dense<0.000000e+00> : vector<2x32xf32>
    %412 = tpu.matmul %410, %411, %cst_157 {dimension_numbers = #tpu.dot_dimension_numbers<[1], [0], [0], [1], [0, 0, 1, 1], [], []>} : vector<2x64xf32>, vector<64x32xf32>, vector<2x32xf32> -> vector<2x32xf32>
    %c0_158 = arith.constant 0 : index
    %c0_159 = arith.constant 0 : index
    %413 = vector.load %arg11[%c0_158, %c0_159] : memref<1x32xf32, #tpu.memory_space<vmem>>, vector<1x32xf32>
    %414 = vector.broadcast %413 : vector<1x32xf32> to vector<2x32xf32>
    %415 = arith.addf %412, %414 : vector<2x32xf32>
    %416 = arith.index_cast %c3_i32 : i32 to index
    %c0_160 = arith.constant 0 : index
    %c0_161 = arith.constant 0 : index
    %417 = vector.load %arg12[%416, %c0_160, %c0_161] : memref<6x2x32xf32, #tpu.memory_space<vmem>>, vector<1x2x32xf32>
    %418 = vector.shape_cast %417 : vector<1x2x32xf32> to vector<2x32xf32>
    %419 = vector.shape_cast %415 : vector<2x32xf32> to vector<1x2x32xf32>
    tpu.vector_store %arg12[%416, %c0_160, %c0_161], %419 {strides = array<i32>} : memref<6x2x32xf32, #tpu.memory_space<vmem>>, vector<1x2x32xf32>,
    %cst_162 = arith.constant dense<0.000000e+00> : vector<1x8xf32>
    %420 = tpu.matmul %6, %404, %cst_162 {dimension_numbers = #tpu.dot_dimension_numbers<[1], [0], [0], [1], [0, 0, 1, 1], [], []>} : vector<1x2xf32>, vector<2x8xf32>, vector<1x8xf32> -> vector<1x8xf32>
    %421 = arith.index_cast %c3_i32 : i32 to index
    %c0_163 = arith.constant 0 : index
    %c0_164 = arith.constant 0 : index
    %422 = vector.load %arg13[%421, %c0_163, %c0_164] : memref<6x1x8xf32, #tpu.memory_space<vmem>>, vector<1x1x8xf32>
    %423 = vector.shape_cast %422 : vector<1x1x8xf32> to vector<1x8xf32>
    %424 = vector.shape_cast %420 : vector<1x8xf32> to vector<1x1x8xf32>
    tpu.vector_store %arg13[%421, %c0_163, %c0_164], %424 {strides = array<i32>} : memref<6x1x8xf32, #tpu.memory_space<vmem>>, vector<1x1x8xf32>,
    %c4_i32 = arith.constant 4 : i32
    %425 = arith.index_cast %c4_i32 : i32 to index
    %c0_165 = arith.constant 0 : index
    %c0_166 = arith.constant 0 : index
    %426 = vector.load %arg1[%425, %c0_165, %c0_166] : memref<6x2x64xf32, #tpu.memory_space<vmem>>, vector<1x2x64xf32>
    %427 = vector.shape_cast %426 : vector<1x2x64xf32> to vector<2x64xf32>
    %428 = tpu.concatenate %427, %409, %355 in 1 : vector<2x64xf32>, vector<2x32xf32>, vector<2x32xf32> -> vector<2x128xf32>
    %c0_167 = arith.constant 0 : index
    %c0_168 = arith.constant 0 : index
    %429 = vector.load %arg6[%c0_167, %c0_168] : memref<128x128xf32, #tpu.memory_space<vmem>>, vector<128x128xf32>
    %cst_169 = arith.constant dense<0.000000e+00> : vector<2x128xf32>
    %430 = tpu.matmul %428, %429, %cst_169 {dimension_numbers = #tpu.dot_dimension_numbers<[1], [0], [0], [1], [0, 0, 1, 1], [], []>} : vector<2x128xf32>, vector<128x128xf32>, vector<2x128xf32> -> vector<2x128xf32>
    %c0_170 = arith.constant 0 : index
    %c0_171 = arith.constant 0 : index
    %431 = vector.load %arg7[%c0_170, %c0_171] : memref<1x128xf32, #tpu.memory_space<vmem>>, vector<1x128xf32>
    %432 = vector.broadcast %431 : vector<1x128xf32> to vector<2x128xf32>
    %433 = arith.addf %430, %432 : vector<2x128xf32>
    %434 = vector.extract_strided_slice %433 {offsets = [0, 0], sizes = [2, 32], strides = [1, 1]} : vector<2x128xf32> to vector<2x32xf32>
    %435 = arith.negf %434 : vector<2x32xf32>
    %436 = math.exp %435 : vector<2x32xf32>
    %cst_172 = arith.constant 1.000000e+00 : f32
    %437 = vector.broadcast %cst_172 : f32 to vector<2x32xf32>
    %438 = arith.addf %437, %436 : vector<2x32xf32>
    %439 = arith.divf %437, %438 : vector<2x32xf32>
    %440 = vector.extract_strided_slice %433 {offsets = [0, 32], sizes = [2, 32], strides = [1, 1]} : vector<2x128xf32> to vector<2x32xf32>
    %441 = arith.negf %440 : vector<2x32xf32>
    %442 = math.exp %441 : vector<2x32xf32>
    %cst_173 = arith.constant 1.000000e+00 : f32
    %443 = vector.broadcast %cst_173 : f32 to vector<2x32xf32>
    %444 = arith.addf %443, %442 : vector<2x32xf32>
    %445 = arith.divf %443, %444 : vector<2x32xf32>
    %446 = vector.extract_strided_slice %433 {offsets = [0, 64], sizes = [2, 32], strides = [1, 1]} : vector<2x128xf32> to vector<2x32xf32>
    %447 = math.tanh %446 : vector<2x32xf32>
    %448 = vector.extract_strided_slice %433 {offsets = [0, 96], sizes = [2, 32], strides = [1, 1]} : vector<2x128xf32> to vector<2x32xf32>
    %449 = arith.negf %448 : vector<2x32xf32>
    %450 = math.exp %449 : vector<2x32xf32>
    %cst_174 = arith.constant 1.000000e+00 : f32
    %451 = vector.broadcast %cst_174 : f32 to vector<2x32xf32>
    %452 = arith.addf %451, %450 : vector<2x32xf32>
    %453 = arith.divf %451, %452 : vector<2x32xf32>
    %454 = arith.mulf %445, %353 : vector<2x32xf32>
    %455 = arith.mulf %439, %447 : vector<2x32xf32>
    %456 = arith.addf %454, %455 : vector<2x32xf32>
    %457 = math.tanh %456 : vector<2x32xf32>
    %458 = arith.mulf %453, %457 : vector<2x32xf32>
    %459 = tpu.concatenate %458, %386 in 1 : vector<2x32xf32>, vector<2x32xf32> -> vector<2x64xf32>
    %c0_175 = arith.constant 0 : index
    %c0_176 = arith.constant 0 : index
    %460 = vector.load %arg8[%c0_175, %c0_176] : memref<64x128xf32, #tpu.memory_space<vmem>>, vector<64x128xf32>
    %cst_177 = arith.constant dense<0.000000e+00> : vector<2x128xf32>
    %461 = tpu.matmul %459, %460, %cst_177 {dimension_numbers = #tpu.dot_dimension_numbers<[1], [0], [0], [1], [0, 0, 1, 1], [], []>} : vector<2x64xf32>, vector<64x128xf32>, vector<2x128xf32> -> vector<2x128xf32>
    %c0_178 = arith.constant 0 : index
    %c0_179 = arith.constant 0 : index
    %462 = vector.load %arg9[%c0_178, %c0_179] : memref<1x128xf32, #tpu.memory_space<vmem>>, vector<1x128xf32>
    %463 = vector.broadcast %462 : vector<1x128xf32> to vector<2x128xf32>
    %464 = arith.addf %461, %463 : vector<2x128xf32>
    %465 = vector.extract_strided_slice %464 {offsets = [0, 0], sizes = [2, 32], strides = [1, 1]} : vector<2x128xf32> to vector<2x32xf32>
    %466 = arith.negf %465 : vector<2x32xf32>
    %467 = math.exp %466 : vector<2x32xf32>
    %cst_180 = arith.constant 1.000000e+00 : f32
    %468 = vector.broadcast %cst_180 : f32 to vector<2x32xf32>
    %469 = arith.addf %468, %467 : vector<2x32xf32>
    %470 = arith.divf %468, %469 : vector<2x32xf32>
    %471 = vector.extract_strided_slice %464 {offsets = [0, 32], sizes = [2, 32], strides = [1, 1]} : vector<2x128xf32> to vector<2x32xf32>
    %472 = arith.negf %471 : vector<2x32xf32>
    %473 = math.exp %472 : vector<2x32xf32>
    %cst_181 = arith.constant 1.000000e+00 : f32
    %474 = vector.broadcast %cst_181 : f32 to vector<2x32xf32>
    %475 = arith.addf %474, %473 : vector<2x32xf32>
    %476 = arith.divf %474, %475 : vector<2x32xf32>
    %477 = vector.extract_strided_slice %464 {offsets = [0, 64], sizes = [2, 32], strides = [1, 1]} : vector<2x128xf32> to vector<2x32xf32>
    %478 = math.tanh %477 : vector<2x32xf32>
    %479 = vector.extract_strided_slice %464 {offsets = [0, 96], sizes = [2, 32], strides = [1, 1]} : vector<2x128xf32> to vector<2x32xf32>
    %480 = arith.negf %479 : vector<2x32xf32>
    %481 = math.exp %480 : vector<2x32xf32>
    %cst_182 = arith.constant 1.000000e+00 : f32
    %482 = vector.broadcast %cst_182 : f32 to vector<2x32xf32>
    %483 = arith.addf %482, %481 : vector<2x32xf32>
    %484 = arith.divf %482, %483 : vector<2x32xf32>
    %485 = arith.mulf %476, %384 : vector<2x32xf32>
    %486 = arith.mulf %470, %478 : vector<2x32xf32>
    %487 = arith.addf %485, %486 : vector<2x32xf32>
    %488 = math.tanh %487 : vector<2x32xf32>
    %489 = arith.mulf %484, %488 : vector<2x32xf32>
    %490 = vector.broadcast %cst_12 : f32 to vector<2x32xf32>
    %491 = arith.mulf %489, %490 : vector<2x32xf32>
    %c0_183 = arith.constant 0 : index
    %c0_184 = arith.constant 0 : index
    %c0_185 = arith.constant 0 : index
    %492 = vector.load %arg2[%c0_183, %c0_184, %c0_185] : memref<2x8x32xf32, #tpu.memory_space<vmem>>, vector<2x8x32xf32>
    %493 = vector.shape_cast %491 : vector<2x32xf32> to vector<2x1x32xf32>
    %494 = vector.broadcast %493 : vector<2x1x32xf32> to vector<2x8x32xf32>
    %495 = arith.mulf %492, %494 : vector<2x8x32xf32>
    %cst_186 = arith.constant dense<0.000000e+00> : vector<2x8xf32>
    %496 = vector.multi_reduction <add>, %495, %cst_186 [2] : vector<2x8x32xf32> to vector<2x8xf32>
    %497 = arith.addf %496, %5 : vector<2x8xf32>
    %cst_187 = arith.constant dense<0xFF800000> : vector<2xf32>
    %498 = vector.multi_reduction <maximumf>, %497, %cst_187 [1] : vector<2x8xf32> to vector<2xf32>
    %499 = vector.shape_cast %498 : vector<2xf32> to vector<2x1xf32>
    %500 = vector.broadcast %499 : vector<2x1xf32> to vector<2x8xf32>
    %501 = arith.subf %497, %500 : vector<2x8xf32>
    %502 = math.exp %501 : vector<2x8xf32>
    %cst_188 = arith.constant dense<0.000000e+00> : vector<2xf32>
    %503 = vector.multi_reduction <add>, %502, %cst_188 [1] : vector<2x8xf32> to vector<2xf32>
    %504 = vector.shape_cast %503 : vector<2xf32> to vector<2x1xf32>
    %505 = tpu.reciprocal %504 {approx = true} : vector<2x1xf32> -> vector<2x1xf32>
    %506 = vector.broadcast %505 : vector<2x1xf32> to vector<2x8xf32>
    %507 = arith.mulf %502, %506 : vector<2x8xf32>
    %508 = vector.shape_cast %507 : vector<2x8xf32> to vector<2x8x1xf32>
    %c0_189 = arith.constant 0 : index
    %c0_190 = arith.constant 0 : index
    %c0_191 = arith.constant 0 : index
    %509 = vector.load %arg3[%c0_189, %c0_190, %c0_191] : memref<2x8x32xf32, #tpu.memory_space<vmem>>, vector<2x8x32xf32>
    %510 = vector.broadcast %508 : vector<2x8x1xf32> to vector<2x8x32xf32>
    %511 = arith.mulf %510, %509 : vector<2x8x32xf32>
    %cst_192 = arith.constant dense<0.000000e+00> : vector<2x32xf32>
    %512 = vector.multi_reduction <add>, %511, %cst_192 [1] : vector<2x8x32xf32> to vector<2x32xf32>
    %513 = tpu.concatenate %489, %512 in 1 : vector<2x32xf32>, vector<2x32xf32> -> vector<2x64xf32>
    %c0_193 = arith.constant 0 : index
    %c0_194 = arith.constant 0 : index
    %514 = vector.load %arg10[%c0_193, %c0_194] : memref<64x32xf32, #tpu.memory_space<vmem>>, vector<64x32xf32>
    %cst_195 = arith.constant dense<0.000000e+00> : vector<2x32xf32>
    %515 = tpu.matmul %513, %514, %cst_195 {dimension_numbers = #tpu.dot_dimension_numbers<[1], [0], [0], [1], [0, 0, 1, 1], [], []>} : vector<2x64xf32>, vector<64x32xf32>, vector<2x32xf32> -> vector<2x32xf32>
    %c0_196 = arith.constant 0 : index
    %c0_197 = arith.constant 0 : index
    %516 = vector.load %arg11[%c0_196, %c0_197] : memref<1x32xf32, #tpu.memory_space<vmem>>, vector<1x32xf32>
    %517 = vector.broadcast %516 : vector<1x32xf32> to vector<2x32xf32>
    %518 = arith.addf %515, %517 : vector<2x32xf32>
    %519 = arith.index_cast %c4_i32 : i32 to index
    %c0_198 = arith.constant 0 : index
    %c0_199 = arith.constant 0 : index
    %520 = vector.load %arg12[%519, %c0_198, %c0_199] : memref<6x2x32xf32, #tpu.memory_space<vmem>>, vector<1x2x32xf32>
    %521 = vector.shape_cast %520 : vector<1x2x32xf32> to vector<2x32xf32>
    %522 = vector.shape_cast %518 : vector<2x32xf32> to vector<1x2x32xf32>
    tpu.vector_store %arg12[%519, %c0_198, %c0_199], %522 {strides = array<i32>} : memref<6x2x32xf32, #tpu.memory_space<vmem>>, vector<1x2x32xf32>,
    %cst_200 = arith.constant dense<0.000000e+00> : vector<1x8xf32>
    %523 = tpu.matmul %6, %507, %cst_200 {dimension_numbers = #tpu.dot_dimension_numbers<[1], [0], [0], [1], [0, 0, 1, 1], [], []>} : vector<1x2xf32>, vector<2x8xf32>, vector<1x8xf32> -> vector<1x8xf32>
    %524 = arith.index_cast %c4_i32 : i32 to index
    %c0_201 = arith.constant 0 : index
    %c0_202 = arith.constant 0 : index
    %525 = vector.load %arg13[%524, %c0_201, %c0_202] : memref<6x1x8xf32, #tpu.memory_space<vmem>>, vector<1x1x8xf32>
    %526 = vector.shape_cast %525 : vector<1x1x8xf32> to vector<1x8xf32>
    %527 = vector.shape_cast %523 : vector<1x8xf32> to vector<1x1x8xf32>
    tpu.vector_store %arg13[%524, %c0_201, %c0_202], %527 {strides = array<i32>} : memref<6x1x8xf32, #tpu.memory_space<vmem>>, vector<1x1x8xf32>,
    %c5_i32 = arith.constant 5 : i32
    %528 = arith.index_cast %c5_i32 : i32 to index
    %c0_203 = arith.constant 0 : index
    %c0_204 = arith.constant 0 : index
    %529 = vector.load %arg1[%528, %c0_203, %c0_204] : memref<6x2x64xf32, #tpu.memory_space<vmem>>, vector<1x2x64xf32>
    %530 = vector.shape_cast %529 : vector<1x2x64xf32> to vector<2x64xf32>
    %531 = tpu.concatenate %530, %512, %458 in 1 : vector<2x64xf32>, vector<2x32xf32>, vector<2x32xf32> -> vector<2x128xf32>
    %c0_205 = arith.constant 0 : index
    %c0_206 = arith.constant 0 : index
    %532 = vector.load %arg6[%c0_205, %c0_206] : memref<128x128xf32, #tpu.memory_space<vmem>>, vector<128x128xf32>
    %cst_207 = arith.constant dense<0.000000e+00> : vector<2x128xf32>
    %533 = tpu.matmul %531, %532, %cst_207 {dimension_numbers = #tpu.dot_dimension_numbers<[1], [0], [0], [1], [0, 0, 1, 1], [], []>} : vector<2x128xf32>, vector<128x128xf32>, vector<2x128xf32> -> vector<2x128xf32>
    %c0_208 = arith.constant 0 : index
    %c0_209 = arith.constant 0 : index
    %534 = vector.load %arg7[%c0_208, %c0_209] : memref<1x128xf32, #tpu.memory_space<vmem>>, vector<1x128xf32>
    %535 = vector.broadcast %534 : vector<1x128xf32> to vector<2x128xf32>
    %536 = arith.addf %533, %535 : vector<2x128xf32>
    %537 = vector.extract_strided_slice %536 {offsets = [0, 0], sizes = [2, 32], strides = [1, 1]} : vector<2x128xf32> to vector<2x32xf32>
    %538 = arith.negf %537 : vector<2x32xf32>
    %539 = math.exp %538 : vector<2x32xf32>
    %cst_210 = arith.constant 1.000000e+00 : f32
    %540 = vector.broadcast %cst_210 : f32 to vector<2x32xf32>
    %541 = arith.addf %540, %539 : vector<2x32xf32>
    %542 = arith.divf %540, %541 : vector<2x32xf32>
    %543 = vector.extract_strided_slice %536 {offsets = [0, 32], sizes = [2, 32], strides = [1, 1]} : vector<2x128xf32> to vector<2x32xf32>
    %544 = arith.negf %543 : vector<2x32xf32>
    %545 = math.exp %544 : vector<2x32xf32>
    %cst_211 = arith.constant 1.000000e+00 : f32
    %546 = vector.broadcast %cst_211 : f32 to vector<2x32xf32>
    %547 = arith.addf %546, %545 : vector<2x32xf32>
    %548 = arith.divf %546, %547 : vector<2x32xf32>
    %549 = vector.extract_strided_slice %536 {offsets = [0, 64], sizes = [2, 32], strides = [1, 1]} : vector<2x128xf32> to vector<2x32xf32>
    %550 = math.tanh %549 : vector<2x32xf32>
    %551 = vector.extract_strided_slice %536 {offsets = [0, 96], sizes = [2, 32], strides = [1, 1]} : vector<2x128xf32> to vector<2x32xf32>
    %552 = arith.negf %551 : vector<2x32xf32>
    %553 = math.exp %552 : vector<2x32xf32>
    %cst_212 = arith.constant 1.000000e+00 : f32
    %554 = vector.broadcast %cst_212 : f32 to vector<2x32xf32>
    %555 = arith.addf %554, %553 : vector<2x32xf32>
    %556 = arith.divf %554, %555 : vector<2x32xf32>
    %557 = arith.mulf %548, %456 : vector<2x32xf32>
    %558 = arith.mulf %542, %550 : vector<2x32xf32>
    %559 = arith.addf %557, %558 : vector<2x32xf32>
    %560 = math.tanh %559 : vector<2x32xf32>
    %561 = arith.mulf %556, %560 : vector<2x32xf32>
    %562 = tpu.concatenate %561, %489 in 1 : vector<2x32xf32>, vector<2x32xf32> -> vector<2x64xf32>
    %c0_213 = arith.constant 0 : index
    %c0_214 = arith.constant 0 : index
    %563 = vector.load %arg8[%c0_213, %c0_214] : memref<64x128xf32, #tpu.memory_space<vmem>>, vector<64x128xf32>
    %cst_215 = arith.constant dense<0.000000e+00> : vector<2x128xf32>
    %564 = tpu.matmul %562, %563, %cst_215 {dimension_numbers = #tpu.dot_dimension_numbers<[1], [0], [0], [1], [0, 0, 1, 1], [], []>} : vector<2x64xf32>, vector<64x128xf32>, vector<2x128xf32> -> vector<2x128xf32>
    %c0_216 = arith.constant 0 : index
    %c0_217 = arith.constant 0 : index
    %565 = vector.load %arg9[%c0_216, %c0_217] : memref<1x128xf32, #tpu.memory_space<vmem>>, vector<1x128xf32>
    %566 = vector.broadcast %565 : vector<1x128xf32> to vector<2x128xf32>
    %567 = arith.addf %564, %566 : vector<2x128xf32>
    %568 = vector.extract_strided_slice %567 {offsets = [0, 0], sizes = [2, 32], strides = [1, 1]} : vector<2x128xf32> to vector<2x32xf32>
    %569 = arith.negf %568 : vector<2x32xf32>
    %570 = math.exp %569 : vector<2x32xf32>
    %cst_218 = arith.constant 1.000000e+00 : f32
    %571 = vector.broadcast %cst_218 : f32 to vector<2x32xf32>
    %572 = arith.addf %571, %570 : vector<2x32xf32>
    %573 = arith.divf %571, %572 : vector<2x32xf32>
    %574 = vector.extract_strided_slice %567 {offsets = [0, 32], sizes = [2, 32], strides = [1, 1]} : vector<2x128xf32> to vector<2x32xf32>
    %575 = arith.negf %574 : vector<2x32xf32>
    %576 = math.exp %575 : vector<2x32xf32>
    %cst_219 = arith.constant 1.000000e+00 : f32
    %577 = vector.broadcast %cst_219 : f32 to vector<2x32xf32>
    %578 = arith.addf %577, %576 : vector<2x32xf32>
    %579 = arith.divf %577, %578 : vector<2x32xf32>
    %580 = vector.extract_strided_slice %567 {offsets = [0, 64], sizes = [2, 32], strides = [1, 1]} : vector<2x128xf32> to vector<2x32xf32>
    %581 = math.tanh %580 : vector<2x32xf32>
    %582 = vector.extract_strided_slice %567 {offsets = [0, 96], sizes = [2, 32], strides = [1, 1]} : vector<2x128xf32> to vector<2x32xf32>
    %583 = arith.negf %582 : vector<2x32xf32>
    %584 = math.exp %583 : vector<2x32xf32>
    %cst_220 = arith.constant 1.000000e+00 : f32
    %585 = vector.broadcast %cst_220 : f32 to vector<2x32xf32>
    %586 = arith.addf %585, %584 : vector<2x32xf32>
    %587 = arith.divf %585, %586 : vector<2x32xf32>
    %588 = arith.mulf %579, %487 : vector<2x32xf32>
    %589 = arith.mulf %573, %581 : vector<2x32xf32>
    %590 = arith.addf %588, %589 : vector<2x32xf32>
    %591 = math.tanh %590 : vector<2x32xf32>
    %592 = arith.mulf %587, %591 : vector<2x32xf32>
    %593 = vector.broadcast %cst_12 : f32 to vector<2x32xf32>
    %594 = arith.mulf %592, %593 : vector<2x32xf32>
    %c0_221 = arith.constant 0 : index
    %c0_222 = arith.constant 0 : index
    %c0_223 = arith.constant 0 : index
    %595 = vector.load %arg2[%c0_221, %c0_222, %c0_223] : memref<2x8x32xf32, #tpu.memory_space<vmem>>, vector<2x8x32xf32>
    %596 = vector.shape_cast %594 : vector<2x32xf32> to vector<2x1x32xf32>
    %597 = vector.broadcast %596 : vector<2x1x32xf32> to vector<2x8x32xf32>
    %598 = arith.mulf %595, %597 : vector<2x8x32xf32>
    %cst_224 = arith.constant dense<0.000000e+00> : vector<2x8xf32>
    %599 = vector.multi_reduction <add>, %598, %cst_224 [2] : vector<2x8x32xf32> to vector<2x8xf32>
    %600 = arith.addf %599, %5 : vector<2x8xf32>
    %cst_225 = arith.constant dense<0xFF800000> : vector<2xf32>
    %601 = vector.multi_reduction <maximumf>, %600, %cst_225 [1] : vector<2x8xf32> to vector<2xf32>
    %602 = vector.shape_cast %601 : vector<2xf32> to vector<2x1xf32>
    %603 = vector.broadcast %602 : vector<2x1xf32> to vector<2x8xf32>
    %604 = arith.subf %600, %603 : vector<2x8xf32>
    %605 = math.exp %604 : vector<2x8xf32>
    %cst_226 = arith.constant dense<0.000000e+00> : vector<2xf32>
    %606 = vector.multi_reduction <add>, %605, %cst_226 [1] : vector<2x8xf32> to vector<2xf32>
    %607 = vector.shape_cast %606 : vector<2xf32> to vector<2x1xf32>
    %608 = tpu.reciprocal %607 {approx = true} : vector<2x1xf32> -> vector<2x1xf32>
    %609 = vector.broadcast %608 : vector<2x1xf32> to vector<2x8xf32>
    %610 = arith.mulf %605, %609 : vector<2x8xf32>
    %611 = vector.shape_cast %610 : vector<2x8xf32> to vector<2x8x1xf32>
    %c0_227 = arith.constant 0 : index
    %c0_228 = arith.constant 0 : index
    %c0_229 = arith.constant 0 : index
    %612 = vector.load %arg3[%c0_227, %c0_228, %c0_229] : memref<2x8x32xf32, #tpu.memory_space<vmem>>, vector<2x8x32xf32>
    %613 = vector.broadcast %611 : vector<2x8x1xf32> to vector<2x8x32xf32>
    %614 = arith.mulf %613, %612 : vector<2x8x32xf32>
    %cst_230 = arith.constant dense<0.000000e+00> : vector<2x32xf32>
    %615 = vector.multi_reduction <add>, %614, %cst_230 [1] : vector<2x8x32xf32> to vector<2x32xf32>
    %616 = tpu.concatenate %592, %615 in 1 : vector<2x32xf32>, vector<2x32xf32> -> vector<2x64xf32>
    %c0_231 = arith.constant 0 : index
    %c0_232 = arith.constant 0 : index
    %617 = vector.load %arg10[%c0_231, %c0_232] : memref<64x32xf32, #tpu.memory_space<vmem>>, vector<64x32xf32>
    %cst_233 = arith.constant dense<0.000000e+00> : vector<2x32xf32>
    %618 = tpu.matmul %616, %617, %cst_233 {dimension_numbers = #tpu.dot_dimension_numbers<[1], [0], [0], [1], [0, 0, 1, 1], [], []>} : vector<2x64xf32>, vector<64x32xf32>, vector<2x32xf32> -> vector<2x32xf32>
    %c0_234 = arith.constant 0 : index
    %c0_235 = arith.constant 0 : index
    %619 = vector.load %arg11[%c0_234, %c0_235] : memref<1x32xf32, #tpu.memory_space<vmem>>, vector<1x32xf32>
    %620 = vector.broadcast %619 : vector<1x32xf32> to vector<2x32xf32>
    %621 = arith.addf %618, %620 : vector<2x32xf32>
    %622 = arith.index_cast %c5_i32 : i32 to index
    %c0_236 = arith.constant 0 : index
    %c0_237 = arith.constant 0 : index
    %623 = vector.load %arg12[%622, %c0_236, %c0_237] : memref<6x2x32xf32, #tpu.memory_space<vmem>>, vector<1x2x32xf32>
    %624 = vector.shape_cast %623 : vector<1x2x32xf32> to vector<2x32xf32>
    %625 = vector.shape_cast %621 : vector<2x32xf32> to vector<1x2x32xf32>
    tpu.vector_store %arg12[%622, %c0_236, %c0_237], %625 {strides = array<i32>} : memref<6x2x32xf32, #tpu.memory_space<vmem>>, vector<1x2x32xf32>,
    %cst_238 = arith.constant dense<0.000000e+00> : vector<1x8xf32>
    %626 = tpu.matmul %6, %610, %cst_238 {dimension_numbers = #tpu.dot_dimension_numbers<[1], [0], [0], [1], [0, 0, 1, 1], [], []>} : vector<1x2xf32>, vector<2x8xf32>, vector<1x8xf32> -> vector<1x8xf32>
    %627 = arith.index_cast %c5_i32 : i32 to index
    %c0_239 = arith.constant 0 : index
    %c0_240 = arith.constant 0 : index
    %628 = vector.load %arg13[%627, %c0_239, %c0_240] : memref<6x1x8xf32, #tpu.memory_space<vmem>>, vector<1x1x8xf32>
    %629 = vector.shape_cast %628 : vector<1x1x8xf32> to vector<1x8xf32>
    %630 = vector.shape_cast %626 : vector<1x8xf32> to vector<1x1x8xf32>
    tpu.vector_store %arg13[%627, %c0_239, %c0_240], %630 {strides = array<i32>} : memref<6x1x8xf32, #tpu.memory_space<vmem>>, vector<1x1x8xf32>,
    %c6_i32 = arith.constant 6 : i32
    return
  }
  func.func @transform_0(%arg0: i32) -> (i32, i32, i32) {
    %c0_i32 = arith.constant 0 : i32
    %c0_i32_0 = arith.constant 0 : i32
    %c0_i32_1 = arith.constant 0 : i32
    %c0_i32_2 = arith.constant 0 : i32
    return %c0_i32, %c0_i32_0, %c0_i32_1 : i32, i32, i32
  }
  func.func @transform_1(%arg0: i32) -> (i32, i32, i32) {
    %c0_i32 = arith.constant 0 : i32
    %c0_i32_0 = arith.constant 0 : i32
    %c0_i32_1 = arith.constant 0 : i32
    %c0_i32_2 = arith.constant 0 : i32
    return %c0_i32, %c0_i32_0, %c0_i32_1 : i32, i32, i32
  }
  func.func @transform_2(%arg0: i32) -> (i32, i32, i32) {
    %c0_i32 = arith.constant 0 : i32
    %c0_i32_0 = arith.constant 0 : i32
    %c0_i32_1 = arith.constant 0 : i32
    %c0_i32_2 = arith.constant 0 : i32
    return %c0_i32, %c0_i32_0, %c0_i32_1 : i32, i32, i32
  }
  func.func @transform_3(%arg0: i32) -> (i32, i32) {
    %c0_i32 = arith.constant 0 : i32
    %c0_i32_0 = arith.constant 0 : i32
    %c0_i32_1 = arith.constant 0 : i32
    return %c0_i32, %c0_i32_0 : i32, i32
  }
  func.func @transform_4(%arg0: i32) -> (i32, i32) {
    %c0_i32 = arith.constant 0 : i32
    %c0_i32_0 = arith.constant 0 : i32
    %c0_i32_1 = arith.constant 0 : i32
    return %c0_i32, %c0_i32_0 : i32, i32
  }
  func.func @transform_5(%arg0: i32) -> (i32, i32) {
    %c0_i32 = arith.constant 0 : i32
    %c0_i32_0 = arith.constant 0 : i32
    %c0_i32_1 = arith.constant 0 : i32
    return %c0_i32, %c0_i32_0 : i32, i32
  }
  func.func @transform_6(%arg0: i32) -> (i32, i32) {
    %c0_i32 = arith.constant 0 : i32
    %c0_i32_0 = arith.constant 0 : i32
    %c0_i32_1 = arith.constant 0 : i32
    return %c0_i32, %c0_i32_0 : i32, i32
  }
  func.func @transform_7(%arg0: i32) -> (i32, i32) {
    %c0_i32 = arith.constant 0 : i32
    %c0_i32_0 = arith.constant 0 : i32
    %c0_i32_1 = arith.constant 0 : i32
    return %c0_i32, %c0_i32_0 : i32, i32
  }
  func.func @transform_8(%arg0: i32) -> (i32, i32) {
    %c0_i32 = arith.constant 0 : i32
    %c0_i32_0 = arith.constant 0 : i32
    %c0_i32_1 = arith.constant 0 : i32
    return %c0_i32, %c0_i32_0 : i32, i32
  }
  func.func @transform_9(%arg0: i32) -> (i32, i32) {
    %c0_i32 = arith.constant 0 : i32
    %c0_i32_0 = arith.constant 0 : i32
    %c0_i32_1 = arith.constant 0 : i32
    return %c0_i32, %c0_i32_0 : i32, i32
  }
  func.func @transform_10(%arg0: i32) -> (i32, i32) {
    %c0_i32 = arith.constant 0 : i32
    %c0_i32_0 = arith.constant 0 : i32
    %c0_i32_1 = arith.constant 0 : i32
    return %c0_i32, %c0_i32_0 : i32, i32
  }
  func.func @transform_11(%arg0: i32) -> (i32, i32, i32) {
    %c0_i32 = arith.constant 0 : i32
    %c0_i32_0 = arith.constant 0 : i32
    %c0_i32_1 = arith.constant 0 : i32
    %c0_i32_2 = arith.constant 0 : i32
    return %c0_i32, %c0_i32_0, %c0_i32_1 : i32, i32, i32
  }
  func.func @transform_12(%arg0: i32) -> (i32, i32, i32) {
    %c0_i32 = arith.constant 0 : i32
    %c0_i32_0 = arith.constant 0 : i32
    %c0_i32_1 = arith.constant 0 : i32
    %c0_i32_2 = arith.constant 0 : i32
    return %c0_i32, %c0_i32_0, %c0_i32_1 : i32, i32, i32
  }
}

</mosaic_0001>

<bundles_post_ra>
// kernel: tpu_custom_call.1
= control target key start
LH: loop header
LB: loop body
LE: loop exit
PB: predicated region body
PF: predicated region fallthrough
CT: control target
= control target key end

     0   :  { %18 = vsyncpa [#allocation3], 0  ;;  %s6098_s0 = inlined_call_operand.hbm [shape: f32[6,2,64], index: 0, kind: input, shape index: {}]   ;;  %s6099_s1 = inlined_call_operand.vmem [shape: f32[2,8,32], index: 1, kind: input, shape index: {}]   ;;  %s6100_s2 = inlined_call_operand.vmem [shape: f32[2,8,32], index: 2, kind: input, shape index: {}]   ;;  %s6101_s3 = inlined_call_operand.vmem [shape: f32[2,8], index: 3, kind: input, shape index: {}]   ;;  %s6102_s4 = inlined_call_operand.hbm [shape: f32[1,2], index: 4, kind: input, shape index: {}]   ;;  %s6103_s5 = inlined_call_operand.hbm [shape: f32[128,128], index: 5, kind: input, shape index: {}]   ;;  %s6104_s6 = inlined_call_operand.hbm [shape: f32[1,128], index: 6, kind: input, shape index: {}]   ;;  %s6105_s7 = inlined_call_operand.vmem [shape: f32[64,128], index: 7, kind: input, shape index: {}]   ;;  %s6106_s8 = inlined_call_operand.hbm [shape: f32[1,128], index: 8, kind: input, shape index: {}]   ;;  %s6107_s9 = inlined_call_operand.vmem [shape: f32[64,32], index: 9, kind: input, shape index: {}]   ;;  %s6108_s10 = inlined_call_operand.vmem [shape: f32[1,32], index: 10, kind: input, shape index: {}]   ;;  %s6109_s11 = inlined_call_operand.hbm [shape: f32[6,2,32], index: 11, kind: output, shape index: {0}]   ;;  %s6110_s12 = inlined_call_operand.hbm [shape: f32[6,1,8], index: 12, kind: output, shape index: {1}]  }
   0x1   :  { %19 = vsyncpa [#allocation6], 0 }
   0x2   :  { %20 = vsyncpa [#allocation9], 0 }
   0x3   :  { %21 = vsyncpa [#allocation4], 0 }
   0x4   :  { %22 = vsyncpa [#allocation13], 0  ;;  %s4999_s21 = smov [#allocation5]   ;;  %s5000_s23 = smov [#allocation8]  }
   0x5   :  { %s47_s22 = sshll.u32 %s4999_s21, 4  ;;  %s69_s24 = sshll.u32 %s5000_s23, 4  ;;  %s48_s22 = int_to_ptr.vmem [resolvable:$true] %s47_s22  ;;  %s70_s24 = int_to_ptr.vmem [resolvable:$true] %s69_s24 }
   0x6   :  { %s4835_s27 = scalar_lea.hbm %s6102_s4, 16 }
   0x7   :  { %p4836_p0 = scmp.ne.s32.totalorder %s6102_s4, %s4835_s27  ;;  %p4839_p1 = scmp.lt.u32.totalorder %s4835_s27, %s6102_s4 }
   0x9   :  { %p4841_p2 = pnand %p4839_p1, %p4836_p0 }
   0xb   :  { %4844 = shalt.err (!%p4841_p2)
}
   0xc   :  { %s4845_s14 = scalar_lea.vmem %s48_s22, 16  ;;  %s4849_s15 = scalar_lea.vmem %s48_s22, 32 }
   0xd   :  { %p4846_p3 = scmp.ne.s32.totalorder %s48_s22, %s4845_s14  ;;  %p4850_p4 = scmp.lt.s32.totalorder %s48_s22, %s48_s22 }
   0xe   :  { %p4851_p5 = scmp.lt.s32.totalorder %s4849_s15, %s4845_s14 }
  0x10   :  { %p4852_p6 = por %p4851_p5, %p4850_p4 }
  0x12   :  { %p4853_p7 = pnand %p4852_p6, %p4846_p3 }
  0x14   :  { %4856 = shalt.err (!%p4853_p7)
}
  0x15   :  { %50 = dma.hbm_to_vmem [thread:$0]  %s6102_s4, 16, %s48_s22, [#allocation6]  }
  0x16   :  { %s4857_s20 = scalar_lea.hbm %s6104_s6, 16 }
  0x17   :  { %p4858_p8 = scmp.ne.s32.totalorder %s6104_s6, %s4857_s20  ;;  %p4861_p9 = scmp.lt.u32.totalorder %s4857_s20, %s6104_s6 }
  0x19   :  { %p4863_p10 = pnand %p4861_p9, %p4858_p8 }
  0x1b   :  { %4866 = shalt.err (!%p4863_p10)
}
  0x1c   :  { %s4867_s27 = scalar_lea.vmem %s70_s24, 16  ;;  %s4871_s28 = scalar_lea.vmem %s70_s24, 32 }
  0x1d   :  { %p4868_p11 = scmp.ne.s32.totalorder %s70_s24, %s4867_s27  ;;  %p4872_p12 = scmp.lt.s32.totalorder %s70_s24, %s70_s24 }
  0x1e   :  { %p4873_p13 = scmp.lt.s32.totalorder %s4871_s28, %s4867_s27 }
  0x20   :  { %p4874_p0 = por %p4873_p13, %p4872_p12 }
  0x22   :  { %p4875_p1 = pnand %p4874_p0, %p4868_p11 }
  0x24   :  { %4878 = shalt.err (!%p4875_p1)
}
  0x25   :  { %72 = dma.hbm_to_vmem [thread:$0]  %s6104_s6, 16, %s70_s24, [#allocation9]  }
  0x26   :  { %s5001_s29 = smov [#allocation2]   ;;  %s4879_s15 = scalar_lea.hbm %s6098_s0, 192 }
  0x27   :  { %s28_s30 = sshll.u32 %s5001_s29, 4  ;;  %p4880_p2 = scmp.ne.s32.totalorder %s6098_s0, %s4879_s15  ;;  %s29_s30 = int_to_ptr.vmem [resolvable:$true] %s28_s30 }
  0x28   :  { %p4883_p3 = scmp.lt.u32.totalorder %s4879_s15, %s6098_s0 }
  0x2a   :  { %p4885_p4 = pnand %p4883_p3, %p4880_p2 }
  0x2c   :  { %4888 = shalt.err (!%p4885_p4)
}
  0x2d   :  { %s4889_s20 = scalar_lea.vmem %s29_s30, 192  ;;  %p4894_p6 = scmp.lt.s32.totalorder %s29_s30, %s29_s30 }
  0x2e   :  { %p4890_p5 = scmp.ne.s32.totalorder %s29_s30, %s4889_s20  ;;  %p4895_p7 = scmp.lt.s32.totalorder %s4889_s20, %s4889_s20 }
  0x30   :  { %p4896_p8 = por %p4895_p7, %p4894_p6 }
  0x32   :  { %p4897_p9 = pnand %p4896_p8, %p4890_p5 }
  0x34   :  { %4900 = shalt.err (!%p4897_p9)
}
  0x35   :  { %s5002_s6 = smov 32   ;;  %s5003_s24 = smov 2  }
  0x36   :  { %34 = dma.hbm_to_vmem [thread:$0]  %s6098_s0, 192, %s29_s30, [#allocation3], %s5002_s6, %s5002_s6, %s5003_s24  }
  0x37   :  { %s5004_s25 = smov [#allocation7]   ;;  %s4901_s4 = scalar_lea.hbm %s6103_s5, 2048 }
  0x38   :  { %s56_s26 = sshll.u32 %s5004_s25, 4  ;;  %p4902_p10 = scmp.ne.s32.totalorder %s6103_s5, %s4901_s4  ;;  %s57_s26 = int_to_ptr.vmem [resolvable:$true] %s56_s26 }
  0x39   :  { %p4905_p11 = scmp.lt.u32.totalorder %s4901_s4, %s6103_s5 }
  0x3b   :  { %p4907_p12 = pnand %p4905_p11, %p4902_p10 }
  0x3d   :  { %4910 = shalt.err (!%p4907_p12)
}
  0x3e   :  { %s4911_s15 = scalar_lea.vmem %s57_s26, 2048  ;;  %p4916_p0 = scmp.lt.s32.totalorder %s57_s26, %s57_s26 }
  0x3f   :  { %p4912_p13 = scmp.ne.s32.totalorder %s57_s26, %s4911_s15  ;;  %p4917_p1 = scmp.lt.s32.totalorder %s4911_s15, %s4911_s15 }
  0x41   :  { %p4918_p2 = por %p4917_p1, %p4916_p0 }
  0x43   :  { %p4919_p3 = pnand %p4918_p2, %p4912_p13 }
  0x45   :  { %4922 = shalt.err (!%p4919_p3)
}
  0x46   :  { %s5005_s0 = smov 128   ;;  %s5006_s30 = smov 8  }
  0x47   :  { %62 = dma.hbm_to_vmem [thread:$0]  %s6103_s5, 2048, %s57_s26, [#allocation6], %s5005_s0, %s5005_s0, %s5006_s30  }
  0x48   :  { %s5007_s18 = smov [#allocation10]   ;;  %s4923_s23 = scalar_lea.hbm %s6106_s8, 16 }
  0x49   :  { %s81_s19 = sshll.u32 %s5007_s18, 4  ;;  %p4924_p4 = scmp.ne.s32.totalorder %s6106_s8, %s4923_s23  ;;  %s82_s19 = int_to_ptr.vmem [resolvable:$true] %s81_s19 }
  0x4a   :  { %p4927_p5 = scmp.lt.u32.totalorder %s4923_s23, %s6106_s8 }
  0x4c   :  { %p4929_p6 = pnand %p4927_p5, %p4924_p4 }
  0x4e   :  { %4932 = shalt.err (!%p4929_p6)
}
  0x4f   :  { %s4933_s22 = scalar_lea.vmem %s82_s19, 16  ;;  %s4937_s5 = scalar_lea.vmem %s82_s19, 32 }
  0x50   :  { %p4934_p7 = scmp.ne.s32.totalorder %s82_s19, %s4933_s22  ;;  %p4938_p8 = scmp.lt.s32.totalorder %s82_s19, %s82_s19 }
  0x51   :  { %p4939_p9 = scmp.lt.s32.totalorder %s4937_s5, %s4933_s22 }
  0x53   :  { %p4940_p10 = por %p4939_p9, %p4938_p8 }
  0x55   :  { %p4941_p11 = pnand %p4940_p10, %p4934_p7 }
  0x57   :  { %4944 = shalt.err (!%p4941_p11)
}
  0x58   :  { %84 = dma.hbm_to_vmem [thread:$0]  %s6106_s8, 16, %s82_s19, [#allocation9]  }
  0x59   :  { %4989 = dma.done.wait [#allocation3], 192  }
  0x5a   :  { %4990 = vsyncadd [#allocation3], 4294967104 }
  0x5b   :  { %4991 = dma.done.wait [#allocation6], 2064  }
  0x5c   :  { %4992 = vsyncadd [#allocation6], 4294965232 }
  0x5d   :  { %4993 = dma.done.wait [#allocation9], 32  }
  0x5e   :  { %4994 = vsyncadd [#allocation9], 4294967264  ;;  %v5008_v0 = vmov 0.0|0.0   ;;  %vm5009_vm0 = vmmov 0   ;;  %v5010_v1 = vmov 0.0   ;;  %vm114_vm1 = vcmask 1041409  }
  0x5f   :  { %4393 = vmatprep.subr.bf16.mxu0 %v5008_v0  ;;  %4417 = vmatprep.subr.bf16.mxu1 %v5008_v0  ;;  %v108_v2 = vld [vmem:[%s6100_s2] sm:$0x1]  ;;  %v109_v3 = vld [vmem:[%s6100_s2 + $0x8] sm:$0x1]  ;;  %v123_v4 = vld [vmem:[#allocation7] sm:$0xff]  ;;  %s5011_s0 = smov 64  }
  0x60   :  { %3957 = vmatprep.mubr.msk.f32.mxu0 %vm5009_vm0, %v5010_v1  ;;  %3976 = vmatprep.mubr.msk.f32.mxu1 %vm5009_vm0, %v5010_v1  ;;  %v113_v5 = vrot.slane %v109_v3, 7  ;;  %v124_v6 = vld [vmem:[#allocation7 + $0x8] sm:$0xff]  ;;  %v125_v7 = vld [vmem:[#allocation7 + $0x10] sm:$0xff]  ;;  %v126_v8 = vld [vmem:[#allocation7 + $0x18] sm:$0xff]  ;;  %vm119_vm2 = vcmask 523264   ;;  %vm121_vm3 = vcmask 785408  }
  0x61   :  { %v5158_v9 = vpack.c.bf16 %v124_v6, %v123_v4  ;;  %v5163_v11 = vpack.c.bf16 %v126_v8, %v125_v7  ;;  %v127_v12 = vld [vmem:[#allocation7 + $0x20] sm:$0xff]  ;;  %v128_v13 = vld [vmem:[#allocation7 + $0x28] sm:$0xff]  ;;  %v129_v15 = vld [vmem:[#allocation7 + $0x30] sm:$0xff]  ;;  %vm244_vm4 = vcmask 261120   ;;  %vm445_vm6 = vcmask 58368  }
  0x62   :  { %v115_v10 = vsel %vm114_vm1, %v113_v5, %v108_v2  ;;  %v5167_v14 = vpack.c.bf16 %v128_v13, %v127_v12  ;;  %v130_v16 = vld [vmem:[#allocation7 + $0x38] sm:$0xff]  ;;  %v131_v18 = vld [vmem:[#allocation7 + $0x40] sm:$0xff]  ;;  %v132_v19 = vld [vmem:[#allocation7 + $0x48] sm:$0xff]  ;;  %vm643_vm7 = vcmask 1041408   ;;  %vm628_vm8 = vcmask 254976  }
  0x63   :  { %116 = vrot.lane.b32.xlu0 %v115_v10, %s5011_s0  ;;  %4395 = vmatpush3.bf16.msra.mxu0 %v5158_v9  ;;  %v5171_v17 = vpack.c.bf16 %v130_v16, %v129_v15  ;;  %v5175_v20 = vpack.c.bf16 %v132_v19, %v131_v18  ;;  %v133_v21 = vld [vmem:[#allocation7 + $0x50] sm:$0xff]  ;;  %v134_v22 = vld [vmem:[#allocation7 + $0x58] sm:$0xff]  ;;  %v135_v24 = vld [vmem:[#allocation7 + $0x60] sm:$0xff]  ;;  %vm639_vm9 = vcmask 15360   ;;  %vm716_vm10 = vcmask 57344  }
  0x64   :  { %4396 = vmatprep.subr.bf16.mxu0 %v5008_v0  ;;  %v5179_v23 = vpack.c.bf16 %v134_v22, %v133_v21  ;;  %v136_v25 = vld [vmem:[#allocation7 + $0x68] sm:$0xff]  ;;  %v137_v27 = vld [vmem:[#allocation7 + $0x70] sm:$0xff]  ;;  %v138_v28 = vld [vmem:[#allocation7 + $0x78] sm:$0xff]  ;;  %v5012_v22 = vmov 1966171168  }
  0x65   :  { %v5183_v26 = vpack.c.bf16 %v136_v25, %v135_v24  ;;  %v5187_v29 = vpack.c.bf16 %v138_v28, %v137_v27  ;;  %v110_v30 = vld [vmem:[#allocation2] sm:$0x3]  ;;  %v5196_v33 = vld [vmem:[#allocation8] ss:$0 sm:$0xff]  ;;  %v248_v49 = vld [vmem:[%s6105_s7 + $0x10] sm:$0xff]  ;;  %v363_v24 = vunpack.c.l.s4 %v5012_v22  ;;  %v365_v25 = vlaneseq }
  0x66   :  { %v246_v47 = vld [vmem:[%s6105_s7] sm:$0xff]  ;;  %v247_v48 = vld [vmem:[%s6105_s7 + $0x8] sm:$0xff]  ;;  %v249_v51 = vld [vmem:[%s6105_s7 + $0x18] sm:$0xff] }
  0x67   :  { %4398 = vmatpush3.bf16.msra.mxu0 %v5163_v11  ;;  %v5213_v50 = vpack.c.bf16 %v247_v48, %v246_v47  ;;  %v5219_v52 = vpack.c.bf16 %v249_v51, %v248_v49  ;;  %v250_v53 = vld [vmem:[%s6105_s7 + $0x20] sm:$0xff]  ;;  %v251_v54 = vld [vmem:[%s6105_s7 + $0x28] sm:$0xff]  ;;  %v252_v56 = vld [vmem:[%s6105_s7 + $0x30] sm:$0xff]  ;;  %v364_v27 = vunpack.c.0.s8 %v363_v24  ;;  %v366_v28 = vshrl.u32 %v365_v25, 7 }
  0x68   :  { %4399 = vmatprep.subr.bf16.mxu0 %v5008_v0  ;;  %v5229_v55 = vpack.c.bf16 %v251_v54, %v250_v53  ;;  %v253_v57 = vld [vmem:[%s6105_s7 + $0x38] sm:$0xff]  ;;  %v5253_v2 = vld [vmem:[#allocation10] ss:$0 sm:$0xff]  ;;  %v104_v53 = vld [vmem:[%s6101_s3] sm:$0x3] }
  0x69   :  { %4419 = vmatpush3.bf16.msra.mxu1 %v5213_v50  ;;  %v5240_v59 = vpack.c.bf16 %v253_v57, %v252_v56  ;;  %vm105_vm5 = vcmp.gt.f32.partialorder %v104_v53, 0.5  ;;  %v5293_v54 = vsub.s32 1, %v366_v28 }
  0x6a   :  { %4420 = vmatprep.subr.bf16.mxu1 %v5008_v0  ;;  %v106_v56 = vsel %vm105_vm5, -1e+30, %v5010_v1 }
  0x6b   :  { %4401 = vmatpush3.bf16.msra.mxu0 %v5167_v14  ;;  %v417_v57 = vrot.slane %v106_v56, %v5293_v54 }
  0x6c   :  { %4402 = vmatprep.subr.bf16.mxu0 %v5008_v0 }
  0x6d   :  { %4422 = vmatpush3.bf16.msra.mxu1 %v5219_v52 }
  0x6e   :  { %4423 = vmatprep.subr.bf16.mxu1 %v5008_v0 }
  0x6f   :  { %4404 = vmatpush3.bf16.msra.mxu0 %v5171_v17 }
  0x70   :  { %4405 = vmatprep.subr.bf16.mxu0 %v5008_v0 }
  0x71   :  { %4425 = vmatpush3.bf16.msra.mxu1 %v5229_v55 }
  0x72   :  { %4426 = vmatprep.subr.bf16.mxu1 %v5008_v0 }
  0x73   :  { %4407 = vmatpush3.bf16.msra.mxu0 %v5175_v20 }
  0x74   :  { %4408 = vmatprep.subr.bf16.mxu0 %v5008_v0 }
  0x75   :  { %4428 = vmatpush3.bf16.msra.mxu1 %v5240_v59 }
  0x76   :  { %4429 = vmatprep.subr.bf16.mxu1 %v5008_v0 }
  0x77   :  { %4410 = vmatpush3.bf16.msra.mxu0 %v5179_v23 }
  0x78   :  { %4411 = vmatprep.subr.bf16.mxu0 %v5008_v0 }
  0x7b   :  { %4413 = vmatpush3.bf16.msra.mxu0 %v5183_v26 }
  0x7c   :  { %4414 = vmatprep.subr.bf16.mxu0 %v5008_v0 }
  0x7f   :  { %4416 = vmatpush3.bf16.msra.mxu0 %v5187_v29 }
  0x80   :  { %3998 = vmatprep.subr.mxu0 %v5010_v1 }
  0xd5   :  { %v117_v31 = vpop.permute.xlu0 %116 }
  0xd6   :  { %v120_v32 = vsel %vm119_vm2, %v110_v30, %v117_v31 }
  0xd7   :  { %3958 = vmatmul.mubr.msk.f32.vlgmr.msra.gmra.mrb[0].mxu0 %vm121_vm3, %v120_v32  ;;  %v5264_v32 = vsub.s32 %v364_v27, %v366_v28 }
  0xd8   :  { %4000 = vmatprep.mubr.msk.f32.mxu0 %vm5009_vm0, %v5010_v1 }
 0x1aa   :  { %v212_v34 = vpop.f32.mrb[0].mxu0 }
 0x1ab   :  { %v213_v35 = vadd.f32 %v5196_v33, %v212_v34  ;;  %v3959_v36 = vpop.f32.mrb[1].mxu0 }
 0x1ac   :  { %v5268_v36 = vsub.s32 0, %v366_v28 }
 0x1ad   :  { %4702 = vtanh.f32 %v213_v35  ;;  %v3650_v38 = vmul.f32 -1.442695, %v213_v35 }
 0x1af   :  { %4704 = vpow2.f32 %v3650_v38 }
 0x1b7   :  { %v4703_v37 = vpop.eup %4702 }
 0x1b8   :  { %225 = vrot.lane.b32.xlu0 %v4703_v37, %s5011_s0 }
 0x1b9   :  { %v4705_v39 = vpop.eup %4704 }
 0x1ba   :  { %v219_v40 = vadd.f32 1.0, %v4705_v39 }
 0x1bc   :  { %4706 = vrcp.f32 %v219_v40 }
 0x1c6   :  { %v4707_v41 = vpop.eup %4706 }
 0x1c7   :  { %v223_v44 = vmul.f32 0.0, %v4707_v41 }
 0x22a   :  { %v226_v42 = vpop.permute.xlu0 %225 }
 0x22b   :  { %v228_v43 = vmul.f32 %v4707_v41, %v226_v42  ;;  %v5279_v42 = vld [vmem:[%s6099_s1] sm:$0xff] }
 0x22d   :  { %230 = vrot.lane.b32.xlu1 %v228_v43, %s5002_s6 }
 0x29f   :  { %v231_v45 = vpop.permute.xlu1 %230 }
 0x2a0   :  { %v5201_v46 = vadd.f32 %v231_v45, %v223_v44  ;;  %v5284_v44 = vld [vmem:[%s6099_s1 + $0x8] sm:$0xff] }
 0x2a2   :  { %4708 = vtanh.f32 %v5201_v46 }
 0x2ac   :  { %v4709_v58 = vpop.eup %4708 }
 0x2ad   :  { %236 = vrot.lane.b32.xlu1 %v4709_v58, %s5011_s0  ;;  %v410_v58 = vrot.slane %v106_v56, %v5268_v36  ;;  %v540_v56 = vld [vmem:[%s6107_s9] sm:$0xff] }
 0x31f   :  { %v237_v60 = vpop.permute.xlu1 %236 }
 0x320   :  { %v5245_v61 = vmul.f32 %v4707_v41, %v237_v60  ;;  %v5013_v60 = vmov 0  }
 0x321   :  { %4700 = vset.pattern.permute.xlu0 %v5013_v60  ;;  %4701 = vset.pattern.permute.xlu1 %v5013_v60 }
 0x322   :  { %241 = vrot.lane.b32.xlu0 %v5245_v61, %s5002_s6 }
 0x394   :  { %v242_v62 = vpop.permute.xlu0 %241 }
 0x395   :  { %v245_v63 = vsel %vm244_vm4, %v242_v62, 0.0 }
 0x396   :  { %3977 = vmatmul.mubr.msk.f32.vlgmr.msra.gmra.mrb[0].mxu1 %vm119_vm2, %v245_v63 }
 0x397   :  { %3995 = vmatprep.mubr.msk.f32.mxu1 %vm5009_vm0, %v5010_v1 }
 0x469   :  { %v330_v3 = vpop.f32.mrb[0].mxu1 }
 0x46a   :  { %v331_v4 = vadd.f32 %v5253_v2, %v330_v3  ;;  %v3978_v5 = vpop.f32.mrb[1].mxu1 }
 0x46c   :  { %4710 = vtanh.f32 %v331_v4  ;;  %v3653_v7 = vmul.f32 -1.442695, %v331_v4 }
 0x46e   :  { %4712 = vpow2.f32 %v3653_v7  ;;  %v434_v7 = vand.u32 127, %v365_v25 }
 0x476   :  { %v4711_v6 = vpop.eup %4710 }
 0x477   :  { %343 = vrot.lane.b32.xlu1 %v4711_v6, %s5011_s0 }
 0x478   :  { %v4713_v8 = vpop.eup %4712 }
 0x479   :  { %v337_v10 = vadd.f32 1.0, %v4713_v8  ;;  %v5304_v8 = vsub.s32 %v434_v7, %v366_v28 }
 0x47b   :  { %4714 = vrcp.f32 %v337_v10 }
 0x485   :  { %v4715_v12 = vpop.eup %4714 }
 0x486   :  { %v341_v16 = vmul.f32 0.0, %v4715_v12 }
 0x4e9   :  { %v344_v13 = vpop.permute.xlu1 %343 }
 0x4ea   :  { %v346_v15 = vmul.f32 %v4715_v12, %v344_v13 }
 0x4ec   :  { %348 = vrot.lane.b32.xlu0 %v346_v15, %s5002_s6 }
 0x55e   :  { %v349_v18 = vpop.permute.xlu0 %348 }
 0x55f   :  { %v5258_v19 = vadd.f32 %v349_v18, %v341_v16 }
 0x561   :  { %4716 = vtanh.f32 %v5258_v19 }
 0x56b   :  { %v4717_v21 = vpop.eup %4716 }
 0x56c   :  { %354 = vrot.lane.b32.xlu1 %v4717_v21, %s5011_s0 }
 0x5de   :  { %v355_v30 = vpop.permute.xlu1 %354 }
 0x5df   :  { %v5262_v31 = vmul.f32 %v4715_v12, %v355_v30 }
 0x5e1   :  { %v358_v34 = vmul.f32 0.17677669, %v5262_v31 }
 0x5e3   :  { %v368_v35 = vrot.slane %v358_v34, %v5264_v32 }
 0x5e5   :  { %v376_v37 = vrot.slane %v368_v35, %v5264_v32  ;;  %v369_v38 = vcombine.high %v368_v35, %v368_v35 }
 0x5e7   :  { %v387_v39 = vrot.slane %v376_v37, %v5268_v36  ;;  %v383_v40 = vrot.slane %v369_v38, %v5264_v32 }
 0x5e9   :  { %392 = vrot.lane.b32.xlu0 %v387_v39, %s5002_s6  ;;  %v391_v41 = vrot.slane %v383_v40, %v5268_v36 }
 0x5eb   :  { %394 = vrot.lane.b32.xlu1 %v391_v41, %s5002_s6 }
 0x65b   :  { %v393_v43 = vpop.permute.xlu0 %392 }
 0x65c   :  { %v398_v45 = vmul.f32 %v393_v43, %v5279_v42 }
 0x65d   :  { %v395_v47 = vpop.permute.xlu1 %394 }
 0x65e   :  { %v399_v48 = vmul.f32 %v395_v47, %v5284_v44  ;;  %v400_v49 = vsel %vm244_vm4, %v398_v45, 0.0 }
 0x65f   :  { %401 = vadd.xlane.f32.xlu0 %v400_v49 }
 0x660   :  { %v403_v51 = vsel %vm244_vm4, %v399_v48, 0.0 }
 0x661   :  { %404 = vadd.xlane.f32.xlu1 %v403_v51 }
 0x672   :  { %419 = vbcast.lane.b32.xlu1 %v417_v57, 256  ;;  %v541_v57 = vld [vmem:[%s6107_s9 + $0x8] sm:$0xff] }
 0x673   :  { %v5329_v60 = vpack.c.bf16 %v541_v57, %v540_v56 }
 0x675   :  { %412 = vbcast.lane.b32.xlu0 %v410_v58, 256  ;;  %v542_v58 = vld [vmem:[%s6107_s9 + $0x10] sm:$0xff]  ;;  %4431 = vmatpush3.bf16.msra.mxu1 %v5329_v60 }
 0x676   :  { %4432 = vmatprep.subr.bf16.mxu1 %v5008_v0 }
 0x6ec   :  { %v402_v62 = vpop.xlane.xlu0 %401 }
 0x6ee   :  { %v405_v63 = vpop.xlane.xlu1 %404 }
 0x6f0   :  { %v5298_v3 = vpop.permute.xlu0 %412 }
 0x6f1   :  { %v423_v4 = vadd.f32 %v5298_v3, %v402_v62  ;;  %v543_v62 = vld [vmem:[%s6107_s9 + $0x18] sm:$0xff] }
 0x6f2   :  { %v5301_v5 = vpop.permute.xlu1 %419 }
 0x6f3   :  { %428 = vperm.xlu0 %4700, %v423_v4   ;;  %v424_v6 = vadd.f32 %v5301_v5, %v405_v63  ;;  %v5335_v63 = vpack.c.bf16 %v543_v62, %v542_v58  ;;  %v719_v62 = vld [vmem:[#allocation2 + $0x2] sm:$0x3] }
 0x6f5   :  { %431 = vperm.xlu1 %4701, %v424_v6   ;;  %4434 = vmatpush3.bf16.msra.mxu1 %v5335_v63 }
 0x6f6   :  { %4435 = vmatprep.subr.bf16.mxu1 %v5008_v0 }
 0x772   :  { %v429_v10 = vpop.permute.xlu0 %428 }
 0x773   :  { %v438_v13 = vrot.slane %v429_v10, %v5304_v8  ;;  %v546_v10 = vld [vmem:[%s6107_s9 + $0x30] sm:$0xff] }
 0x774   :  { %v432_v12 = vpop.permute.xlu1 %431 }
 0x775   :  { %v442_v15 = vrot.slane %v432_v12, %v5304_v8  ;;  %v547_v12 = vld [vmem:[%s6107_s9 + $0x38] sm:$0xff] }
 0x777   :  { %v443_v16 = vsel %vm114_vm1, %v442_v15, %v438_v13  ;;  %v5355_v13 = vpack.c.bf16 %v547_v12, %v546_v10  ;;  %v5363_v15 = vld [vmem:[%s6100_s2 + $0x8] sm:$0xff]  ;;  %v5410_v12 = vld [vmem:[%s6108_s10] ss:$0 sm:$0xff] }
 0x778   :  { %v446_v18 = vsel %vm445_vm6, %v443_v16, -inf  ;;  %v5368_v16 = vld [vmem:[%s6100_s2] sm:$0xff] }
 0x779   :  { %447 = vmax.xlane.f32.xlu1 %v446_v18 }
 0x806   :  { %v448_v21 = vpop.xlane.xlu1 %447 }
 0x807   :  { %v453_v22 = vrot.slane %v448_v21, %v5268_v36  ;;  %v457_v24 = vrot.slane %v448_v21, %v5293_v54 }
 0x809   :  { %v460_v25 = vsub.f32 %v423_v4, %v453_v22  ;;  %v461_v27 = vsub.f32 %v424_v6, %v457_v24  ;;  %v544_v4 = vld [vmem:[%s6107_s9 + $0x20] sm:$0xff]  ;;  %v545_v6 = vld [vmem:[%s6107_s9 + $0x28] sm:$0xff] }
 0x80a   :  { %v5345_v7 = vpack.c.bf16 %v545_v6, %v544_v4 }
 0x80b   :  { %v462_v28 = vmul.f32 1.442695, %v460_v25  ;;  %v464_v30 = vmul.f32 1.442695, %v461_v27 }
 0x80c   :  { %4437 = vmatpush3.bf16.msra.mxu1 %v5345_v7 }
 0x80d   :  { %4718 = vpow2.f32 %v462_v28  ;;  %4438 = vmatprep.subr.bf16.mxu1 %v5008_v0 }
 0x80e   :  { %4720 = vpow2.f32 %v464_v30 }
 0x810   :  { %4440 = vmatpush3.bf16.msra.mxu1 %v5355_v13 }
 0x811   :  { %4441 = vmatprep.subr.bf16.mxu1 %v5008_v0 }
 0x817   :  { %v4719_v34 = vpop.eup %4718 }
 0x818   :  { %469 = vperm.xlu0 %4700, %v4719_v34   ;;  %v4721_v35 = vpop.eup %4720 }
 0x81c   :  { %472 = vperm.xlu0 %4700, %v4721_v35  }
 0x897   :  { %v470_v37 = vpop.permute.xlu0 %469 }
 0x898   :  { %v477_v39 = vrot.slane %v470_v37, %v5304_v8 }
 0x89b   :  { %v473_v38 = vpop.permute.xlu0 %472 }
 0x89c   :  { %v481_v40 = vrot.slane %v473_v38, %v5304_v8 }
 0x89e   :  { %v482_v41 = vsel %vm114_vm1, %v481_v40, %v477_v39 }
 0x89f   :  { %v484_v43 = vsel %vm445_vm6, %v482_v41, 0.0 }
 0x8a0   :  { %485 = vadd.xlane.f32.xlu0 %v484_v43 }
 0x92d   :  { %v486_v45 = vpop.xlane.xlu0 %485 }
 0x92e   :  { %4722 = vrcp.f32 %v486_v45 }
 0x938   :  { %v4723_v47 = vpop.eup %4722 }
 0x939   :  { %v496_v48 = vrot.slane %v4723_v47, %v5293_v54  ;;  %v492_v49 = vrot.slane %v4723_v47, %v5268_v36 }
 0x93b   :  { %v500_v51 = vmul.f32 %v4721_v35, %v496_v48  ;;  %v499_v53 = vmul.f32 %v4719_v34, %v492_v49 }
 0x93d   :  { %510 = vperm.xlu0 %4700, %v500_v51   ;;  %505 = vperm.xlu1 %4701, %v499_v53  }
 0x941   :  { %530 = vrot.lane.b32.xlu1 %v5262_v31, %s5002_s6 }
 0x9bc   :  { %v511_v18 = vpop.permute.xlu0 %510  ;;  %v506_v21 = vpop.permute.xlu1 %505 }
 0x9bd   :  { %v514_v22 = vmul.f32 %v511_v18, %v5363_v15  ;;  %v637_v24 = vrot.slane %v511_v18, %v5304_v8  ;;  %v513_v25 = vmul.f32 %v506_v21, %v5368_v16  ;;  %v633_v27 = vrot.slane %v506_v21, %v5304_v8 }
 0x9bf   :  { %v522_v28 = vsel %vm244_vm4, %v514_v22, 0.0  ;;  %v515_v30 = vsel %vm244_vm4, %v513_v25, 0.0  ;;  %v638_v34 = vsel %vm114_vm1, %v637_v24, %v633_v27 }
 0x9c0   :  { %v523_v35 = vrot.slane %v522_v28, 4  ;;  %v516_v37 = vrot.slane %v515_v30, 4  ;;  %3999 = vmatpush3.msk.msra.mxu0 %vm643_vm7, %v638_v34  ;;  %v531_v56 = vpop.permute.xlu1 %530 }
 0x9c1   :  { %4465 = vmatprep.subr.bf16.mxu0 %v5008_v0 }
 0x9c2   :  { %v524_v38 = vadd.f32 %v523_v35, %v522_v28  ;;  %v517_v39 = vadd.f32 %v516_v37, %v515_v30 }
 0x9c4   :  { %v525_v40 = vrot.slane %v524_v38, 2  ;;  %v518_v41 = vrot.slane %v517_v39, 2 }
 0x9c6   :  { %v519_v43 = vadd.f32 %v518_v41, %v517_v39  ;;  %v526_v45 = vadd.f32 %v525_v40, %v524_v38 }
 0x9c8   :  { %v520_v47 = vrot.slane %v519_v43, 1  ;;  %v527_v48 = vrot.slane %v526_v45, 1 }
 0x9ca   :  { %v521_v49 = vadd.f32 %v520_v47, %v519_v43  ;;  %v528_v51 = vadd.f32 %v527_v48, %v526_v45  ;;  %v5421_v43 = vld [vmem:[#allocation5] sm:$0x1] }
 0x9cb   :  { %4001 = vmatmul.mubr.msk.f32.vlgmr.msra.gmra.mrb[2].mxu0 %vm639_vm9, %v5421_v43 }
 0x9cc   :  { %v535_v53 = vsel %vm114_vm1, %v528_v51, %v521_v49  ;;  %4467 = vmatpush3.bf16.msra.mxu0 %v5213_v50  ;;  %4054 = vmatprep.mubr.msk.f32.mxu0 %vm5009_vm0, %v5010_v1 }
 0x9cd   :  { %536 = vrot.lane.b32.xlu1 %v535_v53, %s5002_s6  ;;  %4468 = vmatprep.subr.bf16.mxu0 %v5008_v0 }
 0x9d0   :  { %4470 = vmatpush3.bf16.msra.mxu0 %v5219_v52 }
 0x9d1   :  { %720 = vrot.lane.b32.xlu1 %v535_v53, %s5011_s0  ;;  %4471 = vmatprep.subr.bf16.mxu0 %v5008_v0 }
 0x9d4   :  { %4473 = vmatpush3.bf16.msra.mxu0 %v5229_v55 }
 0x9d5   :  { %4474 = vmatprep.subr.bf16.mxu0 %v5008_v0 }
 0x9d8   :  { %4476 = vmatpush3.bf16.msra.mxu0 %v5240_v59 }
 0x9d9   :  { %4477 = vmatprep.subr.bf16.mxu0 %v5008_v0 }
 0xa3f   :  { %v537_v57 = vpop.permute.xlu1 %536 }
 0xa40   :  { %v539_v58 = vsel %vm244_vm4, %v531_v56, %v537_v57 }
 0xa41   :  { %3996 = vmatmul.mubr.msk.f32.vlgmr.msra.gmra.mrb[2].mxu1 %vm119_vm2, %v539_v58 }
 0xa42   :  { %4443 = vmatpush3.bf16.msra.mxu1 %v5158_v9  ;;  %4035 = vmatprep.mubr.msk.f32.mxu1 %vm5009_vm0, %v5010_v1 }
 0xa43   :  { %4444 = vmatprep.subr.bf16.mxu1 %v5008_v0  ;;  %v721_v4 = vpop.permute.xlu1 %720 }
 0xa44   :  { %v723_v6 = vsel %vm119_vm2, %v719_v62, %v721_v4 }
 0xa45   :  { %v724_v10 = vsel %vm121_vm3, %v723_v6, %v5245_v61 }
 0xa46   :  { %4446 = vmatpush3.bf16.msra.mxu1 %v5163_v11 }
 0xa47   :  { %4447 = vmatprep.subr.bf16.mxu1 %v5008_v0 }
 0xa4a   :  { %4449 = vmatpush3.bf16.msra.mxu1 %v5167_v14 }
 0xa4b   :  { %4450 = vmatprep.subr.bf16.mxu1 %v5008_v0 }
 0xa4e   :  { %4452 = vmatpush3.bf16.msra.mxu1 %v5171_v17 }
 0xa4f   :  { %4453 = vmatprep.subr.bf16.mxu1 %v5008_v0 }
 0xa52   :  { %4455 = vmatpush3.bf16.msra.mxu1 %v5175_v20 }
 0xa53   :  { %4456 = vmatprep.subr.bf16.mxu1 %v5008_v0 }
 0xa56   :  { %4458 = vmatpush3.bf16.msra.mxu1 %v5179_v23 }
 0xa57   :  { %4459 = vmatprep.subr.bf16.mxu1 %v5008_v0 }
 0xa5a   :  { %4461 = vmatpush3.bf16.msra.mxu1 %v5183_v26 }
 0xa5b   :  { %4462 = vmatprep.subr.bf16.mxu1 %v5008_v0 }
 0xa5e   :  { %4464 = vmatpush3.bf16.msra.mxu1 %v5187_v29 }
 0xa5f   :  { %4076 = vmatprep.subr.mxu1 %v5010_v1 }
 0xa61   :  { %4036 = vmatmul.mubr.f32.vlgmr.msra.gmra.mrb[4].mxu1 %v724_v10 }
 0xa62   :  { %4078 = vmatprep.mubr.msk.f32.mxu1 %vm5009_vm0, %v5010_v1 }
 0xa9e   :  { %v712_v48 = vpop.f32.mrb[2].mxu0 }
 0xa9f   :  { %717 = vst.msk [vmem:[#allocation12] sm:$0x1] %vm716_vm10, %v712_v48  ;;  %v4002_v49 = vpop.f32.mrb[3].mxu0 }
 0xb14   :  { %v624_v18 = vpop.f32.mrb[2].mxu1 }
 0xb15   :  { %v625_v21 = vadd.f32 %v5410_v12, %v624_v18  ;;  %v3997_v22 = vpop.f32.mrb[3].mxu1 }
 0xb17   :  { %629 = vst.msk [vmem:[#allocation11] sm:$0x3] %vm628_vm8, %v625_v21 }
 0xb34   :  { %v814_v24 = vpop.f32.mrb[4].mxu1 }
 0xb35   :  { %v815_v25 = vadd.f32 %v5196_v33, %v814_v24  ;;  %v4037_v61 = vpop.f32.mrb[5].mxu1 }
 0xb37   :  { %4724 = vtanh.f32 %v815_v25  ;;  %v3659_v28 = vmul.f32 -1.442695, %v815_v25 }
 0xb39   :  { %4726 = vpow2.f32 %v3659_v28 }
 0xb41   :  { %v4725_v27 = vpop.eup %4724 }
 0xb42   :  { %827 = vrot.lane.b32.xlu0 %v4725_v27, %s5011_s0 }
 0xb43   :  { %v4727_v30 = vpop.eup %4726 }
 0xb44   :  { %v821_v34 = vadd.f32 1.0, %v4727_v30 }
 0xb46   :  { %4728 = vrcp.f32 %v821_v34 }
 0xb50   :  { %v4729_v35 = vpop.eup %4728 }
 0xb51   :  { %v825_v39 = vmul.f32 %v4729_v35, %v5201_v46 }
 0xbb4   :  { %v828_v37 = vpop.permute.xlu0 %827 }
 0xbb5   :  { %v830_v38 = vmul.f32 %v4729_v35, %v828_v37 }
 0xbb7   :  { %832 = vrot.lane.b32.xlu1 %v830_v38, %s5002_s6 }
 0xc29   :  { %v833_v40 = vpop.permute.xlu1 %832 }
 0xc2a   :  { %v5418_v41 = vadd.f32 %v833_v40, %v825_v39 }
 0xc2c   :  { %4730 = vtanh.f32 %v5418_v41 }
 0xc36   :  { %v4731_v46 = vpop.eup %4730 }
 0xc37   :  { %838 = vrot.lane.b32.xlu0 %v4731_v46, %s5011_s0 }
 0xc3b   :  { %846 = vrot.lane.b32.xlu0 %v5262_v31, %s5011_s0 }
 0xca9   :  { %v839_v45 = vpop.permute.xlu0 %838 }
 0xcaa   :  { %v5438_v47 = vmul.f32 %v4729_v35, %v839_v45 }
 0xcac   :  { %843 = vrot.lane.b32.xlu1 %v5438_v47, %s5002_s6 }
 0xcad   :  { %v847_v51 = vpop.permute.xlu0 %846 }
 0xd1e   :  { %v844_v53 = vpop.permute.xlu1 %843 }
 0xd1f   :  { %v849_v56 = vsel %vm244_vm4, %v844_v53, %v847_v51 }
 0xd20   :  { %4055 = vmatmul.mubr.msk.f32.vlgmr.msra.gmra.mrb[4].mxu0 %vm119_vm2, %v849_v56 }
 0xd21   :  { %4479 = vmatpush3.bf16.msra.mxu0 %v5329_v60  ;;  %4073 = vmatprep.mubr.msk.f32.mxu0 %vm5009_vm0, %v5010_v1 }
 0xd22   :  { %4480 = vmatprep.subr.bf16.mxu0 %v5008_v0 }
 0xd25   :  { %4482 = vmatpush3.bf16.msra.mxu0 %v5335_v63 }
 0xd26   :  { %4483 = vmatprep.subr.bf16.mxu0 %v5008_v0 }
 0xd29   :  { %4485 = vmatpush3.bf16.msra.mxu0 %v5345_v7 }
 0xd2a   :  { %4486 = vmatprep.subr.bf16.mxu0 %v5008_v0 }
 0xd2d   :  { %4488 = vmatpush3.bf16.msra.mxu0 %v5355_v13 }
 0xd2e   :  { %4489 = vmatprep.subr.bf16.mxu0 %v5008_v0 }
 0xdf3   :  { %v934_v31 = vpop.f32.mrb[4].mxu0 }
 0xdf4   :  { %v935_v57 = vadd.f32 %v5253_v2, %v934_v31  ;;  %v4056_v58 = vpop.f32.mrb[5].mxu0 }
 0xdf6   :  { %4732 = vtanh.f32 %v935_v57  ;;  %v3662_v4 = vmul.f32 -1.442695, %v935_v57 }
 0xdf8   :  { %4734 = vpow2.f32 %v3662_v4 }
 0xe00   :  { %v4733_v62 = vpop.eup %4732 }
 0xe01   :  { %947 = vrot.lane.b32.xlu1 %v4733_v62, %s5011_s0 }
 0xe02   :  { %v4735_v6 = vpop.eup %4734 }
 0xe03   :  { %v941_v10 = vadd.f32 1.0, %v4735_v6 }
 0xe05   :  { %4736 = vrcp.f32 %v941_v10 }
 0xe0f   :  { %v4737_v18 = vpop.eup %4736 }
 0xe10   :  { %v945_v24 = vmul.f32 %v4737_v18, %v5258_v19 }
 0xe73   :  { %v948_v21 = vpop.permute.xlu1 %947 }
 0xe74   :  { %v950_v22 = vmul.f32 %v4737_v18, %v948_v21 }
 0xe76   :  { %952 = vrot.lane.b32.xlu0 %v950_v22, %s5002_s6 }
 0xee8   :  { %v953_v25 = vpop.permute.xlu0 %952 }
 0xee9   :  { %v5459_v61 = vadd.f32 %v953_v25, %v945_v24 }
 0xeeb   :  { %4738 = vtanh.f32 %v5459_v61 }
 0xef5   :  { %v4739_v27 = vpop.eup %4738 }
 0xef6   :  { %958 = vrot.lane.b32.xlu1 %v4739_v27, %s5011_s0 }
 0xf68   :  { %v959_v28 = vpop.permute.xlu1 %958 }
 0xf69   :  { %v5463_v30 = vmul.f32 %v4737_v18, %v959_v28 }
 0xf6b   :  { %v962_v34 = vmul.f32 0.17677669, %v5463_v30 }
 0xf6d   :  { %v972_v35 = vrot.slane %v962_v34, %v5264_v32 }
 0xf6f   :  { %v980_v37 = vrot.slane %v972_v35, %v5264_v32  ;;  %v973_v38 = vcombine.high %v972_v35, %v972_v35 }
 0xf71   :  { %v991_v19 = vrot.slane %v980_v37, %v5268_v36  ;;  %v987_v39 = vrot.slane %v973_v38, %v5264_v32 }
 0xf73   :  { %996 = vrot.lane.b32.xlu0 %v991_v19, %s5002_s6  ;;  %v995_v40 = vrot.slane %v987_v39, %v5268_v36 }
 0xf75   :  { %998 = vrot.lane.b32.xlu1 %v995_v40, %s5002_s6 }
 0xfe5   :  { %v997_v46 = vpop.permute.xlu0 %996 }
 0xfe6   :  { %v1002_v45 = vmul.f32 %v997_v46, %v5279_v42 }
 0xfe7   :  { %v999_v48 = vpop.permute.xlu1 %998 }
 0xfe8   :  { %v1003_v49 = vmul.f32 %v999_v48, %v5284_v44  ;;  %v1004_v51 = vsel %vm244_vm4, %v1002_v45, 0.0 }
 0xfe9   :  { %1005 = vadd.xlane.f32.xlu0 %v1004_v51 }
 0xfea   :  { %v1007_v53 = vsel %vm244_vm4, %v1003_v49, 0.0 }
 0xfeb   :  { %1008 = vadd.xlane.f32.xlu1 %v1007_v53 }
0x1076   :  { %v1006_v56 = vpop.xlane.xlu0 %1005 }
0x1077   :  { %v1010_v31 = vadd.f32 %v1006_v56, %v5298_v3 }
0x1078   :  { %v1009_v57 = vpop.xlane.xlu1 %1008 }
0x1079   :  { %v1011_v58 = vadd.f32 %v1009_v57, %v5301_v5  ;;  %1015 = vperm.xlu0 %4700, %v1010_v31  }
0x107b   :  { %1018 = vperm.xlu1 %4701, %v1011_v58  }
0x10f8   :  { %v1016_v62 = vpop.permute.xlu0 %1015 }
0x10f9   :  { %v1023_v6 = vrot.slane %v1016_v62, %v5304_v8 }
0x10fa   :  { %v1019_v4 = vpop.permute.xlu1 %1018 }
0x10fb   :  { %v1027_v10 = vrot.slane %v1019_v4, %v5304_v8 }
0x10fd   :  { %v1028_v18 = vsel %vm114_vm1, %v1027_v10, %v1023_v6 }
0x10fe   :  { %v1030_v21 = vsel %vm445_vm6, %v1028_v18, -inf }
0x10ff   :  { %1031 = vmax.xlane.f32.xlu0 %v1030_v21 }
0x118c   :  { %v1032_v22 = vpop.xlane.xlu0 %1031 }
0x118d   :  { %v1037_v24 = vrot.slane %v1032_v22, %v5268_v36  ;;  %v1041_v25 = vrot.slane %v1032_v22, %v5293_v54 }
0x118f   :  { %v1044_v27 = vsub.f32 %v1010_v31, %v1037_v24  ;;  %v1045_v28 = vsub.f32 %v1011_v58, %v1041_v25 }
0x1191   :  { %v1046_v34 = vmul.f32 1.442695, %v1044_v27  ;;  %v1048_v35 = vmul.f32 1.442695, %v1045_v28 }
0x1193   :  { %4740 = vpow2.f32 %v1046_v34 }
0x1194   :  { %4742 = vpow2.f32 %v1048_v35 }
0x119d   :  { %v4741_v37 = vpop.eup %4740 }
0x119e   :  { %1053 = vperm.xlu1 %4701, %v4741_v37   ;;  %v4743_v38 = vpop.eup %4742 }
0x11a2   :  { %1056 = vperm.xlu1 %4701, %v4743_v38  }
0x121d   :  { %v1054_v19 = vpop.permute.xlu1 %1053 }
0x121e   :  { %v1061_v40 = vrot.slane %v1054_v19, %v5304_v8 }
0x1221   :  { %v1057_v39 = vpop.permute.xlu1 %1056 }
0x1222   :  { %v1065_v46 = vrot.slane %v1057_v39, %v5304_v8 }
0x1224   :  { %v1066_v45 = vsel %vm114_vm1, %v1065_v46, %v1061_v40 }
0x1225   :  { %v1068_v48 = vsel %vm445_vm6, %v1066_v45, 0.0 }
0x1226   :  { %1069 = vadd.xlane.f32.xlu1 %v1068_v48 }
0x12b3   :  { %v1070_v49 = vpop.xlane.xlu1 %1069 }
0x12b4   :  { %4744 = vrcp.f32 %v1070_v49 }
0x12be   :  { %v4745_v51 = vpop.eup %4744 }
0x12bf   :  { %v1080_v53 = vrot.slane %v4745_v51, %v5293_v54  ;;  %v1076_v56 = vrot.slane %v4745_v51, %v5268_v36 }
0x12c1   :  { %v1084_v31 = vmul.f32 %v4743_v38, %v1080_v53  ;;  %v1083_v57 = vmul.f32 %v4741_v37, %v1076_v56 }
0x12c3   :  { %1094 = vperm.xlu1 %4701, %v1084_v31   ;;  %1089 = vperm.xlu0 %4700, %v1083_v57  }
0x12c7   :  { %1114 = vrot.lane.b32.xlu0 %v5463_v30, %s5002_s6 }
0x1342   :  { %v1095_v58 = vpop.permute.xlu1 %1094  ;;  %v1090_v62 = vpop.permute.xlu0 %1089 }
0x1343   :  { %v1098_v4 = vmul.f32 %v1095_v58, %v5363_v15  ;;  %v1221_v6 = vrot.slane %v1095_v58, %v5304_v8  ;;  %v1097_v10 = vmul.f32 %v1090_v62, %v5368_v16  ;;  %v1217_v18 = vrot.slane %v1090_v62, %v5304_v8 }
0x1345   :  { %v1106_v21 = vsel %vm244_vm4, %v1098_v4, 0.0  ;;  %v1099_v22 = vsel %vm244_vm4, %v1097_v10, 0.0  ;;  %v1222_v24 = vsel %vm114_vm1, %v1221_v6, %v1217_v18 }
0x1346   :  { %v1107_v25 = vrot.slane %v1106_v21, 4  ;;  %v1100_v27 = vrot.slane %v1099_v22, 4  ;;  %4077 = vmatpush3.msk.msra.mxu1 %vm643_vm7, %v1222_v24 }
0x1347   :  { %4079 = vmatmul.mubr.msk.f32.vlgmr.msra.gmra.mrb[6].mxu1 %vm639_vm9, %v5421_v43  ;;  %4513 = vmatprep.subr.bf16.mxu1 %v5008_v0 }
0x1348   :  { %v1108_v28 = vadd.f32 %v1107_v25, %v1106_v21  ;;  %v1101_v34 = vadd.f32 %v1100_v27, %v1099_v22  ;;  %4515 = vmatpush3.bf16.msra.mxu1 %v5213_v50  ;;  %4132 = vmatprep.mubr.msk.f32.mxu1 %vm5009_vm0, %v5010_v1 }
0x1349   :  { %4516 = vmatprep.subr.bf16.mxu1 %v5008_v0 }
0x134a   :  { %v1109_v35 = vrot.slane %v1108_v28, 2  ;;  %v1102_v37 = vrot.slane %v1101_v34, 2 }
0x134c   :  { %v1110_v38 = vadd.f32 %v1109_v35, %v1108_v28  ;;  %v1103_v19 = vadd.f32 %v1102_v37, %v1101_v34  ;;  %4518 = vmatpush3.bf16.msra.mxu1 %v5219_v52  ;;  %v1115_v52 = vpop.permute.xlu0 %1114 }
0x134d   :  { %4519 = vmatprep.subr.bf16.mxu1 %v5008_v0 }
0x134e   :  { %v1104_v39 = vrot.slane %v1103_v19, 1  ;;  %v1111_v40 = vrot.slane %v1110_v38, 1 }
0x1350   :  { %v1105_v46 = vadd.f32 %v1104_v39, %v1103_v19  ;;  %v1112_v45 = vadd.f32 %v1111_v40, %v1110_v38  ;;  %4521 = vmatpush3.bf16.msra.mxu1 %v5229_v55 }
0x1351   :  { %4522 = vmatprep.subr.bf16.mxu1 %v5008_v0 }
0x1352   :  { %v1119_v50 = vsel %vm114_vm1, %v1112_v45, %v1105_v46 }
0x1353   :  { %1120 = vrot.lane.b32.xlu0 %v1119_v50, %s5002_s6 }
0x1354   :  { %4524 = vmatpush3.bf16.msra.mxu1 %v5240_v59 }
0x1355   :  { %4525 = vmatprep.subr.bf16.mxu1 %v5008_v0 }
0x1357   :  { %1299 = vrot.lane.b32.xlu0 %v1119_v50, %s5011_s0 }
0x13c5   :  { %v1121_v48 = vpop.permute.xlu0 %1120 }
0x13c6   :  { %v1123_v49 = vsel %vm244_vm4, %v1115_v52, %v1121_v48 }
0x13c7   :  { %4074 = vmatmul.mubr.msk.f32.vlgmr.msra.gmra.mrb[6].mxu0 %vm119_vm2, %v1123_v49 }
0x13c8   :  { %4491 = vmatpush3.bf16.msra.mxu0 %v5158_v9  ;;  %4113 = vmatprep.mubr.msk.f32.mxu0 %vm5009_vm0, %v5010_v1  ;;  %v1298_v9 = vld [vmem:[#allocation2 + $0x4] sm:$0x3] }
0x13c9   :  { %4492 = vmatprep.subr.bf16.mxu0 %v5008_v0 }
0x13cc   :  { %4494 = vmatpush3.bf16.msra.mxu0 %v5163_v11  ;;  %v1300_v11 = vpop.permute.xlu0 %1299 }
0x13cd   :  { %4495 = vmatprep.subr.bf16.mxu0 %v5008_v0 }
0x13d0   :  { %4497 = vmatpush3.bf16.msra.mxu0 %v5167_v14  ;;  %v1302_v14 = vsel %vm119_vm2, %v1298_v9, %v1300_v11 }
0x13d1   :  { %4498 = vmatprep.subr.bf16.mxu0 %v5008_v0 }
0x13d4   :  { %4500 = vmatpush3.bf16.msra.mxu0 %v5171_v17  ;;  %v1303_v17 = vsel %vm121_vm3, %v1302_v14, %v5438_v47 }
0x13d5   :  { %4501 = vmatprep.subr.bf16.mxu0 %v5008_v0 }
0x13d8   :  { %4503 = vmatpush3.bf16.msra.mxu0 %v5175_v20 }
0x13d9   :  { %4504 = vmatprep.subr.bf16.mxu0 %v5008_v0 }
0x13dc   :  { %4506 = vmatpush3.bf16.msra.mxu0 %v5179_v23 }
0x13dd   :  { %4507 = vmatprep.subr.bf16.mxu0 %v5008_v0 }
0x13e0   :  { %4509 = vmatpush3.bf16.msra.mxu0 %v5183_v26 }
0x13e1   :  { %4510 = vmatprep.subr.bf16.mxu0 %v5008_v0 }
0x13e4   :  { %4512 = vmatpush3.bf16.msra.mxu0 %v5187_v29 }
0x13e5   :  { %4154 = vmatprep.subr.mxu0 %v5010_v1 }
0x13e7   :  { %4114 = vmatmul.mubr.f32.vlgmr.msra.gmra.mrb[8].mxu0 %v1303_v17 }
0x13e8   :  { %4156 = vmatprep.mubr.msk.f32.mxu0 %vm5009_vm0, %v5010_v1 }
0x141a   :  { %v1291_v10 = vpop.f32.mrb[6].mxu1 }
0x141b   :  { %1296 = vst.msk [vmem:[#allocation12 + $0x1] sm:$0x1] %vm716_vm10, %v1291_v10  ;;  %v4080_v18 = vpop.f32.mrb[7].mxu1 }
0x149a   :  { %v1208_v20 = vpop.f32.mrb[6].mxu0 }
0x149b   :  { %v1209_v23 = vadd.f32 %v5410_v12, %v1208_v20  ;;  %v4075_v55 = vpop.f32.mrb[7].mxu0 }
0x149d   :  { %1213 = vst.msk [vmem:[#allocation11 + $0x2] sm:$0x3] %vm628_vm8, %v1209_v23 }
0x14ba   :  { %v1393_v26 = vpop.f32.mrb[8].mxu0 }
0x14bb   :  { %v1394_v59 = vadd.f32 %v5196_v33, %v1393_v26  ;;  %v4115_v51 = vpop.f32.mrb[9].mxu0 }
0x14bd   :  { %4746 = vtanh.f32 %v1394_v59  ;;  %v3668_v53 = vmul.f32 -1.442695, %v1394_v59 }
0x14bf   :  { %4748 = vpow2.f32 %v3668_v53 }
0x14c7   :  { %v4747_v29 = vpop.eup %4746 }
0x14c8   :  { %1406 = vrot.lane.b32.xlu1 %v4747_v29, %s5011_s0 }
0x14c9   :  { %v4749_v47 = vpop.eup %4748 }
0x14ca   :  { %v1400_v56 = vadd.f32 1.0, %v4749_v47 }
0x14cc   :  { %4750 = vrcp.f32 %v1400_v56 }
0x14d6   :  { %v4751_v31 = vpop.eup %4750 }
0x14d7   :  { %v1404_v62 = vmul.f32 %v4751_v31, %v5418_v41 }
0x153a   :  { %v1407_v57 = vpop.permute.xlu1 %1406 }
0x153b   :  { %v1409_v58 = vmul.f32 %v4751_v31, %v1407_v57 }
0x153d   :  { %1411 = vrot.lane.b32.xlu0 %v1409_v58, %s5002_s6 }
0x15af   :  { %v1412_v4 = vpop.permute.xlu0 %1411 }
0x15b0   :  { %v5548_v6 = vadd.f32 %v1412_v4, %v1404_v62 }
0x15b2   :  { %4752 = vtanh.f32 %v5548_v6 }
0x15bc   :  { %v4753_v33 = vpop.eup %4752 }
0x15bd   :  { %1417 = vrot.lane.b32.xlu1 %v4753_v33, %s5011_s0 }
0x15c1   :  { %1425 = vrot.lane.b32.xlu1 %v5463_v30, %s5011_s0 }
0x162f   :  { %v1418_v21 = vpop.permute.xlu1 %1417 }
0x1630   :  { %v5555_v22 = vmul.f32 %v4751_v31, %v1418_v21 }
0x1632   :  { %1422 = vrot.lane.b32.xlu0 %v5555_v22, %s5002_s6 }
0x1633   :  { %v1426_v41 = vpop.permute.xlu1 %1425 }
0x16a4   :  { %v1423_v24 = vpop.permute.xlu0 %1422 }
0x16a5   :  { %v1428_v25 = vsel %vm244_vm4, %v1423_v24, %v1426_v41 }
0x16a6   :  { %4133 = vmatmul.mubr.msk.f32.vlgmr.msra.gmra.mrb[8].mxu1 %vm119_vm2, %v1428_v25 }
0x16a7   :  { %4527 = vmatpush3.bf16.msra.mxu1 %v5329_v60  ;;  %4151 = vmatprep.mubr.msk.f32.mxu1 %vm5009_vm0, %v5010_v1 }
0x16a8   :  { %4528 = vmatprep.subr.bf16.mxu1 %v5008_v0 }
0x16ab   :  { %4530 = vmatpush3.bf16.msra.mxu1 %v5335_v63 }
0x16ac   :  { %4531 = vmatprep.subr.bf16.mxu1 %v5008_v0 }
0x16af   :  { %4533 = vmatpush3.bf16.msra.mxu1 %v5345_v7 }
0x16b0   :  { %4534 = vmatprep.subr.bf16.mxu1 %v5008_v0 }
0x16b3   :  { %4536 = vmatpush3.bf16.msra.mxu1 %v5355_v13 }
0x16b4   :  { %4537 = vmatprep.subr.bf16.mxu1 %v5008_v0 }
0x1779   :  { %v1513_v30 = vpop.f32.mrb[8].mxu1 }
0x177a   :  { %v1514_v60 = vadd.f32 %v5253_v2, %v1513_v30  ;;  %v4134_v27 = vpop.f32.mrb[9].mxu1 }
0x177c   :  { %4754 = vtanh.f32 %v1514_v60  ;;  %v3671_v34 = vmul.f32 -1.442695, %v1514_v60 }
0x177e   :  { %4756 = vpow2.f32 %v3671_v34 }
0x1786   :  { %v4755_v28 = vpop.eup %4754 }
0x1787   :  { %1526 = vrot.lane.b32.xlu0 %v4755_v28, %s5011_s0 }
0x1788   :  { %v4757_v63 = vpop.eup %4756 }
0x1789   :  { %v1520_v35 = vadd.f32 1.0, %v4757_v63 }
0x178b   :  { %4758 = vrcp.f32 %v1520_v35 }
0x1795   :  { %v4759_v7 = vpop.eup %4758 }
0x1796   :  { %v1524_v13 = vmul.f32 %v4759_v7, %v5459_v61 }
0x17f9   :  { %v1527_v37 = vpop.permute.xlu0 %1526 }
0x17fa   :  { %v1529_v38 = vmul.f32 %v4759_v7, %v1527_v37 }
0x17fc   :  { %1531 = vrot.lane.b32.xlu1 %v1529_v38, %s5002_s6 }
0x186e   :  { %v1532_v19 = vpop.permute.xlu1 %1531 }
0x186f   :  { %v5575_v39 = vadd.f32 %v1532_v19, %v1524_v13 }
0x1871   :  { %4760 = vtanh.f32 %v5575_v39 }
0x187b   :  { %v4761_v2 = vpop.eup %4760 }
0x187c   :  { %1537 = vrot.lane.b32.xlu0 %v4761_v2, %s5011_s0 }
0x18ee   :  { %v1538_v40 = vpop.permute.xlu0 %1537 }
0x18ef   :  { %v5579_v46 = vmul.f32 %v4759_v7, %v1538_v40 }
0x18f1   :  { %v1541_v45 = vmul.f32 0.17677669, %v5579_v46 }
0x18f3   :  { %v1551_v50 = vrot.slane %v1541_v45, %v5264_v32 }
0x18f5   :  { %v1559_v52 = vrot.slane %v1551_v50, %v5264_v32  ;;  %v1552_v48 = vcombine.high %v1551_v50, %v1551_v50 }
0x18f7   :  { %v1570_v61 = vrot.slane %v1559_v52, %v5268_v36  ;;  %v1566_v49 = vrot.slane %v1552_v48, %v5264_v32 }
0x18f9   :  { %1575 = vrot.lane.b32.xlu1 %v1570_v61, %s5002_s6  ;;  %v1574_v9 = vrot.slane %v1566_v49, %v5268_v36 }
0x18fb   :  { %1577 = vrot.lane.b32.xlu0 %v1574_v9, %s5002_s6 }
0x196b   :  { %v1576_v11 = vpop.permute.xlu1 %1575 }
0x196c   :  { %v1581_v14 = vmul.f32 %v1576_v11, %v5279_v42 }
0x196d   :  { %v1578_v17 = vpop.permute.xlu0 %1577 }
0x196e   :  { %v1582_v20 = vmul.f32 %v1578_v17, %v5284_v44  ;;  %v1583_v23 = vsel %vm244_vm4, %v1581_v14, 0.0 }
0x196f   :  { %1584 = vadd.xlane.f32.xlu1 %v1583_v23 }
0x1970   :  { %v1586_v55 = vsel %vm244_vm4, %v1582_v20, 0.0 }
0x1971   :  { %1587 = vadd.xlane.f32.xlu0 %v1586_v55 }
0x19fc   :  { %v1585_v26 = vpop.xlane.xlu1 %1584 }
0x19fd   :  { %v1589_v59 = vadd.f32 %v1585_v26, %v5298_v3 }
0x19fe   :  { %v1588_v51 = vpop.xlane.xlu0 %1587 }
0x19ff   :  { %v1590_v29 = vadd.f32 %v1588_v51, %v5301_v5  ;;  %1594 = vperm.xlu0 %4700, %v1589_v59  }
0x1a01   :  { %1597 = vperm.xlu1 %4701, %v1590_v29  }
0x1a7e   :  { %v1595_v53 = vpop.permute.xlu0 %1594 }
0x1a7f   :  { %v1602_v42 = vrot.slane %v1595_v53, %v5304_v8  ;;  %v1884_v53 = vld [vmem:[#allocation7 + $0x8] sm:$0xff] }
0x1a80   :  { %v1598_v47 = vpop.permute.xlu1 %1597 }
0x1a81   :  { %v1606_v44 = vrot.slane %v1598_v47, %v5304_v8 }
0x1a83   :  { %v1607_v56 = vsel %vm114_vm1, %v1606_v44, %v1602_v42  ;;  %v1885_v44 = vld [vmem:[#allocation7 + $0x10] sm:$0xff] }
0x1a84   :  { %v1609_v31 = vsel %vm445_vm6, %v1607_v56, -inf  ;;  %v1886_v56 = vld [vmem:[#allocation7 + $0x18] sm:$0xff] }
0x1a85   :  { %1610 = vmax.xlane.f32.xlu1 %v1609_v31 }
0x1b12   :  { %v1611_v57 = vpop.xlane.xlu1 %1610 }
0x1b13   :  { %v1616_v58 = vrot.slane %v1611_v57, %v5268_v36  ;;  %v1620_v62 = vrot.slane %v1611_v57, %v5293_v54  ;;  %v5630_v57 = vpack.c.bf16 %v1886_v56, %v1885_v44  ;;  %v2015_v44 = vld [vmem:[%s6105_s7 + $0x38] sm:$0xff] }
0x1b15   :  { %v1623_v4 = vsub.f32 %v1589_v59, %v1616_v58  ;;  %v1624_v33 = vsub.f32 %v1590_v29, %v1620_v62  ;;  %v1883_v29 = vld [vmem:[#allocation7] sm:$0xff]  ;;  %v1888_v62 = vld [vmem:[#allocation7 + $0x28] sm:$0xff] }
0x1b16   :  { %v5625_v47 = vpack.c.bf16 %v1884_v53, %v1883_v29  ;;  %v1887_v58 = vld [vmem:[#allocation7 + $0x20] sm:$0xff] }
0x1b17   :  { %v1625_v10 = vmul.f32 1.442695, %v1623_v4  ;;  %v1627_v18 = vmul.f32 1.442695, %v1624_v33  ;;  %v5636_v4 = vpack.c.bf16 %v1888_v62, %v1887_v58  ;;  %v1889_v33 = vld [vmem:[#allocation7 + $0x30] sm:$0xff]  ;;  %v2013_v29 = vld [vmem:[%s6105_s7 + $0x28] sm:$0xff] }
0x1b19   :  { %4762 = vpow2.f32 %v1625_v10  ;;  %v1890_v10 = vld [vmem:[#allocation7 + $0x38] sm:$0xff] }
0x1b1a   :  { %4764 = vpow2.f32 %v1627_v18  ;;  %v5640_v18 = vpack.c.bf16 %v1890_v10, %v1889_v33 }
0x1b23   :  { %v4763_v21 = vpop.eup %4762 }
0x1b24   :  { %1632 = vperm.xlu0 %4700, %v4763_v21   ;;  %v4765_v41 = vpop.eup %4764 }
0x1b28   :  { %1635 = vperm.xlu0 %4700, %v4765_v41  }
0x1ba3   :  { %v1633_v24 = vpop.permute.xlu0 %1632 }
0x1ba4   :  { %v1640_v30 = vrot.slane %v1633_v24, %v5304_v8 }
0x1ba7   :  { %v1636_v25 = vpop.permute.xlu0 %1635 }
0x1ba8   :  { %v1644_v60 = vrot.slane %v1636_v25, %v5304_v8  ;;  %v1893_v25 = vld [vmem:[#allocation7 + $0x50] sm:$0xff] }
0x1baa   :  { %v1645_v27 = vsel %vm114_vm1, %v1644_v60, %v1640_v30  ;;  %v1894_v30 = vld [vmem:[#allocation7 + $0x58] sm:$0xff] }
0x1bab   :  { %v1647_v28 = vsel %vm445_vm6, %v1645_v27, 0.0  ;;  %v5648_v60 = vpack.c.bf16 %v1894_v30, %v1893_v25  ;;  %v1895_v27 = vld [vmem:[#allocation7 + $0x60] sm:$0xff] }
0x1bac   :  { %1648 = vadd.xlane.f32.xlu0 %v1647_v28  ;;  %v1896_v28 = vld [vmem:[#allocation7 + $0x68] sm:$0xff] }
0x1c39   :  { %v1649_v34 = vpop.xlane.xlu0 %1648 }
0x1c3a   :  { %4766 = vrcp.f32 %v1649_v34  ;;  %v5652_v34 = vpack.c.bf16 %v1896_v28, %v1895_v27 }
0x1c44   :  { %v4767_v63 = vpop.eup %4766 }
0x1c45   :  { %v1659_v35 = vrot.slane %v4767_v63, %v5293_v54  ;;  %v1655_v7 = vrot.slane %v4767_v63, %v5268_v36  ;;  %v1897_v63 = vld [vmem:[#allocation7 + $0x70] sm:$0xff] }
0x1c47   :  { %v1663_v37 = vmul.f32 %v4765_v41, %v1659_v35  ;;  %v1662_v38 = vmul.f32 %v4763_v21, %v1655_v7  ;;  %v1891_v21 = vld [vmem:[#allocation7 + $0x40] sm:$0xff]  ;;  %v1892_v41 = vld [vmem:[#allocation7 + $0x48] sm:$0xff]  ;;  %v1898_v35 = vld [vmem:[#allocation7 + $0x78] sm:$0xff] }
0x1c48   :  { %v5644_v24 = vpack.c.bf16 %v1892_v41, %v1891_v21  ;;  %v1877_v7 = vld [vmem:[#allocation2 + $0x6] sm:$0x3] }
0x1c49   :  { %1673 = vperm.xlu0 %4700, %v1663_v37   ;;  %1668 = vperm.xlu1 %4701, %v1662_v38   ;;  %v5656_v38 = vpack.c.bf16 %v1898_v35, %v1897_v63 }
0x1c4d   :  { %1693 = vrot.lane.b32.xlu1 %v5579_v46, %s5002_s6 }
0x1cc8   :  { %v1674_v13 = vpop.permute.xlu0 %1673  ;;  %v1669_v19 = vpop.permute.xlu1 %1668 }
0x1cc9   :  { %v1677_v2 = vmul.f32 %v1674_v13, %v5363_v15  ;;  %v1800_v40 = vrot.slane %v1674_v13, %v5304_v8  ;;  %v1676_v45 = vmul.f32 %v1669_v19, %v5368_v16  ;;  %v1796_v50 = vrot.slane %v1669_v19, %v5304_v8 }
0x1ccb   :  { %v1685_v52 = vsel %vm244_vm4, %v1677_v2, 0.0  ;;  %v1678_v48 = vsel %vm244_vm4, %v1676_v45, 0.0  ;;  %v1801_v61 = vsel %vm114_vm1, %v1800_v40, %v1796_v50  ;;  %v5668_v50 = vld [vmem:[#allocation8] ss:$0 sm:$0xff] }
0x1ccc   :  { %v1686_v49 = vrot.slane %v1685_v52, 4  ;;  %v1679_v9 = vrot.slane %v1678_v48, 4  ;;  %4155 = vmatpush3.msk.msra.mxu0 %vm643_vm7, %v1801_v61 }
0x1ccd   :  { %4157 = vmatmul.mubr.msk.f32.vlgmr.msra.gmra.mrb[10].mxu0 %vm639_vm9, %v5421_v43  ;;  %4561 = vmatprep.subr.bf16.mxu0 %v5008_v0  ;;  %v1694_v43 = vpop.permute.xlu1 %1693 }
0x1cce   :  { %v1687_v15 = vadd.f32 %v1686_v49, %v1685_v52  ;;  %v1680_v11 = vadd.f32 %v1679_v9, %v1678_v48  ;;  %4210 = vmatprep.mubr.msk.f32.mxu0 %vm5009_vm0, %v5010_v1 }
0x1cd0   :  { %v1688_v16 = vrot.slane %v1687_v15, 2  ;;  %v1681_v14 = vrot.slane %v1680_v11, 2 }
0x1cd2   :  { %v1689_v17 = vadd.f32 %v1688_v16, %v1687_v15  ;;  %v1682_v20 = vadd.f32 %v1681_v14, %v1680_v11 }
0x1cd4   :  { %v1683_v23 = vrot.slane %v1682_v20, 1  ;;  %v1690_v55 = vrot.slane %v1689_v17, 1 }
0x1cd6   :  { %v1684_v26 = vadd.f32 %v1683_v23, %v1682_v20  ;;  %v1691_v59 = vadd.f32 %v1690_v55, %v1689_v17  ;;  %v2008_v23 = vld [vmem:[%s6105_s7] sm:$0xff]  ;;  %v2009_v55 = vld [vmem:[%s6105_s7 + $0x8] sm:$0xff] }
0x1cd8   :  { %v1698_v51 = vsel %vm114_vm1, %v1691_v59, %v1684_v26  ;;  %v2010_v26 = vld [vmem:[%s6105_s7 + $0x10] sm:$0xff]  ;;  %v5686_v59 = vpack.c.bf16 %v2009_v55, %v2008_v23  ;;  %v5757_v23 = vld [vmem:[%s6099_s1 + $0x8] sm:$0xff] }
0x1cd9   :  { %1699 = vrot.lane.b32.xlu1 %v1698_v51, %s5002_s6 }
0x1cda   :  { %4563 = vmatpush3.bf16.msra.mxu0 %v5686_v59 }
0x1cdb   :  { %4564 = vmatprep.subr.bf16.mxu0 %v5008_v0 }
0x1cdd   :  { %1878 = vrot.lane.b32.xlu1 %v1698_v51, %s5011_s0 }
0x1d4b   :  { %v1700_v42 = vpop.permute.xlu1 %1699 }
0x1d4c   :  { %v1702_v31 = vsel %vm244_vm4, %v1694_v43, %v1700_v42  ;;  %v2012_v43 = vld [vmem:[%s6105_s7 + $0x20] sm:$0xff]  ;;  %v2014_v42 = vld [vmem:[%s6105_s7 + $0x30] sm:$0xff] }
0x1d4d   :  { %4152 = vmatmul.mubr.msk.f32.vlgmr.msra.gmra.mrb[10].mxu1 %vm119_vm2, %v1702_v31  ;;  %v5702_v53 = vpack.c.bf16 %v2013_v29, %v2012_v43  ;;  %v5713_v31 = vpack.c.bf16 %v2015_v44, %v2014_v42 }
0x1d4e   :  { %4539 = vmatpush3.bf16.msra.mxu1 %v5625_v47  ;;  %4191 = vmatprep.mubr.msk.f32.mxu1 %vm5009_vm0, %v5010_v1 }
0x1d4f   :  { %4540 = vmatprep.subr.bf16.mxu1 %v5008_v0  ;;  %v1879_v37 = vpop.permute.xlu1 %1878 }
0x1d50   :  { %v1881_v13 = vsel %vm119_vm2, %v1877_v7, %v1879_v37 }
0x1d51   :  { %v1882_v19 = vsel %vm121_vm3, %v1881_v13, %v5555_v22 }
0x1d52   :  { %4542 = vmatpush3.bf16.msra.mxu1 %v5630_v57 }
0x1d53   :  { %4543 = vmatprep.subr.bf16.mxu1 %v5008_v0 }
0x1d56   :  { %4545 = vmatpush3.bf16.msra.mxu1 %v5636_v4 }
0x1d57   :  { %4546 = vmatprep.subr.bf16.mxu1 %v5008_v0 }
0x1d5a   :  { %4548 = vmatpush3.bf16.msra.mxu1 %v5640_v18 }
0x1d5b   :  { %4549 = vmatprep.subr.bf16.mxu1 %v5008_v0 }
0x1d5e   :  { %4551 = vmatpush3.bf16.msra.mxu1 %v5644_v24 }
0x1d5f   :  { %4552 = vmatprep.subr.bf16.mxu1 %v5008_v0 }
0x1d62   :  { %4554 = vmatpush3.bf16.msra.mxu1 %v5648_v60 }
0x1d63   :  { %4555 = vmatprep.subr.bf16.mxu1 %v5008_v0 }
0x1d66   :  { %4557 = vmatpush3.bf16.msra.mxu1 %v5652_v34 }
0x1d67   :  { %4558 = vmatprep.subr.bf16.mxu1 %v5008_v0 }
0x1d6a   :  { %4560 = vmatpush3.bf16.msra.mxu1 %v5656_v38 }
0x1d6b   :  { %4232 = vmatprep.subr.mxu1 %v5010_v1 }
0x1d6d   :  { %4192 = vmatmul.mubr.f32.vlgmr.msra.gmra.mrb[12].mxu1 %v1882_v19 }
0x1d6e   :  { %4234 = vmatprep.mubr.msk.f32.mxu1 %vm5009_vm0, %v5010_v1 }
0x1da0   :  { %v1870_v58 = vpop.f32.mrb[10].mxu0 }
0x1da1   :  { %1875 = vst.msk [vmem:[#allocation12 + $0x2] sm:$0x1] %vm716_vm10, %v1870_v58  ;;  %v4158_v62 = vpop.f32.mrb[11].mxu0 }
0x1e20   :  { %v1787_v2 = vpop.f32.mrb[10].mxu1 }
0x1e21   :  { %v1788_v40 = vadd.f32 %v5410_v12, %v1787_v2  ;;  %v4153_v45 = vpop.f32.mrb[11].mxu1 }
0x1e23   :  { %1792 = vst.msk [vmem:[#allocation11 + $0x4] sm:$0x3] %vm628_vm8, %v1788_v40 }
0x1e40   :  { %v1972_v52 = vpop.f32.mrb[12].mxu1 }
0x1e41   :  { %v1973_v48 = vadd.f32 %v5668_v50, %v1972_v52  ;;  %v4193_v61 = vpop.f32.mrb[13].mxu1 }
0x1e43   :  { %4768 = vtanh.f32 %v1973_v48  ;;  %v3677_v22 = vmul.f32 -1.442695, %v1973_v48 }
0x1e45   :  { %4770 = vpow2.f32 %v3677_v22 }
0x1e4d   :  { %v4769_v49 = vpop.eup %4768 }
0x1e4e   :  { %1985 = vrot.lane.b32.xlu0 %v4769_v49, %s5011_s0 }
0x1e4f   :  { %v4771_v9 = vpop.eup %4770 }
0x1e50   :  { %v1979_v15 = vadd.f32 1.0, %v4771_v9 }
0x1e52   :  { %4772 = vrcp.f32 %v1979_v15 }
0x1e5c   :  { %v4773_v11 = vpop.eup %4772 }
0x1e5d   :  { %v1983_v14 = vmul.f32 %v4773_v11, %v5548_v6  ;;  %v2011_v6 = vld [vmem:[%s6105_s7 + $0x18] sm:$0xff] }
0x1e5e   :  { %v5692_v51 = vpack.c.bf16 %v2011_v6, %v2010_v26 }
0x1e60   :  { %4566 = vmatpush3.bf16.msra.mxu0 %v5692_v51 }
0x1e61   :  { %4567 = vmatprep.subr.bf16.mxu0 %v5008_v0 }
0x1e64   :  { %4569 = vmatpush3.bf16.msra.mxu0 %v5702_v53 }
0x1e65   :  { %4570 = vmatprep.subr.bf16.mxu0 %v5008_v0 }
0x1e68   :  { %4572 = vmatpush3.bf16.msra.mxu0 %v5713_v31 }
0x1e69   :  { %4573 = vmatprep.subr.bf16.mxu0 %v5008_v0 }
0x1ec0   :  { %v1986_v12 = vpop.permute.xlu0 %1985 }
0x1ec1   :  { %v1988_v16 = vmul.f32 %v4773_v11, %v1986_v12 }
0x1ec3   :  { %1990 = vrot.lane.b32.xlu1 %v1988_v16, %s5002_s6 }
0x1f35   :  { %v1991_v17 = vpop.permute.xlu1 %1990 }
0x1f36   :  { %v5674_v20 = vadd.f32 %v1991_v17, %v1983_v14  ;;  %v5752_v14 = vld [vmem:[%s6099_s1] sm:$0xff] }
0x1f38   :  { %4774 = vtanh.f32 %v5674_v20 }
0x1f42   :  { %v4775_v56 = vpop.eup %4774 }
0x1f43   :  { %1996 = vrot.lane.b32.xlu0 %v4775_v56, %s5011_s0 }
0x1f47   :  { %2004 = vrot.lane.b32.xlu0 %v5579_v46, %s5011_s0  ;;  %v5729_v46 = vld [vmem:[#allocation10] ss:$0 sm:$0xff] }
0x1fb5   :  { %v1997_v33 = vpop.permute.xlu0 %1996 }
0x1fb6   :  { %v5721_v10 = vmul.f32 %v4773_v11, %v1997_v33 }
0x1fb8   :  { %2001 = vrot.lane.b32.xlu1 %v5721_v10, %s5002_s6 }
0x1fb9   :  { %v2005_v21 = vpop.permute.xlu0 %2004 }
0x202a   :  { %v2002_v41 = vpop.permute.xlu1 %2001 }
0x202b   :  { %v2007_v25 = vsel %vm244_vm4, %v2002_v41, %v2005_v21 }
0x202c   :  { %4211 = vmatmul.mubr.msk.f32.vlgmr.msra.gmra.mrb[12].mxu0 %vm119_vm2, %v2007_v25 }
0x202d   :  { %4229 = vmatprep.mubr.msk.f32.mxu0 %vm5009_vm0, %v5010_v1 }
0x20ff   :  { %v2092_v30 = vpop.f32.mrb[12].mxu0 }
0x2100   :  { %v2093_v27 = vadd.f32 %v5729_v46, %v2092_v30  ;;  %v4212_v28 = vpop.f32.mrb[13].mxu0 }
0x2102   :  { %4776 = vtanh.f32 %v2093_v27  ;;  %v3680_v35 = vmul.f32 -1.442695, %v2093_v27 }
0x2104   :  { %4778 = vpow2.f32 %v3680_v35 }
0x210c   :  { %v4777_v63 = vpop.eup %4776 }
0x210d   :  { %2105 = vrot.lane.b32.xlu1 %v4777_v63, %s5011_s0 }
0x210e   :  { %v4779_v7 = vpop.eup %4778 }
0x210f   :  { %v2099_v37 = vadd.f32 1.0, %v4779_v7 }
0x2111   :  { %4780 = vrcp.f32 %v2099_v37 }
0x211b   :  { %v4781_v13 = vpop.eup %4780 }
0x211c   :  { %v2103_v40 = vmul.f32 %v4781_v13, %v5575_v39 }
0x217f   :  { %v2106_v19 = vpop.permute.xlu1 %2105 }
0x2180   :  { %v2108_v2 = vmul.f32 %v4781_v13, %v2106_v19 }
0x2182   :  { %2110 = vrot.lane.b32.xlu0 %v2108_v2, %s5002_s6 }
0x21f4   :  { %v2111_v45 = vpop.permute.xlu0 %2110 }
0x21f5   :  { %v5735_v52 = vadd.f32 %v2111_v45, %v2103_v40 }
0x21f7   :  { %4782 = vtanh.f32 %v5735_v52 }
0x2201   :  { %v4783_v48 = vpop.eup %4782 }
0x2202   :  { %2116 = vrot.lane.b32.xlu1 %v4783_v48, %s5011_s0 }
0x2274   :  { %v2117_v61 = vpop.permute.xlu1 %2116 }
0x2275   :  { %v5739_v49 = vmul.f32 %v4781_v13, %v2117_v61 }
0x2277   :  { %v2120_v22 = vmul.f32 0.17677669, %v5739_v49 }
0x2279   :  { %v2130_v9 = vrot.slane %v2120_v22, %v5264_v32 }
0x227b   :  { %v2138_v15 = vrot.slane %v2130_v9, %v5264_v32  ;;  %v2131_v11 = vcombine.high %v2130_v9, %v2130_v9 }
0x227d   :  { %v2149_v39 = vrot.slane %v2138_v15, %v5268_v36  ;;  %v2145_v12 = vrot.slane %v2131_v11, %v5264_v32 }
0x227f   :  { %2154 = vrot.lane.b32.xlu0 %v2149_v39, %s5002_s6  ;;  %v2153_v16 = vrot.slane %v2145_v12, %v5268_v36 }
0x2281   :  { %2156 = vrot.lane.b32.xlu1 %v2153_v16, %s5002_s6 }
0x22f1   :  { %v2155_v17 = vpop.permute.xlu0 %2154 }
0x22f2   :  { %v2160_v55 = vmul.f32 %v2155_v17, %v5752_v14 }
0x22f3   :  { %v2157_v26 = vpop.permute.xlu1 %2156 }
0x22f4   :  { %v2161_v6 = vmul.f32 %v2157_v26, %v5757_v23  ;;  %v2162_v43 = vsel %vm244_vm4, %v2160_v55, 0.0  ;;  %v2282_v55 = vld [vmem:[%s6107_s9] sm:$0xff]  ;;  %v2283_v26 = vld [vmem:[%s6107_s9 + $0x8] sm:$0xff] }
0x22f5   :  { %2163 = vadd.xlane.f32.xlu0 %v2162_v43  ;;  %v5788_v43 = vpack.c.bf16 %v2283_v26, %v2282_v55 }
0x22f6   :  { %v2165_v29 = vsel %vm244_vm4, %v2161_v6, 0.0  ;;  %v2284_v6 = vld [vmem:[%s6107_s9 + $0x10] sm:$0xff] }
0x22f7   :  { %2166 = vadd.xlane.f32.xlu1 %v2165_v29  ;;  %v2285_v29 = vld [vmem:[%s6107_s9 + $0x18] sm:$0xff]  ;;  %4575 = vmatpush3.bf16.msra.mxu0 %v5788_v43 }
0x22f8   :  { %4576 = vmatprep.subr.bf16.mxu0 %v5008_v0 }
0x2382   :  { %v2164_v42 = vpop.xlane.xlu0 %2163 }
0x2383   :  { %v2168_v44 = vadd.f32 %v2164_v42, %v5298_v3  ;;  %v5794_v42 = vpack.c.bf16 %v2285_v29, %v2284_v6 }
0x2384   :  { %v2167_v56 = vpop.xlane.xlu1 %2166 }
0x2385   :  { %v2169_v58 = vadd.f32 %v2167_v56, %v5301_v5  ;;  %2173 = vperm.xlu0 %4700, %v2168_v44   ;;  %v2287_v56 = vld [vmem:[%s6107_s9 + $0x28] sm:$0xff]  ;;  %4578 = vmatpush3.bf16.msra.mxu0 %v5794_v42 }
0x2386   :  { %4579 = vmatprep.subr.bf16.mxu0 %v5008_v0 }
0x2387   :  { %2176 = vperm.xlu1 %4701, %v2169_v58  }
0x2404   :  { %v2174_v62 = vpop.permute.xlu0 %2173 }
0x2405   :  { %v2181_v21 = vrot.slane %v2174_v62, %v5304_v8  ;;  %v2288_v62 = vld [vmem:[%s6107_s9 + $0x30] sm:$0xff] }
0x2406   :  { %v2177_v33 = vpop.permute.xlu1 %2176 }
0x2407   :  { %v2185_v41 = vrot.slane %v2177_v33, %v5304_v8  ;;  %v2289_v33 = vld [vmem:[%s6107_s9 + $0x38] sm:$0xff] }
0x2409   :  { %v2186_v25 = vsel %vm114_vm1, %v2185_v41, %v2181_v21  ;;  %v5814_v21 = vpack.c.bf16 %v2289_v33, %v2288_v62  ;;  %v5822_v41 = vld [vmem:[%s6100_s2 + $0x8] sm:$0xff] }
0x240a   :  { %v2188_v30 = vsel %vm445_vm6, %v2186_v25, -inf  ;;  %v5827_v25 = vld [vmem:[%s6100_s2] sm:$0xff] }
0x240b   :  { %2189 = vmax.xlane.f32.xlu0 %v2188_v30 }
0x2498   :  { %v2190_v27 = vpop.xlane.xlu0 %2189 }
0x2499   :  { %v2195_v28 = vrot.slane %v2190_v27, %v5268_v36  ;;  %v2199_v63 = vrot.slane %v2190_v27, %v5293_v54 }
0x249b   :  { %v2202_v35 = vsub.f32 %v2168_v44, %v2195_v28  ;;  %v2203_v7 = vsub.f32 %v2169_v58, %v2199_v63  ;;  %v2286_v44 = vld [vmem:[%s6107_s9 + $0x20] sm:$0xff] }
0x249c   :  { %v5804_v58 = vpack.c.bf16 %v2287_v56, %v2286_v44  ;;  %v2456_v44 = vld [vmem:[#allocation2 + $0x8] sm:$0x3] }
0x249d   :  { %v2204_v37 = vmul.f32 1.442695, %v2202_v35  ;;  %v2206_v13 = vmul.f32 1.442695, %v2203_v7 }
0x249e   :  { %4581 = vmatpush3.bf16.msra.mxu0 %v5804_v58 }
0x249f   :  { %4784 = vpow2.f32 %v2204_v37  ;;  %4582 = vmatprep.subr.bf16.mxu0 %v5008_v0 }
0x24a0   :  { %4786 = vpow2.f32 %v2206_v13 }
0x24a2   :  { %4584 = vmatpush3.bf16.msra.mxu0 %v5814_v21 }
0x24a3   :  { %4585 = vmatprep.subr.bf16.mxu0 %v5008_v0 }
0x24a9   :  { %v4785_v19 = vpop.eup %4784 }
0x24aa   :  { %2211 = vperm.xlu1 %4701, %v4785_v19   ;;  %v4787_v2 = vpop.eup %4786 }
0x24ae   :  { %2214 = vperm.xlu1 %4701, %v4787_v2  }
0x2529   :  { %v2212_v40 = vpop.permute.xlu1 %2211 }
0x252a   :  { %v2219_v48 = vrot.slane %v2212_v40, %v5304_v8 }
0x252d   :  { %v2215_v45 = vpop.permute.xlu1 %2214 }
0x252e   :  { %v2223_v61 = vrot.slane %v2215_v45, %v5304_v8  ;;  %v5837_v45 = vld [vmem:[#allocation5] sm:$0x1] }
0x2530   :  { %v2224_v22 = vsel %vm114_vm1, %v2223_v61, %v2219_v48 }
0x2531   :  { %v2226_v9 = vsel %vm445_vm6, %v2224_v22, 0.0 }
0x2532   :  { %2227 = vadd.xlane.f32.xlu1 %v2226_v9 }
0x25bf   :  { %v2228_v15 = vpop.xlane.xlu1 %2227 }
0x25c0   :  { %4788 = vrcp.f32 %v2228_v15 }
0x25ca   :  { %v4789_v11 = vpop.eup %4788 }
0x25cb   :  { %v2238_v39 = vrot.slane %v4789_v11, %v5293_v54  ;;  %v2234_v12 = vrot.slane %v4789_v11, %v5268_v36 }
0x25cd   :  { %v2242_v16 = vmul.f32 %v4787_v2, %v2238_v39  ;;  %v2241_v17 = vmul.f32 %v4785_v19, %v2234_v12 }
0x25cf   :  { %2252 = vperm.xlu1 %4701, %v2242_v16   ;;  %2247 = vperm.xlu0 %4700, %v2241_v17  }
0x25d3   :  { %2272 = vrot.lane.b32.xlu0 %v5739_v49, %s5002_s6 }
0x264e   :  { %v2253_v30 = vpop.permute.xlu1 %2252  ;;  %v2248_v27 = vpop.permute.xlu0 %2247 }
0x264f   :  { %v2256_v28 = vmul.f32 %v2253_v30, %v5822_v41  ;;  %v2379_v63 = vrot.slane %v2253_v30, %v5304_v8  ;;  %v2255_v35 = vmul.f32 %v2248_v27, %v5827_v25  ;;  %v2375_v7 = vrot.slane %v2248_v27, %v5304_v8  ;;  %v5883_v30 = vld [vmem:[%s6108_s10] ss:$0 sm:$0xff]  ;;  %s5014_s10 = smov [#allocation12]  }
0x2651   :  { %v2264_v37 = vsel %vm244_vm4, %v2256_v28, 0.0  ;;  %v2257_v13 = vsel %vm244_vm4, %v2255_v35, 0.0  ;;  %v2380_v19 = vsel %vm114_vm1, %v2379_v63, %v2375_v7 }
0x2652   :  { %v2265_v2 = vrot.slane %v2264_v37, 4  ;;  %v2258_v40 = vrot.slane %v2257_v13, 4  ;;  %4233 = vmatpush3.msk.msra.mxu1 %vm643_vm7, %v2380_v19  ;;  %v2273_v26 = vpop.permute.xlu0 %2272 }
0x2653   :  { %4235 = vmatmul.mubr.msk.f32.vlgmr.msra.gmra.mrb[14].mxu1 %vm639_vm9, %v5837_v45  ;;  %4609 = vmatprep.subr.bf16.mxu1 %v5008_v0 }
0x2654   :  { %v2266_v48 = vadd.f32 %v2265_v2, %v2264_v37  ;;  %v2259_v61 = vadd.f32 %v2258_v40, %v2257_v13  ;;  %4611 = vmatpush3.bf16.msra.mxu1 %v5686_v59  ;;  %4288 = vmatprep.mubr.msk.f32.mxu1 %vm5009_vm0, %v5010_v1 }
0x2655   :  { %4612 = vmatprep.subr.bf16.mxu1 %v5008_v0 }
0x2656   :  { %v2267_v22 = vrot.slane %v2266_v48, 2  ;;  %v2260_v9 = vrot.slane %v2259_v61, 2 }
0x2658   :  { %v2268_v15 = vadd.f32 %v2267_v22, %v2266_v48  ;;  %v2261_v11 = vadd.f32 %v2260_v9, %v2259_v61  ;;  %4614 = vmatpush3.bf16.msra.mxu1 %v5692_v51 }
0x2659   :  { %4615 = vmatprep.subr.bf16.mxu1 %v5008_v0 }
0x265a   :  { %v2262_v39 = vrot.slane %v2261_v11, 1  ;;  %v2269_v12 = vrot.slane %v2268_v15, 1 }
0x265c   :  { %v2263_v16 = vadd.f32 %v2262_v39, %v2261_v11  ;;  %v2270_v17 = vadd.f32 %v2269_v12, %v2268_v15  ;;  %4617 = vmatpush3.bf16.msra.mxu1 %v5702_v53 }
0x265d   :  { %4618 = vmatprep.subr.bf16.mxu1 %v5008_v0 }
0x265e   :  { %v2277_v55 = vsel %vm114_vm1, %v2270_v17, %v2263_v16 }
0x265f   :  { %2278 = vrot.lane.b32.xlu0 %v2277_v55, %s5002_s6 }
0x2660   :  { %4620 = vmatpush3.bf16.msra.mxu1 %v5713_v31 }
0x2661   :  { %4621 = vmatprep.subr.bf16.mxu1 %v5008_v0 }
0x2663   :  { %2457 = vrot.lane.b32.xlu0 %v2277_v55, %s5011_s0 }
0x26d1   :  { %v2279_v6 = vpop.permute.xlu0 %2278 }
0x26d2   :  { %v2281_v29 = vsel %vm244_vm4, %v2273_v26, %v2279_v6 }
0x26d3   :  { %4230 = vmatmul.mubr.msk.f32.vlgmr.msra.gmra.mrb[14].mxu0 %vm119_vm2, %v2281_v29 }
0x26d4   :  { %4587 = vmatpush3.bf16.msra.mxu0 %v5625_v47  ;;  %4269 = vmatprep.mubr.msk.f32.mxu0 %vm5009_vm0, %v5010_v1 }
0x26d5   :  { %4588 = vmatprep.subr.bf16.mxu0 %v5008_v0  ;;  %v2458_v56 = vpop.permute.xlu0 %2457 }
0x26d6   :  { %v2460_v62 = vsel %vm119_vm2, %v2456_v44, %v2458_v56 }
0x26d7   :  { %v2461_v33 = vsel %vm121_vm3, %v2460_v62, %v5721_v10 }
0x26d8   :  { %4590 = vmatpush3.bf16.msra.mxu0 %v5630_v57 }
0x26d9   :  { %4591 = vmatprep.subr.bf16.mxu0 %v5008_v0 }
0x26dc   :  { %4593 = vmatpush3.bf16.msra.mxu0 %v5636_v4 }
0x26dd   :  { %4594 = vmatprep.subr.bf16.mxu0 %v5008_v0 }
0x26e0   :  { %4596 = vmatpush3.bf16.msra.mxu0 %v5640_v18 }
0x26e1   :  { %4597 = vmatprep.subr.bf16.mxu0 %v5008_v0 }
0x26e4   :  { %4599 = vmatpush3.bf16.msra.mxu0 %v5644_v24 }
0x26e5   :  { %4600 = vmatprep.subr.bf16.mxu0 %v5008_v0 }
0x26e8   :  { %4602 = vmatpush3.bf16.msra.mxu0 %v5648_v60 }
0x26e9   :  { %4603 = vmatprep.subr.bf16.mxu0 %v5008_v0 }
0x26ec   :  { %4605 = vmatpush3.bf16.msra.mxu0 %v5652_v34 }
0x26ed   :  { %4606 = vmatprep.subr.bf16.mxu0 %v5008_v0 }
0x26f0   :  { %4608 = vmatpush3.bf16.msra.mxu0 %v5656_v38 }
0x26f1   :  { %4310 = vmatprep.subr.mxu0 %v5010_v1 }
0x26f3   :  { %4270 = vmatmul.mubr.f32.vlgmr.msra.gmra.mrb[16].mxu0 %v2461_v33 }
0x26f4   :  { %4312 = vmatprep.mubr.msk.f32.mxu0 %vm5009_vm0, %v5010_v1 }
0x2726   :  { %v2449_v39 = vpop.f32.mrb[14].mxu1 }
0x2727   :  { %2454 = vst.msk [vmem:[#allocation12 + $0x3] sm:$0x1] %vm716_vm10, %v2449_v39  ;;  %v4236_v12 = vpop.f32.mrb[15].mxu1 }
0x27a6   :  { %v2366_v27 = vpop.f32.mrb[14].mxu0 }
0x27a7   :  { %v2367_v28 = vadd.f32 %v5883_v30, %v2366_v27  ;;  %v4231_v63 = vpop.f32.mrb[15].mxu0 }
0x27a9   :  { %2371 = vst.msk [vmem:[#allocation11 + $0x6] sm:$0x3] %vm628_vm8, %v2367_v28 }
0x27c6   :  { %v2551_v35 = vpop.f32.mrb[16].mxu0 }
0x27c7   :  { %v2552_v7 = vadd.f32 %v5668_v50, %v2551_v35  ;;  %v4271_v37 = vpop.f32.mrb[17].mxu0 }
0x27c9   :  { %4790 = vtanh.f32 %v2552_v7  ;;  %v3686_v13 = vmul.f32 -1.442695, %v2552_v7 }
0x27cb   :  { %4792 = vpow2.f32 %v3686_v13 }
0x27d3   :  { %v4791_v10 = vpop.eup %4790 }
0x27d4   :  { %2564 = vrot.lane.b32.xlu1 %v4791_v10, %s5011_s0 }
0x27d5   :  { %v4793_v19 = vpop.eup %4792 }
0x27d6   :  { %v2558_v2 = vadd.f32 1.0, %v4793_v19 }
0x27d8   :  { %4794 = vrcp.f32 %v2558_v2 }
0x27e2   :  { %v4795_v40 = vpop.eup %4794 }
0x27e3   :  { %v2562_v22 = vmul.f32 %v4795_v40, %v5674_v20 }
0x2846   :  { %v2565_v48 = vpop.permute.xlu1 %2564 }
0x2847   :  { %v2567_v61 = vmul.f32 %v4795_v40, %v2565_v48 }
0x2849   :  { %2569 = vrot.lane.b32.xlu0 %v2567_v61, %s5002_s6 }
0x28bb   :  { %v2570_v9 = vpop.permute.xlu0 %2569 }
0x28bc   :  { %v5891_v15 = vadd.f32 %v2570_v9, %v2562_v22 }
0x28be   :  { %4796 = vtanh.f32 %v5891_v15 }
0x28c8   :  { %v4797_v11 = vpop.eup %4796 }
0x28c9   :  { %2575 = vrot.lane.b32.xlu1 %v4797_v11, %s5011_s0 }
0x28cd   :  { %2583 = vrot.lane.b32.xlu1 %v5739_v49, %s5011_s0 }
0x293b   :  { %v2576_v16 = vpop.permute.xlu1 %2575 }
0x293c   :  { %v5898_v17 = vmul.f32 %v4795_v40, %v2576_v16 }
0x293e   :  { %2580 = vrot.lane.b32.xlu0 %v5898_v17, %s5002_s6 }
0x293f   :  { %v2584_v20 = vpop.permute.xlu1 %2583 }
0x29b0   :  { %v2581_v55 = vpop.permute.xlu0 %2580 }
0x29b1   :  { %v2586_v26 = vsel %vm244_vm4, %v2581_v55, %v2584_v20 }
0x29b2   :  { %4289 = vmatmul.mubr.msk.f32.vlgmr.msra.gmra.mrb[16].mxu1 %vm119_vm2, %v2586_v26 }
0x29b3   :  { %4623 = vmatpush3.bf16.msra.mxu1 %v5788_v43  ;;  %4307 = vmatprep.mubr.msk.f32.mxu1 %vm5009_vm0, %v5010_v1 }
0x29b4   :  { %4624 = vmatprep.subr.bf16.mxu1 %v5008_v0 }
0x29b7   :  { %4626 = vmatpush3.bf16.msra.mxu1 %v5794_v42 }
0x29b8   :  { %4627 = vmatprep.subr.bf16.mxu1 %v5008_v0 }
0x29bb   :  { %4629 = vmatpush3.bf16.msra.mxu1 %v5804_v58 }
0x29bc   :  { %4630 = vmatprep.subr.bf16.mxu1 %v5008_v0 }
0x29bf   :  { %4632 = vmatpush3.bf16.msra.mxu1 %v5814_v21 }
0x29c0   :  { %4633 = vmatprep.subr.bf16.mxu1 %v5008_v0 }
0x2a85   :  { %v2671_v49 = vpop.f32.mrb[16].mxu1 }
0x2a86   :  { %v2672_v6 = vadd.f32 %v5729_v46, %v2671_v49  ;;  %v4290_v29 = vpop.f32.mrb[17].mxu1 }
0x2a88   :  { %4798 = vtanh.f32 %v2672_v6  ;;  %v3689_v56 = vmul.f32 -1.442695, %v2672_v6 }
0x2a8a   :  { %4800 = vpow2.f32 %v3689_v56 }
0x2a92   :  { %v4799_v44 = vpop.eup %4798 }
0x2a93   :  { %2684 = vrot.lane.b32.xlu0 %v4799_v44, %s5011_s0 }
0x2a94   :  { %v4801_v62 = vpop.eup %4800 }
0x2a95   :  { %v2678_v33 = vadd.f32 1.0, %v4801_v62 }
0x2a97   :  { %4802 = vrcp.f32 %v2678_v33 }
0x2aa1   :  { %v4803_v27 = vpop.eup %4802 }
0x2aa2   :  { %v2682_v35 = vmul.f32 %v4803_v27, %v5735_v52 }
0x2b05   :  { %v2685_v28 = vpop.permute.xlu0 %2684 }
0x2b06   :  { %v2687_v63 = vmul.f32 %v4803_v27, %v2685_v28 }
0x2b08   :  { %2689 = vrot.lane.b32.xlu1 %v2687_v63, %s5002_s6 }
0x2b7a   :  { %v2690_v7 = vpop.permute.xlu1 %2689 }
0x2b7b   :  { %v5918_v37 = vadd.f32 %v2690_v7, %v2682_v35 }
0x2b7d   :  { %4804 = vtanh.f32 %v5918_v37 }
0x2b87   :  { %v4805_v10 = vpop.eup %4804 }
0x2b88   :  { %2695 = vrot.lane.b32.xlu0 %v4805_v10, %s5011_s0 }
0x2bfa   :  { %v2696_v13 = vpop.permute.xlu0 %2695 }
0x2bfb   :  { %v5922_v19 = vmul.f32 %v4803_v27, %v2696_v13 }
0x2bfd   :  { %v2699_v2 = vmul.f32 0.17677669, %v5922_v19 }
0x2bff   :  { %v2709_v40 = vrot.slane %v2699_v2, %v5264_v32 }
0x2c01   :  { %v2717_v48 = vrot.slane %v2709_v40, %v5264_v32  ;;  %v2710_v61 = vcombine.high %v2709_v40, %v2709_v40 }
0x2c03   :  { %v2728_v52 = vrot.slane %v2717_v48, %v5268_v36  ;;  %v2724_v22 = vrot.slane %v2710_v61, %v5264_v32 }
0x2c05   :  { %2733 = vrot.lane.b32.xlu1 %v2728_v52, %s5002_s6  ;;  %v2732_v9 = vrot.slane %v2724_v22, %v5268_v36 }
0x2c07   :  { %2735 = vrot.lane.b32.xlu0 %v2732_v9, %s5002_s6 }
0x2c77   :  { %v2734_v11 = vpop.permute.xlu1 %2733 }
0x2c78   :  { %v2739_v39 = vmul.f32 %v2734_v11, %v5752_v14 }
0x2c79   :  { %v2736_v12 = vpop.permute.xlu0 %2735 }
0x2c7a   :  { %v2740_v16 = vmul.f32 %v2736_v12, %v5757_v23  ;;  %v2741_v20 = vsel %vm244_vm4, %v2739_v39, 0.0 }
0x2c7b   :  { %2742 = vadd.xlane.f32.xlu1 %v2741_v20 }
0x2c7c   :  { %v2744_v55 = vsel %vm244_vm4, %v2740_v16, 0.0 }
0x2c7d   :  { %2745 = vadd.xlane.f32.xlu0 %v2744_v55 }
0x2d08   :  { %v2743_v26 = vpop.xlane.xlu1 %2742 }
0x2d09   :  { %v2747_v49 = vadd.f32 %v2743_v26, %v5298_v3 }
0x2d0a   :  { %v2746_v6 = vpop.xlane.xlu0 %2745 }
0x2d0b   :  { %v2748_v29 = vadd.f32 %v2746_v6, %v5301_v5  ;;  %2752 = vperm.xlu0 %4700, %v2747_v49  }
0x2d0d   :  { %2755 = vperm.xlu1 %4701, %v2748_v29  }
0x2d8a   :  { %v2753_v44 = vpop.permute.xlu0 %2752 }
0x2d8b   :  { %v2760_v62 = vrot.slane %v2753_v44, %v5304_v8 }
0x2d8c   :  { %v2756_v56 = vpop.permute.xlu1 %2755 }
0x2d8d   :  { %v2764_v33 = vrot.slane %v2756_v56, %v5304_v8 }
0x2d8f   :  { %v2765_v27 = vsel %vm114_vm1, %v2764_v33, %v2760_v62 }
0x2d90   :  { %v2767_v28 = vsel %vm445_vm6, %v2765_v27, -inf }
0x2d91   :  { %2768 = vmax.xlane.f32.xlu1 %v2767_v28 }
0x2e1e   :  { %v2769_v63 = vpop.xlane.xlu1 %2768 }
0x2e1f   :  { %v2774_v35 = vrot.slane %v2769_v63, %v5268_v36  ;;  %v2778_v7 = vrot.slane %v2769_v63, %v5293_v54 }
0x2e21   :  { %v2781_v10 = vsub.f32 %v2747_v49, %v2774_v35  ;;  %v2782_v13 = vsub.f32 %v2748_v29, %v2778_v7 }
0x2e23   :  { %v2783_v2 = vmul.f32 1.442695, %v2781_v10  ;;  %v2785_v40 = vmul.f32 1.442695, %v2782_v13 }
0x2e25   :  { %4806 = vpow2.f32 %v2783_v2 }
0x2e26   :  { %4808 = vpow2.f32 %v2785_v40 }
0x2e2f   :  { %v4807_v48 = vpop.eup %4806 }
0x2e30   :  { %2790 = vperm.xlu0 %4700, %v4807_v48   ;;  %v4809_v61 = vpop.eup %4808 }
0x2e34   :  { %2793 = vperm.xlu0 %4700, %v4809_v61  }
0x2eaf   :  { %v2791_v52 = vpop.permute.xlu0 %2790 }
0x2eb0   :  { %v2798_v9 = vrot.slane %v2791_v52, %v5304_v8 }
0x2eb3   :  { %v2794_v22 = vpop.permute.xlu0 %2793 }
0x2eb4   :  { %v2802_v11 = vrot.slane %v2794_v22, %v5304_v8 }
0x2eb6   :  { %v2803_v39 = vsel %vm114_vm1, %v2802_v11, %v2798_v9 }
0x2eb7   :  { %v2805_v12 = vsel %vm445_vm6, %v2803_v39, 0.0 }
0x2eb8   :  { %2806 = vadd.xlane.f32.xlu0 %v2805_v12 }
0x2f45   :  { %v2807_v16 = vpop.xlane.xlu0 %2806 }
0x2f46   :  { %4810 = vrcp.f32 %v2807_v16 }
0x2f50   :  { %v4811_v20 = vpop.eup %4810 }
0x2f51   :  { %v2817_v55 = vrot.slane %v4811_v20, %v5293_v54  ;;  %v2813_v26 = vrot.slane %v4811_v20, %v5268_v36 }
0x2f53   :  { %v2821_v49 = vmul.f32 %v4809_v61, %v2817_v55  ;;  %v2820_v6 = vmul.f32 %v4807_v48, %v2813_v26 }
0x2f55   :  { %2831 = vperm.xlu0 %4700, %v2821_v49   ;;  %2826 = vperm.xlu1 %4701, %v2820_v6  }
0x2f59   :  { %2851 = vrot.lane.b32.xlu1 %v5922_v19, %s5002_s6 }
0x2fd4   :  { %v2832_v29 = vpop.permute.xlu0 %2831  ;;  %v2827_v44 = vpop.permute.xlu1 %2826 }
0x2fd5   :  { %v2835_v56 = vmul.f32 %v2832_v29, %v5822_v41  ;;  %v2958_v62 = vrot.slane %v2832_v29, %v5304_v8  ;;  %v2834_v33 = vmul.f32 %v2827_v44, %v5827_v25  ;;  %v2954_v27 = vrot.slane %v2827_v44, %v5304_v8 }
0x2fd7   :  { %v2843_v28 = vsel %vm244_vm4, %v2835_v56, 0.0  ;;  %v2836_v63 = vsel %vm244_vm4, %v2834_v33, 0.0  ;;  %v2959_v35 = vsel %vm114_vm1, %v2958_v62, %v2954_v27 }
0x2fd8   :  { %v2844_v7 = vrot.slane %v2843_v28, 4  ;;  %v2837_v10 = vrot.slane %v2836_v63, 4  ;;  %4311 = vmatpush3.msk.msra.mxu0 %vm643_vm7, %v2959_v35 }
0x2fd9   :  { %4313 = vmatmul.mubr.msk.f32.vlgmr.msra.gmra.mrb[18].mxu0 %vm639_vm9, %v5837_v45  ;;  %4657 = vmatprep.subr.bf16.mxu0 %v5008_v0 }
0x2fda   :  { %v2845_v13 = vadd.f32 %v2844_v7, %v2843_v28  ;;  %v2838_v2 = vadd.f32 %v2837_v10, %v2836_v63  ;;  %4659 = vmatpush3.bf16.msra.mxu0 %v5686_v59  ;;  %4366 = vmatprep.mubr.msk.f32.mxu0 %vm5009_vm0, %v5010_v1 }
0x2fdb   :  { %4660 = vmatprep.subr.bf16.mxu0 %v5008_v0 }
0x2fdc   :  { %v2846_v40 = vrot.slane %v2845_v13, 2  ;;  %v2839_v48 = vrot.slane %v2838_v2, 2 }
0x2fde   :  { %v2847_v61 = vadd.f32 %v2846_v40, %v2845_v13  ;;  %v2840_v52 = vadd.f32 %v2839_v48, %v2838_v2  ;;  %4662 = vmatpush3.bf16.msra.mxu0 %v5692_v51  ;;  %v2852_v51 = vpop.permute.xlu1 %2851 }
0x2fdf   :  { %4663 = vmatprep.subr.bf16.mxu0 %v5008_v0 }
0x2fe0   :  { %v2841_v22 = vrot.slane %v2840_v52, 1  ;;  %v2848_v9 = vrot.slane %v2847_v61, 1 }
0x2fe2   :  { %v2842_v11 = vadd.f32 %v2841_v22, %v2840_v52  ;;  %v2849_v39 = vadd.f32 %v2848_v9, %v2847_v61  ;;  %4665 = vmatpush3.bf16.msra.mxu0 %v5702_v53 }
0x2fe3   :  { %4666 = vmatprep.subr.bf16.mxu0 %v5008_v0 }
0x2fe4   :  { %v2856_v59 = vsel %vm114_vm1, %v2849_v39, %v2842_v11 }
0x2fe5   :  { %2857 = vrot.lane.b32.xlu1 %v2856_v59, %s5002_s6 }
0x2fe6   :  { %4668 = vmatpush3.bf16.msra.mxu0 %v5713_v31 }
0x2fe7   :  { %4669 = vmatprep.subr.bf16.mxu0 %v5008_v0 }
0x2fe9   :  { %3036 = vrot.lane.b32.xlu1 %v2856_v59, %s5011_s0 }
0x3057   :  { %v2858_v12 = vpop.permute.xlu1 %2857 }
0x3058   :  { %v2860_v16 = vsel %vm244_vm4, %v2852_v51, %v2858_v12 }
0x3059   :  { %4308 = vmatmul.mubr.msk.f32.vlgmr.msra.gmra.mrb[18].mxu1 %vm119_vm2, %v2860_v16 }
0x305a   :  { %4635 = vmatpush3.bf16.msra.mxu1 %v5625_v47  ;;  %4347 = vmatprep.mubr.msk.f32.mxu1 %vm5009_vm0, %v5010_v1  ;;  %v3035_v47 = vld [vmem:[#allocation2 + $0xa] sm:$0x3] }
0x305b   :  { %4636 = vmatprep.subr.bf16.mxu1 %v5008_v0 }
0x305e   :  { %4638 = vmatpush3.bf16.msra.mxu1 %v5630_v57  ;;  %v3037_v57 = vpop.permute.xlu1 %3036 }
0x305f   :  { %4639 = vmatprep.subr.bf16.mxu1 %v5008_v0 }
0x3062   :  { %4641 = vmatpush3.bf16.msra.mxu1 %v5636_v4  ;;  %v3039_v4 = vsel %vm119_vm2, %v3035_v47, %v3037_v57 }
0x3063   :  { %4642 = vmatprep.subr.bf16.mxu1 %v5008_v0 }
0x3066   :  { %4644 = vmatpush3.bf16.msra.mxu1 %v5640_v18  ;;  %v3040_v18 = vsel %vm121_vm3, %v3039_v4, %v5898_v17 }
0x3067   :  { %4645 = vmatprep.subr.bf16.mxu1 %v5008_v0 }
0x306a   :  { %4647 = vmatpush3.bf16.msra.mxu1 %v5644_v24 }
0x306b   :  { %4648 = vmatprep.subr.bf16.mxu1 %v5008_v0 }
0x306e   :  { %4650 = vmatpush3.bf16.msra.mxu1 %v5648_v60 }
0x306f   :  { %4651 = vmatprep.subr.bf16.mxu1 %v5008_v0 }
0x3072   :  { %4653 = vmatpush3.bf16.msra.mxu1 %v5652_v34 }
0x3073   :  { %4654 = vmatprep.subr.bf16.mxu1 %v5008_v0 }
0x3076   :  { %4656 = vmatpush3.bf16.msra.mxu1 %v5656_v38 }
0x3077   :  { %4388 = vmatprep.subr.mxu1 %v5010_v1 }
0x3079   :  { %4348 = vmatmul.mubr.f32.vlgmr.msra.gmra.mrb[20].mxu1 %v3040_v18 }
0x307a   :  { %4390 = vmatprep.mubr.msk.f32.mxu1 %vm5009_vm0, %v5010_v1 }
0x30ac   :  { %v3028_v33 = vpop.f32.mrb[18].mxu0 }
0x30ad   :  { %3033 = vst.msk [vmem:[#allocation12 + $0x4] sm:$0x1] %vm716_vm10, %v3028_v33  ;;  %v4314_v27 = vpop.f32.mrb[19].mxu0 }
0x312c   :  { %v2945_v24 = vpop.f32.mrb[18].mxu1 }
0x312d   :  { %v2946_v60 = vadd.f32 %v5883_v30, %v2945_v24  ;;  %v4309_v53 = vpop.f32.mrb[19].mxu1 }
0x312f   :  { %2950 = vst.msk [vmem:[#allocation11 + $0x8] sm:$0x3] %vm628_vm8, %v2946_v60 }
0x314c   :  { %v3130_v34 = vpop.f32.mrb[20].mxu1 }
0x314d   :  { %v3131_v31 = vadd.f32 %v5668_v50, %v3130_v34  ;;  %v4349_v20 = vpop.f32.mrb[21].mxu1 }
0x314f   :  { %4812 = vtanh.f32 %v3131_v31  ;;  %v3695_v55 = vmul.f32 -1.442695, %v3131_v31 }
0x3151   :  { %4814 = vpow2.f32 %v3695_v55 }
0x3159   :  { %v4813_v38 = vpop.eup %4812 }
0x315a   :  { %3143 = vrot.lane.b32.xlu0 %v4813_v38, %s5011_s0 }
0x315b   :  { %v4815_v17 = vpop.eup %4814 }
0x315c   :  { %v3137_v26 = vadd.f32 1.0, %v4815_v17 }
0x315e   :  { %4816 = vrcp.f32 %v3137_v26 }
0x3168   :  { %v4817_v49 = vpop.eup %4816 }
0x3169   :  { %v3141_v44 = vmul.f32 %v4817_v49, %v5891_v15 }
0x31cc   :  { %v3144_v6 = vpop.permute.xlu0 %3143 }
0x31cd   :  { %v3146_v29 = vmul.f32 %v4817_v49, %v3144_v6 }
0x31cf   :  { %3148 = vrot.lane.b32.xlu1 %v3146_v29, %s5002_s6 }
0x3241   :  { %v3149_v56 = vpop.permute.xlu1 %3148 }
0x3242   :  { %v3151_v62 = vadd.f32 %v3149_v56, %v3141_v44 }
0x3244   :  { %4818 = vtanh.f32 %v3151_v62 }
0x324e   :  { %v4819_v50 = vpop.eup %4818 }
0x324f   :  { %3154 = vrot.lane.b32.xlu0 %v4819_v50, %s5011_s0 }
0x3253   :  { %3162 = vrot.lane.b32.xlu0 %v5922_v19, %s5011_s0 }
0x32c1   :  { %v3155_v28 = vpop.permute.xlu0 %3154 }
0x32c2   :  { %v3157_v63 = vmul.f32 %v4817_v49, %v3155_v28 }
0x32c4   :  { %3159 = vrot.lane.b32.xlu1 %v3157_v63, %s5002_s6 }
0x32c5   :  { %v3163_v35 = vpop.permute.xlu0 %3162 }
0x3336   :  { %v3160_v7 = vpop.permute.xlu1 %3159 }
0x3337   :  { %v3165_v15 = vsel %vm244_vm4, %v3160_v7, %v3163_v35 }
0x3338   :  { %4367 = vmatmul.mubr.msk.f32.vlgmr.msra.gmra.mrb[20].mxu0 %vm119_vm2, %v3165_v15 }
0x3339   :  { %4671 = vmatpush3.bf16.msra.mxu0 %v5788_v43  ;;  %4385 = vmatprep.mubr.msk.f32.mxu0 %vm5009_vm0, %v5010_v1 }
0x333a   :  { %4672 = vmatprep.subr.bf16.mxu0 %v5008_v0 }
0x333d   :  { %4674 = vmatpush3.bf16.msra.mxu0 %v5794_v42 }
0x333e   :  { %4675 = vmatprep.subr.bf16.mxu0 %v5008_v0 }
0x3341   :  { %4677 = vmatpush3.bf16.msra.mxu0 %v5804_v58 }
0x3342   :  { %4678 = vmatprep.subr.bf16.mxu0 %v5008_v0 }
0x3345   :  { %4680 = vmatpush3.bf16.msra.mxu0 %v5814_v21 }
0x340b   :  { %v3250_v19 = vpop.f32.mrb[20].mxu0 }
0x340c   :  { %v3251_v10 = vadd.f32 %v5729_v46, %v3250_v19  ;;  %v4368_v13 = vpop.f32.mrb[21].mxu0 }
0x340e   :  { %4820 = vtanh.f32 %v3251_v10  ;;  %v3698_v1 = vmul.f32 -1.442695, %v3251_v10 }
0x3410   :  { %4822 = vpow2.f32 %v3698_v1 }
0x3418   :  { %v4821_v43 = vpop.eup %4820 }
0x3419   :  { %3263 = vrot.lane.b32.xlu1 %v4821_v43, %s5011_s0 }
0x341a   :  { %v4823_v2 = vpop.eup %4822 }
0x341b   :  { %v3257_v42 = vadd.f32 1.0, %v4823_v2 }
0x341d   :  { %4824 = vrcp.f32 %v3257_v42 }
0x3427   :  { %v4825_v40 = vpop.eup %4824 }
0x3428   :  { %v3261_v0 = vmul.f32 %v4825_v40, %v5918_v37 }
0x348b   :  { %v3264_v48 = vpop.permute.xlu1 %3263 }
0x348c   :  { %v3266_v58 = vmul.f32 %v4825_v40, %v3264_v48 }
0x348e   :  { %3268 = vrot.lane.b32.xlu0 %v3266_v58, %s5002_s6 }
0x3500   :  { %v3269_v21 = vpop.permute.xlu0 %3268 }
0x3501   :  { %v3271_v61 = vadd.f32 %v3269_v21, %v3261_v0 }
0x3503   :  { %4826 = vtanh.f32 %v3271_v61 }
0x350d   :  { %v4827_v46 = vpop.eup %4826 }
0x350e   :  { %3274 = vrot.lane.b32.xlu1 %v4827_v46, %s5011_s0  ;;  %s3630_s0 = sshll.u32 %s5014_s10, 4  ;;  %s3631_s0 = int_to_ptr.vmem [resolvable:$true] %s3630_s0 }
0x350f   :  { %s4945_s14 = scalar_lea.vmem %s3631_s0, 96  ;;  %p4950_p13 = scmp.lt.s32.totalorder %s3631_s0, %s3631_s0 }
0x3510   :  { %p4946_p12 = scmp.ne.s32.totalorder %s3631_s0, %s4945_s14  ;;  %p4951_p0 = scmp.lt.s32.totalorder %s4945_s14, %s4945_s14 }
0x3512   :  { %p4952_p1 = por %p4951_p0, %p4950_p13 }
0x3514   :  { %p4953_p2 = pnand %p4952_p1, %p4946_p12 }
0x3580   :  { %v3275_v52 = vpop.permute.xlu1 %3274 }
0x3581   :  { %v3277_v22 = vmul.f32 %v4825_v40, %v3275_v52 }
0x3583   :  { %v3278_v9 = vmul.f32 0.17677669, %v3277_v22 }
0x3585   :  { %v3288_v11 = vrot.slane %v3278_v9, %v5264_v32 }
0x3587   :  { %v3289_v39 = vcombine.high %v3288_v11, %v3288_v11  ;;  %v3296_v59 = vrot.slane %v3288_v11, %v5264_v32 }
0x3589   :  { %v3307_v51 = vrot.slane %v3296_v59, %v5268_v36  ;;  %v3303_v12 = vrot.slane %v3289_v39, %v5264_v32 }
0x358b   :  { %3312 = vrot.lane.b32.xlu0 %v3307_v51, %s5002_s6  ;;  %v3311_v37 = vrot.slane %v3303_v12, %v5268_v36 }
0x358d   :  { %3314 = vrot.lane.b32.xlu1 %v3311_v37, %s5002_s6 }
0x35fd   :  { %v3313_v16 = vpop.permute.xlu0 %3312 }
0x35fe   :  { %v3318_v47 = vmul.f32 %v3313_v16, %v5752_v14 }
0x35ff   :  { %v3315_v57 = vpop.permute.xlu1 %3314 }
0x3600   :  { %v3319_v4 = vmul.f32 %v3315_v57, %v5757_v23  ;;  %v3320_v18 = vsel %vm244_vm4, %v3318_v47, 0.0 }
0x3601   :  { %3321 = vadd.xlane.f32.xlu0 %v3320_v18 }
0x3602   :  { %v3323_v24 = vsel %vm244_vm4, %v3319_v4, 0.0 }
0x3603   :  { %3324 = vadd.xlane.f32.xlu1 %v3323_v24 }
0x368e   :  { %v3322_v60 = vpop.xlane.xlu0 %3321 }
0x368f   :  { %v3326_v32 = vadd.f32 %v3322_v60, %v5298_v3 }
0x3690   :  { %v3325_v53 = vpop.xlane.xlu1 %3324 }
0x3691   :  { %v3327_v34 = vadd.f32 %v3325_v53, %v5301_v5  ;;  %3331 = vperm.xlu0 %4700, %v3326_v32  }
0x3693   :  { %3334 = vperm.xlu1 %4701, %v3327_v34  }
0x3710   :  { %v3332_v31 = vpop.permute.xlu0 %3331 }
0x3711   :  { %v3339_v14 = vrot.slane %v3332_v31, %v5304_v8 }
0x3712   :  { %v3335_v20 = vpop.permute.xlu1 %3334 }
0x3713   :  { %v3343_v23 = vrot.slane %v3335_v20, %v5304_v8 }
0x3715   :  { %v3344_v38 = vsel %vm114_vm1, %v3343_v23, %v3339_v14 }
0x3716   :  { %v3346_v55 = vsel %vm445_vm6, %v3344_v38, -inf }
0x3717   :  { %3347 = vmax.xlane.f32.xlu0 %v3346_v55 }
0x37a4   :  { %v3348_v17 = vpop.xlane.xlu0 %3347 }
0x37a5   :  { %v3353_v26 = vrot.slane %v3348_v17, %v5268_v36  ;;  %v3357_v3 = vrot.slane %v3348_v17, %v5293_v54 }
0x37a7   :  { %v3360_v49 = vsub.f32 %v3326_v32, %v3353_v26  ;;  %v3361_v5 = vsub.f32 %v3327_v34, %v3357_v3 }
0x37a9   :  { %v3362_v6 = vmul.f32 1.442695, %v3360_v49  ;;  %v3364_v29 = vmul.f32 1.442695, %v3361_v5 }
0x37ab   :  { %4828 = vpow2.f32 %v3362_v6 }
0x37ac   :  { %4830 = vpow2.f32 %v3364_v29 }
0x37b5   :  { %v4829_v44 = vpop.eup %4828 }
0x37b6   :  { %3369 = vperm.xlu1 %4701, %v4829_v44   ;;  %v4831_v56 = vpop.eup %4830 }
0x37ba   :  { %3372 = vperm.xlu1 %4701, %v4831_v56  }
0x3835   :  { %v3370_v62 = vpop.permute.xlu1 %3369 }
0x3836   :  { %v3377_v33 = vrot.slane %v3370_v62, %v5304_v8 }
0x3839   :  { %v3373_v50 = vpop.permute.xlu1 %3372 }
0x383a   :  { %v3381_v27 = vrot.slane %v3373_v50, %v5304_v8 }
0x383c   :  { %v3382_v28 = vsel %vm114_vm1, %v3381_v27, %v3377_v33 }
0x383d   :  { %v3384_v63 = vsel %vm445_vm6, %v3382_v28, 0.0 }
0x383e   :  { %3385 = vadd.xlane.f32.xlu1 %v3384_v63 }
0x38cb   :  { %v3386_v35 = vpop.xlane.xlu1 %3385 }
0x38cc   :  { %4832 = vrcp.f32 %v3386_v35 }
0x38d6   :  { %v4833_v7 = vpop.eup %4832 }
0x38d7   :  { %v3396_v15 = vrot.slane %v4833_v7, %v5293_v54  ;;  %v3392_v19 = vrot.slane %v4833_v7, %v5268_v36 }
0x38d9   :  { %v3400_v10 = vmul.f32 %v4831_v56, %v3396_v15  ;;  %v3399_v13 = vmul.f32 %v4829_v44, %v3392_v19 }
0x38db   :  { %3410 = vperm.xlu1 %4701, %v3400_v10   ;;  %3405 = vperm.xlu0 %4700, %v3399_v13  }
0x38df   :  { %3430 = vrot.lane.b32.xlu0 %v3277_v22, %s5002_s6 }
0x395a   :  { %v3411_v43 = vpop.permute.xlu1 %3410  ;;  %v3406_v1 = vpop.permute.xlu0 %3405 }
0x395b   :  { %v3414_v2 = vmul.f32 %v3411_v43, %v5822_v41  ;;  %v3537_v42 = vrot.slane %v3411_v43, %v5304_v8  ;;  %v3413_v40 = vmul.f32 %v3406_v1, %v5827_v25  ;;  %v3533_v48 = vrot.slane %v3406_v1, %v5304_v8 }
0x395d   :  { %v3422_v54 = vsel %vm244_vm4, %v3414_v2, 0.0  ;;  %v3415_v36 = vsel %vm244_vm4, %v3413_v40, 0.0  ;;  %v3538_v58 = vsel %vm114_vm1, %v3537_v42, %v3533_v48 }
0x395e   :  { %v3423_v0 = vrot.slane %v3422_v54, 4  ;;  %v3416_v21 = vrot.slane %v3415_v36, 4  ;;  %4389 = vmatpush3.msk.msra.mxu1 %vm643_vm7, %v3538_v58  ;;  %v3431_v51 = vpop.permute.xlu0 %3430 }
0x395f   :  { %4391 = vmatmul.mubr.msk.f32.vlgmr.msra.gmra.mrb[22].mxu1 %vm639_vm9, %v5837_v45 }
0x3960   :  { %v3424_v41 = vadd.f32 %v3423_v0, %v3422_v54  ;;  %v3417_v61 = vadd.f32 %v3416_v21, %v3415_v36 }
0x3962   :  { %v3425_v46 = vrot.slane %v3424_v41, 2  ;;  %v3418_v52 = vrot.slane %v3417_v61, 2 }
0x3964   :  { %v3426_v25 = vadd.f32 %v3425_v46, %v3424_v41  ;;  %v3419_v22 = vadd.f32 %v3418_v52, %v3417_v61 }
0x3966   :  { %v3427_v8 = vrot.slane %v3426_v25, 1  ;;  %v3420_v9 = vrot.slane %v3419_v22, 1 }
0x3968   :  { %v3421_v11 = vadd.f32 %v3420_v9, %v3419_v22  ;;  %v3428_v39 = vadd.f32 %v3427_v8, %v3426_v25 }
0x396a   :  { %v3435_v59 = vsel %vm114_vm1, %v3428_v39, %v3421_v11 }
0x396b   :  { %3436 = vrot.lane.b32.xlu0 %v3435_v59, %s5002_s6 }
0x39dd   :  { %v3437_v12 = vpop.permute.xlu0 %3436 }
0x39de   :  { %v3439_v37 = vsel %vm244_vm4, %v3431_v51, %v3437_v12 }
0x39df   :  { %4386 = vmatmul.mubr.msk.f32.vlgmr.msra.gmra.mrb[22].mxu0 %vm119_vm2, %v3439_v37 }
0x3a32   :  { %v3607_v45 = vpop.f32.mrb[22].mxu1 }
0x3a33   :  { %3612 = vst.msk [vmem:[#allocation12 + $0x5] sm:$0x1] %vm716_vm10, %v3607_v45  ;;  %v4392_v16 = vpop.f32.mrb[23].mxu1 }
0x3a34   :  { %4956 = shalt.err (!%p4953_p2)
}
0x3a35   :  { %s4957_s1 = scalar_lea.hbm %s6110_s12, 96 }
0x3a36   :  { %p4958_p3 = scmp.ne.s32.totalorder %s6110_s12, %s4957_s1  ;;  %p4961_p4 = scmp.lt.u32.totalorder %s4957_s1, %s6110_s12 }
0x3a38   :  { %p4963_p5 = pnand %p4961_p4, %p4958_p3 }
0x3a3a   :  { %4966 = shalt.err (!%p4963_p5)
}
0x3a3b   :  { %s5015_s19 = smov 16   ;;  %s5016_s20 = smov 1  }
0x3a3c   :  { %3636 = dma.vmem_to_hbm [thread:$0]  %s3631_s0, 96, %s6110_s12, [#allocation13], %s5015_s19, %s5015_s19, %s5016_s20  }
0x3a3d   :  { %s5017_s25 = smov [#allocation11]  }
0x3a3e   :  { %s3618_s27 = sshll.u32 %s5017_s25, 4  ;;  %s3619_s27 = int_to_ptr.vmem [resolvable:$true] %s3618_s27 }
0x3a3f   :  { %s4967_s28 = scalar_lea.vmem %s3619_s27, 192  ;;  %p4972_p7 = scmp.lt.s32.totalorder %s3619_s27, %s3619_s27 }
0x3a40   :  { %p4968_p6 = scmp.ne.s32.totalorder %s3619_s27, %s4967_s28  ;;  %p4973_p8 = scmp.lt.s32.totalorder %s4967_s28, %s4967_s28 }
0x3a42   :  { %p4974_p9 = por %p4973_p8, %p4972_p7 }
0x3a44   :  { %p4975_p10 = pnand %p4974_p9, %p4968_p6 }
0x3ab2   :  { %v3524_v47 = vpop.f32.mrb[22].mxu0 }
0x3ab3   :  { %v3525_v57 = vadd.f32 %v5883_v30, %v3524_v47  ;;  %v4387_v4 = vpop.f32.mrb[23].mxu0 }
0x3ab5   :  { %3529 = vst.msk [vmem:[#allocation11 + $0xa] sm:$0x3] %vm628_vm8, %v3525_v57 }
0x3ab6   :  { %4978 = shalt.err (!%p4975_p10)
}
0x3ab7   :  { %s4979_s12 = scalar_lea.hbm %s6109_s11, 192 }
0x3ab8   :  { %p4980_p11 = scmp.ne.s32.totalorder %s6109_s11, %s4979_s12  ;;  %p4983_p12 = scmp.lt.u32.totalorder %s4979_s12, %s6109_s11 }
0x3aba   :  { %p4985_p13 = pnand %p4983_p12, %p4980_p11 }
0x3abc   :  { %4988 = shalt.err (!%p4985_p13)
}
0x3abd   :  { %3624 = dma.vmem_to_hbm [thread:$0]  %s3619_s27, 192, %s6109_s11, [#allocation4], %s5002_s6, %s5002_s6, %s5003_s24  }
0x3abe   :  { %4995 = dma.done.wait [#allocation4], 192  }
0x3abf   :  { %4996 = vsyncadd [#allocation4], 4294967104 }
0x3ac0   :  { %4997 = dma.done.wait [#allocation13], 96  }
0x3ac1   :  { %4998 = vsyncadd [#allocation13], 4294967200 }
0x3ac2   :  { %3643 = vsyncpa [#allocation3], 1 }
0x3ac3   :  { %3644 = vsyncpa [#allocation6], 1 }
0x3ac4   :  { %3645 = vsyncpa [#allocation9], 1 }
0x3ac5   :  { %3646 = vsyncpa [#allocation4], 1 }
0x3ac6   :  { %3647 = vsyncpa [#allocation13], 1 }

</bundles_post_ra>
